<compile_context>
chip_gen: v6e
topology: v6e:2x2x1
jax: 0.10.0
libtpu: 0.0.40
codegen_flags: <defaults>
</compile_context>

<pallas_src>
import functools

import numpy as np

import jax
import jax.numpy as jnp
from jax import lax
from jax.experimental import pallas as pl
from jax.experimental.pallas import tpu as pltpu


# ---------------------------------------------------------------------------
# Fused SPPF kernel (one batch image per grid step, everything resident in VMEM)
# ---------------------------------------------------------------------------
def _sppf_fused_kernel(x_ref, w1_ref, b1_ref, w2_ref, b2_ref, o_ref,
                       pbuf, hbuf, *, H, W, matmul_dtype, pool_dtype):
    # x_ref : (1, HW, C1)       w1_ref: (C1, c_)      b1_ref: (1, c_)
    # w2_ref: (4, c_, C2)       b2_ref: (1, C2)       o_ref : (1, HW, C2)
    # pbuf  : ((H+4)*W, c_)  pool input,  2*W-row halos (values masked, never used)
    # hbuf  : ((H+4)*W, c_)  row-max,     2*W-row halos MUST be -inf
    HW = H * W
    c_ = w1_ref.shape[1]
    neg_inf = jnp.asarray(-jnp.inf, pool_dtype)

    def mm(a, b):
        # Weights arrive pre-cast from the wrapper; only the activation is cast.
        if matmul_dtype is not None:
            a = a.astype(matmul_dtype)
        return jnp.dot(a, b, preferred_element_type=jnp.float32)

    # ---- -inf halo strips only (cheap: 4*W rows per buffer), written every grid
    # step so correctness does not depend on program_id==0 running on every core.
    halo = jnp.full((2 * W, c_), -jnp.inf, pool_dtype)
    pbuf[0:2 * W, :] = halo
    pbuf[2 * W + HW:4 * W + HW, :] = halo
    hbuf[0:2 * W, :] = halo
    hbuf[2 * W + HW:4 * W + HW, :] = halo

    # ---- column-validity masks for the 1x5 row pass (a tap at offset dx must stay
    # inside its own image row).  Computed once, reused by all three pools.
    col = lax.broadcasted_iota(jnp.int32, (HW, 1), 0) % W
    v_m2 = col >= 2
    v_m1 = col >= 1
    v_p1 = col <= W - 2
    v_p2 = col <= W - 3

    def pool(y):
        """5x5 / stride-1 / pad-2 max-pool, separable, on flattened (HW, c_) data."""
        base = 2 * W
        pbuf[base:base + HW, :] = y.astype(pool_dtype)
        # 1x5 horizontal max: sublane shifts +/-1, +/-2 with row-boundary masks.
        hm = pbuf[base:base + HW, :]
        hm = jnp.maximum(hm, jnp.where(v_m1, pbuf[base - 1:base - 1 + HW, :], neg_inf))
        hm = jnp.maximum(hm, jnp.where(v_m2, pbuf[base - 2:base - 2 + HW, :], neg_inf))
        hm = jnp.maximum(hm, jnp.where(v_p1, pbuf[base + 1:base + 1 + HW, :], neg_inf))
        hm = jnp.maximum(hm, jnp.where(v_p2, pbuf[base + 2:base + 2 + HW, :], neg_inf))
        hbuf[base:base + HW, :] = hm
        # 5x1 vertical max: whole-row shifts +/-W, +/-2W; the -inf halos above and
        # below the image provide the padding semantics.
        vm = hbuf[base:base + HW, :]
        for dy in (-2, -1, 1, 2):
            off = base + dy * W
            vm = jnp.maximum(vm, hbuf[off:off + HW, :])
        return vm

    # ---- cv1: 1x1 conv (matmul) + folded BN bias + SiLU -> y0 ----
    a1 = mm(x_ref[0], w1_ref[...]) + b1_ref[...]
    y0 = a1 * jax.nn.sigmoid(a1)

    # ---- cv2 as 4 partial matmuls (no concat), interleaved with the pool cascade
    # so the MXU (cv2 partials) can overlap the VPU work (pooling).
    acc = mm(y0, w2_ref[0])
    y1 = pool(y0)
    acc = acc + mm(y1, w2_ref[1])
    y2 = pool(y1)
    acc = acc + mm(y2, w2_ref[2])
    y3 = pool(y2)
    acc = acc + mm(y3, w2_ref[3])

    a2 = acc + b2_ref[...]
    o_ref[0] = (a2 * jax.nn.sigmoid(a2)).astype(o_ref.dtype)


# ---------------------------------------------------------------------------
# NHWC wrapper (primary entry point; the (N,H,W,C) -> (N,HW,C) reshape is free)
# ---------------------------------------------------------------------------
@functools.partial(jax.jit, static_argnames=("matmul_dtype", "pool_dtype"))
def sppf_forward_nhwc(x_nhwc, w1, b1, w2, b2,
                      matmul_dtype=None, pool_dtype=jnp.float32):
    N, H, W, C1 = x_nhwc.shape
    c_ = w1.shape[1]
    C2 = w2.shape[1]
    HW = H * W

    x2 = x_nhwc.reshape(N, HW, C1)          # contiguous -> free
    w2g = w2.reshape(4, c_, C2)             # row-groups for y0..y3

    # Hoisted weight casts (review item 1): halves weight HBM->VMEM DMA for bf16.
    if matmul_dtype is not None:
        w1 = w1.astype(matmul_dtype)
        w2g = w2g.astype(matmul_dtype)

    kernel = functools.partial(_sppf_fused_kernel, H=H, W=W,
                               matmul_dtype=matmul_dtype, pool_dtype=pool_dtype)

    # VMEM budget derived from the actual resident set (double-buffered x/out
    # blocks, possibly double-buffered weights, two pooling scratches) + headroom.
    # TODO(synk): largest configs on v7x (64 MiB VMEM) additionally want bf16
    #             scratch/weights and/or H-banding.
    io_bytes = HW * (C1 + C2) * x2.dtype.itemsize
    w_bytes = ((C1 * c_ + 4 * c_ * C2) * np.dtype(w1.dtype).itemsize
               + (c_ + C2) * np.dtype(b1.dtype).itemsize)
    scratch_bytes = 2 * (H + 4) * W * c_ * np.dtype(pool_dtype).itemsize
    vmem_bytes = 2 * io_bytes + 2 * w_bytes + scratch_bytes + (16 << 20)
    vmem_bytes = int(max(32 << 20, min(vmem_bytes, 96 << 20)))

    cost = pl.CostEstimate(
        flops=int(2 * N * HW * (C1 * c_ + 4 * c_ * C2)),
        transcendentals=int(N * HW * (c_ + C2)),
        bytes_accessed=int(N * io_bytes + w_bytes),
    )

    out2 = pl.pallas_call(
        kernel,
        out_shape=jax.ShapeDtypeStruct((N, HW, C2), x_nhwc.dtype),
        grid_spec=pltpu.PrefetchScalarGridSpec(
            num_scalar_prefetch=0,
            grid=(N,),
            in_specs=[
                pl.BlockSpec((1, HW, C1), lambda n: (n, 0, 0)),
                pl.BlockSpec((C1, c_), lambda n: (0, 0)),
                pl.BlockSpec((1, c_), lambda n: (0, 0)),
                pl.BlockSpec((4, c_, C2), lambda n: (0, 0, 0)),
                pl.BlockSpec((1, C2), lambda n: (0, 0)),
            ],
            out_specs=pl.BlockSpec((1, HW, C2), lambda n: (n, 0, 0)),
            scratch_shapes=[
                pltpu.VMEM(((H + 4) * W, c_), pool_dtype),   # pool input + halos
                pltpu.VMEM(((H + 4) * W, c_), pool_dtype),   # row-max + -inf halos
            ],
        ),
        compiler_params=pltpu.CompilerParams(
            dimension_semantics=("parallel",),
            vmem_limit_bytes=vmem_bytes,
        ),
        cost_estimate=cost,
    )(x2, w1, b1, w2g, b2)
    return out2.reshape(N, H, W, C2)


# ---------------------------------------------------------------------------
# NCHW adapter matching the PyTorch SPPF module interface.  The transposes are
# full HBM round-trips; prefer sppf_forward_nhwc when the surrounding graph is NHWC.
# ---------------------------------------------------------------------------
def sppf_forward(x_nchw, w1, b1, w2, b2, matmul_dtype=None, pool_dtype=jnp.float32):
    x_nhwc = jnp.transpose(x_nchw, (0, 2, 3, 1))
    out = sppf_forward_nhwc(x_nhwc, w1, b1, w2, b2,
                            matmul_dtype=matmul_dtype, pool_dtype=pool_dtype)
    return jnp.transpose(out, (0, 3, 1, 2))


# ---------------------------------------------------------------------------
# Parameter construction: Conv2d(1x1, bias=False) + BatchNorm2d folded (eval mode)
# ---------------------------------------------------------------------------
def make_conv_bn_params(key, c_in, c_out, eps=1e-5):
    k_w, k_g, k_b, k_m, k_v = jax.random.split(key, 5)
    w = jax.random.normal(k_w, (c_out, c_in), jnp.float32) * 0.1   # 1x1 conv weight
    gamma = 1.0 + 0.1 * jax.random.normal(k_g, (c_out,), jnp.float32)
    beta = 0.1 * jax.random.normal(k_b, (c_out,), jnp.float32)
    mean = 0.1 * jax.random.normal(k_m, (c_out,), jnp.float32)
    var = jnp.abs(1.0 + 0.1 * jax.random.normal(k_v, (c_out,), jnp.float32))
    scale = gamma / jnp.sqrt(var + eps)
    w_eff = (w * scale[:, None]).T          # (c_in, c_out) with folded BN scale
    b_eff = (beta - mean * scale)[None, :]  # (1, c_out)  folded BN bias
    return w_eff, b_eff


# ---------------------------------------------------------------------------
# Pure-JAX reference (correctness check)
# ---------------------------------------------------------------------------
def sppf_reference(x_nchw, w1, b1, w2, b2):
    def pconv(xh, w, b):
        y = jnp.einsum("nhwc,cd->nhwd", xh, w) + b
        return y * jax.nn.sigmoid(y)

    def mp(xh):
        return lax.reduce_window(
            xh, -jnp.inf, lax.max,
            (1, 5, 5, 1), (1, 1, 1, 1),
            [(0, 0), (2, 2), (2, 2), (0, 0)],
        )

    xh = jnp.transpose(x_nchw, (0, 2, 3, 1))
    y0 = pconv(xh, w1, b1)
    y1 = mp(y0)
    y2 = mp(y1)
    y3 = mp(y2)
    out = pconv(jnp.concatenate([y0, y1, y2, y3], axis=-1), w2, b2)
    return jnp.transpose(out, (0, 3, 1, 2))


if __name__ == "__main__":
    def run_case(key, N, C1, C2, H, W, matmul_dtype=None, rtol=1e-5, atol=1e-5):
        k_x, k_p1, k_p2 = jax.random.split(key, 3)
        c_ = C1 // 2
        x = jax.random.normal(k_x, (N, C1, H, W), jnp.float32)
        w1, b1 = make_conv_bn_params(k_p1, C1, c_)        # cv1: c1 -> c1//2
        w2, b2 = make_conv_bn_params(k_p2, 4 * c_, C2)    # cv2: 4*c_ -> c2
        out = sppf_forward(x, w1, b1, w2, b2, matmul_dtype=matmul_dtype)
        jax.block_until_ready(out)
        ref = sppf_reference(x, w1, b1, w2, b2)
        assert out.shape == (N, C2, H, W), out.shape
        err = float(jnp.max(jnp.abs(out - ref)))
        assert jnp.allclose(out, ref, rtol=rtol, atol=atol), f"mismatch, max abs err={err}"

    key = jax.random.PRNGKey(0)
    k1, k2, k3 = jax.random.split(key, 3)

    # Main small case: SPPF(c1=4, c2=8, k=5), 16x16, f32 matmuls (tight check).
    run_case(k1, N=2, C1=4, C2=8, H=16, W=16)
    # W not a multiple of 8 (exercises the reshape-free masked pooling path).
    run_case(k2, N=2, C1=8, C2=16, H=10, W=10)
    # bf16 MXU-operand path (weights pre-cast in the wrapper), loose tolerance.
    run_case(k3, N=1, C1=4, C2=8, H=16, W=16,
             matmul_dtype=jnp.bfloat16, rtol=2e-2, atol=2e-2)

    print("KERNEL_OK")
</pallas_src>

<mosaic_0001>
module attributes {stable_mosaic.version = 11 : i64} {
  func.func @_sppf_fused_kernel(%arg0: i32, %arg1: memref<1x256x4xf32, #tpu.memory_space<vmem>>, %arg2: memref<4x2xf32, #tpu.memory_space<vmem>>, %arg3: memref<1x2xf32, #tpu.memory_space<vmem>>, %arg4: memref<4x2x8xf32, #tpu.memory_space<vmem>>, %arg5: memref<1x8xf32, #tpu.memory_space<vmem>>, %arg6: memref<1x256x8xf32, #tpu.memory_space<vmem>>, %arg7: memref<320x2xf32, #tpu.memory_space<vmem>>, %arg8: memref<320x2xf32, #tpu.memory_space<vmem>>) attributes {dimension_semantics = [#tpu.dimension_semantics<parallel>], iteration_bounds = array<i64: 2>, scalar_prefetch = 0 : i64, scratch_operands = 2 : i64, tpu.core_type = #tpu.core_type<tc>, window_params = [{transform_indices = @transform_0, window_bounds = array<i64: 1, 256, 4>}, {pipeline_mode = #tpu.pipeline_mode<synchronous>, transform_indices = @transform_1, window_bounds = array<i64: 4, 2>}, {pipeline_mode = #tpu.pipeline_mode<synchronous>, transform_indices = @transform_2, window_bounds = array<i64: 1, 2>}, {pipeline_mode = #tpu.pipeline_mode<synchronous>, transform_indices = @transform_3, window_bounds = array<i64: 4, 2, 8>}, {pipeline_mode = #tpu.pipeline_mode<synchronous>, transform_indices = @transform_4, window_bounds = array<i64: 1, 8>}, {transform_indices = @transform_5, window_bounds = array<i64: 1, 256, 8>}]} {
    %cst = arith.constant 0xFF800000 : f32
    %0 = vector.broadcast %cst : f32 to vector<32x2xf32>
    %c0 = arith.constant 0 : index
    %c0_0 = arith.constant 0 : index
    %1 = vector.load %arg7[%c0, %c0_0] : memref<320x2xf32, #tpu.memory_space<vmem>>, vector<32x2xf32>
    tpu.vector_store %arg7[%c0, %c0_0], %0 {strides = array<i32>} : memref<320x2xf32, #tpu.memory_space<vmem>>, vector<32x2xf32>,
    %c288 = arith.constant 288 : index
    %c0_1 = arith.constant 0 : index
    %2 = vector.load %arg7[%c288, %c0_1] : memref<320x2xf32, #tpu.memory_space<vmem>>, vector<32x2xf32>
    tpu.vector_store %arg7[%c288, %c0_1], %0 {strides = array<i32>} : memref<320x2xf32, #tpu.memory_space<vmem>>, vector<32x2xf32>,
    %c0_2 = arith.constant 0 : index
    %c0_3 = arith.constant 0 : index
    %3 = vector.load %arg8[%c0_2, %c0_3] : memref<320x2xf32, #tpu.memory_space<vmem>>, vector<32x2xf32>
    tpu.vector_store %arg8[%c0_2, %c0_3], %0 {strides = array<i32>} : memref<320x2xf32, #tpu.memory_space<vmem>>, vector<32x2xf32>,
    %c288_4 = arith.constant 288 : index
    %c0_5 = arith.constant 0 : index
    %4 = vector.load %arg8[%c288_4, %c0_5] : memref<320x2xf32, #tpu.memory_space<vmem>>, vector<32x2xf32>
    tpu.vector_store %arg8[%c288_4, %c0_5], %0 {strides = array<i32>} : memref<320x2xf32, #tpu.memory_space<vmem>>, vector<32x2xf32>,
    %5 = tpu.iota {dimensions = array<i32: 0>} : vector<256x1xi32>
    %c16_i32 = arith.constant 16 : i32
    %c0_i32 = arith.constant 0 : i32
    %6 = arith.cmpi eq, %c16_i32, %c0_i32 : i32
    %c1_i32 = arith.constant 1 : i32
    %7 = arith.select %6, %c1_i32, %c16_i32 : i32
    %8 = vector.broadcast %7 : i32 to vector<256x1xi32>
    %9 = arith.remsi %5, %8 : vector<256x1xi32>
    %c0_i32_6 = arith.constant 0 : i32
    %10 = vector.broadcast %c0_i32_6 : i32 to vector<256x1xi32>
    %11 = arith.cmpi ne, %9, %10 : vector<256x1xi32>
    %c0_i32_7 = arith.constant 0 : i32
    %12 = vector.broadcast %c0_i32_7 : i32 to vector<256x1xi32>
    %13 = arith.cmpi slt, %9, %12 : vector<256x1xi32>
    %c0_i32_8 = arith.constant 0 : i32
    %14 = arith.cmpi slt, %7, %c0_i32_8 : i32
    %15 = vector.broadcast %14 : i1 to vector<256x1xi1>
    %16 = vector.broadcast %15 : vector<256x1xi1> to vector<256x1xi1>
    %17 = arith.xori %13, %16 : vector<256x1xi1>
    %18 = arith.andi %17, %11 : vector<256x1xi1>
    %19 = vector.broadcast %7 : i32 to vector<256x1xi32>
    %20 = arith.addi %9, %19 : vector<256x1xi32>
    %21 = arith.select %18, %20, %9 : vector<256x1xi1>, vector<256x1xi32>
    %c2_i32 = arith.constant 2 : i32
    %22 = vector.broadcast %c2_i32 : i32 to vector<256x1xi32>
    %23 = arith.cmpi sge, %21, %22 : vector<256x1xi32>
    %c1_i32_9 = arith.constant 1 : i32
    %24 = vector.broadcast %c1_i32_9 : i32 to vector<256x1xi32>
    %25 = arith.cmpi sge, %21, %24 : vector<256x1xi32>
    %c14_i32 = arith.constant 14 : i32
    %26 = vector.broadcast %c14_i32 : i32 to vector<256x1xi32>
    %27 = arith.cmpi sle, %21, %26 : vector<256x1xi32>
    %c13_i32 = arith.constant 13 : i32
    %28 = vector.broadcast %c13_i32 : i32 to vector<256x1xi32>
    %29 = arith.cmpi sle, %21, %28 : vector<256x1xi32>
    %c0_10 = arith.constant 0 : index
    %c0_11 = arith.constant 0 : index
    %c0_12 = arith.constant 0 : index
    %30 = vector.load %arg1[%c0_10, %c0_11, %c0_12] : memref<1x256x4xf32, #tpu.memory_space<vmem>>, vector<1x256x4xf32>
    %31 = vector.shape_cast %30 : vector<1x256x4xf32> to vector<256x4xf32>
    %c0_13 = arith.constant 0 : index
    %c0_14 = arith.constant 0 : index
    %32 = vector.load %arg2[%c0_13, %c0_14] : memref<4x2xf32, #tpu.memory_space<vmem>>, vector<4x2xf32>
    %cst_15 = arith.constant dense<0.000000e+00> : vector<256x2xf32>
    %33 = tpu.matmul %31, %32, %cst_15 {dimension_numbers = #tpu.dot_dimension_numbers<[1], [0], [0], [1], [0, 0, 1, 1], [], []>} : vector<256x4xf32>, vector<4x2xf32>, vector<256x2xf32> -> vector<256x2xf32>
    %c0_16 = arith.constant 0 : index
    %c0_17 = arith.constant 0 : index
    %34 = vector.load %arg3[%c0_16, %c0_17] : memref<1x2xf32, #tpu.memory_space<vmem>>, vector<1x2xf32>
    %35 = vector.broadcast %34 : vector<1x2xf32> to vector<256x2xf32>
    %36 = arith.addf %33, %35 : vector<256x2xf32>
    %37 = arith.negf %36 : vector<256x2xf32>
    %38 = math.exp %37 : vector<256x2xf32>
    %cst_18 = arith.constant 1.000000e+00 : f32
    %39 = vector.broadcast %cst_18 : f32 to vector<256x2xf32>
    %40 = arith.addf %39, %38 : vector<256x2xf32>
    %41 = arith.divf %39, %40 : vector<256x2xf32>
    %42 = arith.mulf %36, %41 : vector<256x2xf32>
    %c0_19 = arith.constant 0 : index
    %c0_20 = arith.constant 0 : index
    %c0_21 = arith.constant 0 : index
    %43 = vector.load %arg4[%c0_19, %c0_20, %c0_21] : memref<4x2x8xf32, #tpu.memory_space<vmem>>, vector<1x2x8xf32>
    %44 = vector.shape_cast %43 : vector<1x2x8xf32> to vector<2x8xf32>
    %cst_22 = arith.constant dense<0.000000e+00> : vector<256x8xf32>
    %45 = tpu.matmul %42, %44, %cst_22 {dimension_numbers = #tpu.dot_dimension_numbers<[1], [0], [0], [1], [0, 0, 1, 1], [], []>} : vector<256x2xf32>, vector<2x8xf32>, vector<256x8xf32> -> vector<256x8xf32>
    %c32 = arith.constant 32 : index
    %c0_23 = arith.constant 0 : index
    %46 = vector.load %arg7[%c32, %c0_23] : memref<320x2xf32, #tpu.memory_space<vmem>>, vector<256x2xf32>
    tpu.vector_store %arg7[%c32, %c0_23], %42 {strides = array<i32>} : memref<320x2xf32, #tpu.memory_space<vmem>>, vector<256x2xf32>,
    %c32_24 = arith.constant 32 : index
    %c0_25 = arith.constant 0 : index
    %47 = vector.load %arg7[%c32_24, %c0_25] : memref<320x2xf32, #tpu.memory_space<vmem>>, vector<256x2xf32>
    %c31 = arith.constant 31 : index
    %c0_26 = arith.constant 0 : index
    %48 = vector.load %arg7[%c31, %c0_26] : memref<320x2xf32, #tpu.memory_space<vmem>>, vector<256x2xf32>
    %cst_27 = arith.constant 0xFF800000 : f32
    %49 = vector.shape_cast %25 : vector<256x1xi1> to vector<256x1xi1>
    %50 = vector.broadcast %49 : vector<256x1xi1> to vector<256x2xi1>
    %51 = vector.broadcast %cst_27 : f32 to vector<256x2xf32>
    %52 = arith.select %50, %48, %51 : vector<256x2xi1>, vector<256x2xf32>
    %53 = arith.maximumf %47, %52 : vector<256x2xf32>
    %c30 = arith.constant 30 : index
    %c0_28 = arith.constant 0 : index
    %54 = vector.load %arg7[%c30, %c0_28] : memref<320x2xf32, #tpu.memory_space<vmem>>, vector<256x2xf32>
    %cst_29 = arith.constant 0xFF800000 : f32
    %55 = vector.shape_cast %23 : vector<256x1xi1> to vector<256x1xi1>
    %56 = vector.broadcast %55 : vector<256x1xi1> to vector<256x2xi1>
    %57 = vector.broadcast %cst_29 : f32 to vector<256x2xf32>
    %58 = arith.select %56, %54, %57 : vector<256x2xi1>, vector<256x2xf32>
    %59 = arith.maximumf %53, %58 : vector<256x2xf32>
    %c33 = arith.constant 33 : index
    %c0_30 = arith.constant 0 : index
    %60 = vector.load %arg7[%c33, %c0_30] : memref<320x2xf32, #tpu.memory_space<vmem>>, vector<256x2xf32>
    %cst_31 = arith.constant 0xFF800000 : f32
    %61 = vector.shape_cast %27 : vector<256x1xi1> to vector<256x1xi1>
    %62 = vector.broadcast %61 : vector<256x1xi1> to vector<256x2xi1>
    %63 = vector.broadcast %cst_31 : f32 to vector<256x2xf32>
    %64 = arith.select %62, %60, %63 : vector<256x2xi1>, vector<256x2xf32>
    %65 = arith.maximumf %59, %64 : vector<256x2xf32>
    %c34 = arith.constant 34 : index
    %c0_32 = arith.constant 0 : index
    %66 = vector.load %arg7[%c34, %c0_32] : memref<320x2xf32, #tpu.memory_space<vmem>>, vector<256x2xf32>
    %cst_33 = arith.constant 0xFF800000 : f32
    %67 = vector.shape_cast %29 : vector<256x1xi1> to vector<256x1xi1>
    %68 = vector.broadcast %67 : vector<256x1xi1> to vector<256x2xi1>
    %69 = vector.broadcast %cst_33 : f32 to vector<256x2xf32>
    %70 = arith.select %68, %66, %69 : vector<256x2xi1>, vector<256x2xf32>
    %71 = arith.maximumf %65, %70 : vector<256x2xf32>
    %c32_34 = arith.constant 32 : index
    %c0_35 = arith.constant 0 : index
    %72 = vector.load %arg8[%c32_34, %c0_35] : memref<320x2xf32, #tpu.memory_space<vmem>>, vector<256x2xf32>
    tpu.vector_store %arg8[%c32_34, %c0_35], %71 {strides = array<i32>} : memref<320x2xf32, #tpu.memory_space<vmem>>, vector<256x2xf32>,
    %c32_36 = arith.constant 32 : index
    %c0_37 = arith.constant 0 : index
    %73 = vector.load %arg8[%c32_36, %c0_37] : memref<320x2xf32, #tpu.memory_space<vmem>>, vector<256x2xf32>
    %c0_38 = arith.constant 0 : index
    %c0_39 = arith.constant 0 : index
    %74 = vector.load %arg8[%c0_38, %c0_39] : memref<320x2xf32, #tpu.memory_space<vmem>>, vector<256x2xf32>
    %75 = arith.maximumf %73, %74 : vector<256x2xf32>
    %c16 = arith.constant 16 : index
    %c0_40 = arith.constant 0 : index
    %76 = vector.load %arg8[%c16, %c0_40] : memref<320x2xf32, #tpu.memory_space<vmem>>, vector<256x2xf32>
    %77 = arith.maximumf %75, %76 : vector<256x2xf32>
    %c48 = arith.constant 48 : index
    %c0_41 = arith.constant 0 : index
    %78 = vector.load %arg8[%c48, %c0_41] : memref<320x2xf32, #tpu.memory_space<vmem>>, vector<256x2xf32>
    %79 = arith.maximumf %77, %78 : vector<256x2xf32>
    %c64 = arith.constant 64 : index
    %c0_42 = arith.constant 0 : index
    %80 = vector.load %arg8[%c64, %c0_42] : memref<320x2xf32, #tpu.memory_space<vmem>>, vector<256x2xf32>
    %81 = arith.maximumf %79, %80 : vector<256x2xf32>
    %c1 = arith.constant 1 : index
    %c0_43 = arith.constant 0 : index
    %c0_44 = arith.constant 0 : index
    %82 = vector.load %arg4[%c1, %c0_43, %c0_44] : memref<4x2x8xf32, #tpu.memory_space<vmem>>, vector<1x2x8xf32>
    %83 = vector.shape_cast %82 : vector<1x2x8xf32> to vector<2x8xf32>
    %cst_45 = arith.constant dense<0.000000e+00> : vector<256x8xf32>
    %84 = tpu.matmul %81, %83, %cst_45 {dimension_numbers = #tpu.dot_dimension_numbers<[1], [0], [0], [1], [0, 0, 1, 1], [], []>} : vector<256x2xf32>, vector<2x8xf32>, vector<256x8xf32> -> vector<256x8xf32>
    %85 = arith.addf %45, %84 : vector<256x8xf32>
    %c32_46 = arith.constant 32 : index
    %c0_47 = arith.constant 0 : index
    %86 = vector.load %arg7[%c32_46, %c0_47] : memref<320x2xf32, #tpu.memory_space<vmem>>, vector<256x2xf32>
    tpu.vector_store %arg7[%c32_46, %c0_47], %81 {strides = array<i32>} : memref<320x2xf32, #tpu.memory_space<vmem>>, vector<256x2xf32>,
    %c32_48 = arith.constant 32 : index
    %c0_49 = arith.constant 0 : index
    %87 = vector.load %arg7[%c32_48, %c0_49] : memref<320x2xf32, #tpu.memory_space<vmem>>, vector<256x2xf32>
    %c31_50 = arith.constant 31 : index
    %c0_51 = arith.constant 0 : index
    %88 = vector.load %arg7[%c31_50, %c0_51] : memref<320x2xf32, #tpu.memory_space<vmem>>, vector<256x2xf32>
    %cst_52 = arith.constant 0xFF800000 : f32
    %89 = vector.shape_cast %25 : vector<256x1xi1> to vector<256x1xi1>
    %90 = vector.broadcast %89 : vector<256x1xi1> to vector<256x2xi1>
    %91 = vector.broadcast %cst_52 : f32 to vector<256x2xf32>
    %92 = arith.select %90, %88, %91 : vector<256x2xi1>, vector<256x2xf32>
    %93 = arith.maximumf %87, %92 : vector<256x2xf32>
    %c30_53 = arith.constant 30 : index
    %c0_54 = arith.constant 0 : index
    %94 = vector.load %arg7[%c30_53, %c0_54] : memref<320x2xf32, #tpu.memory_space<vmem>>, vector<256x2xf32>
    %cst_55 = arith.constant 0xFF800000 : f32
    %95 = vector.shape_cast %23 : vector<256x1xi1> to vector<256x1xi1>
    %96 = vector.broadcast %95 : vector<256x1xi1> to vector<256x2xi1>
    %97 = vector.broadcast %cst_55 : f32 to vector<256x2xf32>
    %98 = arith.select %96, %94, %97 : vector<256x2xi1>, vector<256x2xf32>
    %99 = arith.maximumf %93, %98 : vector<256x2xf32>
    %c33_56 = arith.constant 33 : index
    %c0_57 = arith.constant 0 : index
    %100 = vector.load %arg7[%c33_56, %c0_57] : memref<320x2xf32, #tpu.memory_space<vmem>>, vector<256x2xf32>
    %cst_58 = arith.constant 0xFF800000 : f32
    %101 = vector.shape_cast %27 : vector<256x1xi1> to vector<256x1xi1>
    %102 = vector.broadcast %101 : vector<256x1xi1> to vector<256x2xi1>
    %103 = vector.broadcast %cst_58 : f32 to vector<256x2xf32>
    %104 = arith.select %102, %100, %103 : vector<256x2xi1>, vector<256x2xf32>
    %105 = arith.maximumf %99, %104 : vector<256x2xf32>
    %c34_59 = arith.constant 34 : index
    %c0_60 = arith.constant 0 : index
    %106 = vector.load %arg7[%c34_59, %c0_60] : memref<320x2xf32, #tpu.memory_space<vmem>>, vector<256x2xf32>
    %cst_61 = arith.constant 0xFF800000 : f32
    %107 = vector.shape_cast %29 : vector<256x1xi1> to vector<256x1xi1>
    %108 = vector.broadcast %107 : vector<256x1xi1> to vector<256x2xi1>
    %109 = vector.broadcast %cst_61 : f32 to vector<256x2xf32>
    %110 = arith.select %108, %106, %109 : vector<256x2xi1>, vector<256x2xf32>
    %111 = arith.maximumf %105, %110 : vector<256x2xf32>
    %c32_62 = arith.constant 32 : index
    %c0_63 = arith.constant 0 : index
    %112 = vector.load %arg8[%c32_62, %c0_63] : memref<320x2xf32, #tpu.memory_space<vmem>>, vector<256x2xf32>
    tpu.vector_store %arg8[%c32_62, %c0_63], %111 {strides = array<i32>} : memref<320x2xf32, #tpu.memory_space<vmem>>, vector<256x2xf32>,
    %c32_64 = arith.constant 32 : index
    %c0_65 = arith.constant 0 : index
    %113 = vector.load %arg8[%c32_64, %c0_65] : memref<320x2xf32, #tpu.memory_space<vmem>>, vector<256x2xf32>
    %c0_66 = arith.constant 0 : index
    %c0_67 = arith.constant 0 : index
    %114 = vector.load %arg8[%c0_66, %c0_67] : memref<320x2xf32, #tpu.memory_space<vmem>>, vector<256x2xf32>
    %115 = arith.maximumf %113, %114 : vector<256x2xf32>
    %c16_68 = arith.constant 16 : index
    %c0_69 = arith.constant 0 : index
    %116 = vector.load %arg8[%c16_68, %c0_69] : memref<320x2xf32, #tpu.memory_space<vmem>>, vector<256x2xf32>
    %117 = arith.maximumf %115, %116 : vector<256x2xf32>
    %c48_70 = arith.constant 48 : index
    %c0_71 = arith.constant 0 : index
    %118 = vector.load %arg8[%c48_70, %c0_71] : memref<320x2xf32, #tpu.memory_space<vmem>>, vector<256x2xf32>
    %119 = arith.maximumf %117, %118 : vector<256x2xf32>
    %c64_72 = arith.constant 64 : index
    %c0_73 = arith.constant 0 : index
    %120 = vector.load %arg8[%c64_72, %c0_73] : memref<320x2xf32, #tpu.memory_space<vmem>>, vector<256x2xf32>
    %121 = arith.maximumf %119, %120 : vector<256x2xf32>
    %c2 = arith.constant 2 : index
    %c0_74 = arith.constant 0 : index
    %c0_75 = arith.constant 0 : index
    %122 = vector.load %arg4[%c2, %c0_74, %c0_75] : memref<4x2x8xf32, #tpu.memory_space<vmem>>, vector<1x2x8xf32>
    %123 = vector.shape_cast %122 : vector<1x2x8xf32> to vector<2x8xf32>
    %cst_76 = arith.constant dense<0.000000e+00> : vector<256x8xf32>
    %124 = tpu.matmul %121, %123, %cst_76 {dimension_numbers = #tpu.dot_dimension_numbers<[1], [0], [0], [1], [0, 0, 1, 1], [], []>} : vector<256x2xf32>, vector<2x8xf32>, vector<256x8xf32> -> vector<256x8xf32>
    %125 = arith.addf %85, %124 : vector<256x8xf32>
    %c32_77 = arith.constant 32 : index
    %c0_78 = arith.constant 0 : index
    %126 = vector.load %arg7[%c32_77, %c0_78] : memref<320x2xf32, #tpu.memory_space<vmem>>, vector<256x2xf32>
    tpu.vector_store %arg7[%c32_77, %c0_78], %121 {strides = array<i32>} : memref<320x2xf32, #tpu.memory_space<vmem>>, vector<256x2xf32>,
    %c32_79 = arith.constant 32 : index
    %c0_80 = arith.constant 0 : index
    %127 = vector.load %arg7[%c32_79, %c0_80] : memref<320x2xf32, #tpu.memory_space<vmem>>, vector<256x2xf32>
    %c31_81 = arith.constant 31 : index
    %c0_82 = arith.constant 0 : index
    %128 = vector.load %arg7[%c31_81, %c0_82] : memref<320x2xf32, #tpu.memory_space<vmem>>, vector<256x2xf32>
    %cst_83 = arith.constant 0xFF800000 : f32
    %129 = vector.shape_cast %25 : vector<256x1xi1> to vector<256x1xi1>
    %130 = vector.broadcast %129 : vector<256x1xi1> to vector<256x2xi1>
    %131 = vector.broadcast %cst_83 : f32 to vector<256x2xf32>
    %132 = arith.select %130, %128, %131 : vector<256x2xi1>, vector<256x2xf32>
    %133 = arith.maximumf %127, %132 : vector<256x2xf32>
    %c30_84 = arith.constant 30 : index
    %c0_85 = arith.constant 0 : index
    %134 = vector.load %arg7[%c30_84, %c0_85] : memref<320x2xf32, #tpu.memory_space<vmem>>, vector<256x2xf32>
    %cst_86 = arith.constant 0xFF800000 : f32
    %135 = vector.shape_cast %23 : vector<256x1xi1> to vector<256x1xi1>
    %136 = vector.broadcast %135 : vector<256x1xi1> to vector<256x2xi1>
    %137 = vector.broadcast %cst_86 : f32 to vector<256x2xf32>
    %138 = arith.select %136, %134, %137 : vector<256x2xi1>, vector<256x2xf32>
    %139 = arith.maximumf %133, %138 : vector<256x2xf32>
    %c33_87 = arith.constant 33 : index
    %c0_88 = arith.constant 0 : index
    %140 = vector.load %arg7[%c33_87, %c0_88] : memref<320x2xf32, #tpu.memory_space<vmem>>, vector<256x2xf32>
    %cst_89 = arith.constant 0xFF800000 : f32
    %141 = vector.shape_cast %27 : vector<256x1xi1> to vector<256x1xi1>
    %142 = vector.broadcast %141 : vector<256x1xi1> to vector<256x2xi1>
    %143 = vector.broadcast %cst_89 : f32 to vector<256x2xf32>
    %144 = arith.select %142, %140, %143 : vector<256x2xi1>, vector<256x2xf32>
    %145 = arith.maximumf %139, %144 : vector<256x2xf32>
    %c34_90 = arith.constant 34 : index
    %c0_91 = arith.constant 0 : index
    %146 = vector.load %arg7[%c34_90, %c0_91] : memref<320x2xf32, #tpu.memory_space<vmem>>, vector<256x2xf32>
    %cst_92 = arith.constant 0xFF800000 : f32
    %147 = vector.shape_cast %29 : vector<256x1xi1> to vector<256x1xi1>
    %148 = vector.broadcast %147 : vector<256x1xi1> to vector<256x2xi1>
    %149 = vector.broadcast %cst_92 : f32 to vector<256x2xf32>
    %150 = arith.select %148, %146, %149 : vector<256x2xi1>, vector<256x2xf32>
    %151 = arith.maximumf %145, %150 : vector<256x2xf32>
    %c32_93 = arith.constant 32 : index
    %c0_94 = arith.constant 0 : index
    %152 = vector.load %arg8[%c32_93, %c0_94] : memref<320x2xf32, #tpu.memory_space<vmem>>, vector<256x2xf32>
    tpu.vector_store %arg8[%c32_93, %c0_94], %151 {strides = array<i32>} : memref<320x2xf32, #tpu.memory_space<vmem>>, vector<256x2xf32>,
    %c32_95 = arith.constant 32 : index
    %c0_96 = arith.constant 0 : index
    %153 = vector.load %arg8[%c32_95, %c0_96] : memref<320x2xf32, #tpu.memory_space<vmem>>, vector<256x2xf32>
    %c0_97 = arith.constant 0 : index
    %c0_98 = arith.constant 0 : index
    %154 = vector.load %arg8[%c0_97, %c0_98] : memref<320x2xf32, #tpu.memory_space<vmem>>, vector<256x2xf32>
    %155 = arith.maximumf %153, %154 : vector<256x2xf32>
    %c16_99 = arith.constant 16 : index
    %c0_100 = arith.constant 0 : index
    %156 = vector.load %arg8[%c16_99, %c0_100] : memref<320x2xf32, #tpu.memory_space<vmem>>, vector<256x2xf32>
    %157 = arith.maximumf %155, %156 : vector<256x2xf32>
    %c48_101 = arith.constant 48 : index
    %c0_102 = arith.constant 0 : index
    %158 = vector.load %arg8[%c48_101, %c0_102] : memref<320x2xf32, #tpu.memory_space<vmem>>, vector<256x2xf32>
    %159 = arith.maximumf %157, %158 : vector<256x2xf32>
    %c64_103 = arith.constant 64 : index
    %c0_104 = arith.constant 0 : index
    %160 = vector.load %arg8[%c64_103, %c0_104] : memref<320x2xf32, #tpu.memory_space<vmem>>, vector<256x2xf32>
    %161 = arith.maximumf %159, %160 : vector<256x2xf32>
    %c3 = arith.constant 3 : index
    %c0_105 = arith.constant 0 : index
    %c0_106 = arith.constant 0 : index
    %162 = vector.load %arg4[%c3, %c0_105, %c0_106] : memref<4x2x8xf32, #tpu.memory_space<vmem>>, vector<1x2x8xf32>
    %163 = vector.shape_cast %162 : vector<1x2x8xf32> to vector<2x8xf32>
    %cst_107 = arith.constant dense<0.000000e+00> : vector<256x8xf32>
    %164 = tpu.matmul %161, %163, %cst_107 {dimension_numbers = #tpu.dot_dimension_numbers<[1], [0], [0], [1], [0, 0, 1, 1], [], []>} : vector<256x2xf32>, vector<2x8xf32>, vector<256x8xf32> -> vector<256x8xf32>
    %165 = arith.addf %125, %164 : vector<256x8xf32>
    %c0_108 = arith.constant 0 : index
    %c0_109 = arith.constant 0 : index
    %166 = vector.load %arg5[%c0_108, %c0_109] : memref<1x8xf32, #tpu.memory_space<vmem>>, vector<1x8xf32>
    %167 = vector.broadcast %166 : vector<1x8xf32> to vector<256x8xf32>
    %168 = arith.addf %165, %167 : vector<256x8xf32>
    %169 = arith.negf %168 : vector<256x8xf32>
    %170 = math.exp %169 : vector<256x8xf32>
    %cst_110 = arith.constant 1.000000e+00 : f32
    %171 = vector.broadcast %cst_110 : f32 to vector<256x8xf32>
    %172 = arith.addf %171, %170 : vector<256x8xf32>
    %173 = arith.divf %171, %172 : vector<256x8xf32>
    %174 = arith.mulf %168, %173 : vector<256x8xf32>
    %c0_111 = arith.constant 0 : index
    %c0_112 = arith.constant 0 : index
    %c0_113 = arith.constant 0 : index
    %175 = vector.load %arg6[%c0_111, %c0_112, %c0_113] : memref<1x256x8xf32, #tpu.memory_space<vmem>>, vector<1x256x8xf32>
    %176 = vector.shape_cast %175 : vector<1x256x8xf32> to vector<256x8xf32>
    %177 = vector.shape_cast %174 : vector<256x8xf32> to vector<1x256x8xf32>
    tpu.vector_store %arg6[%c0_111, %c0_112, %c0_113], %177 {strides = array<i32>} : memref<1x256x8xf32, #tpu.memory_space<vmem>>, vector<1x256x8xf32>,
    return
  }
  func.func @transform_0(%arg0: i32) -> (i32, i32, i32) {
    %c0_i32 = arith.constant 0 : i32
    %c0_i32_0 = arith.constant 0 : i32
    %c0_i32_1 = arith.constant 0 : i32
    return %arg0, %c0_i32, %c0_i32_0 : i32, i32, i32
  }
  func.func @transform_1(%arg0: i32) -> (i32, i32) {
    %c0_i32 = arith.constant 0 : i32
    %c0_i32_0 = arith.constant 0 : i32
    %c0_i32_1 = arith.constant 0 : i32
    return %c0_i32, %c0_i32_0 : i32, i32
  }
  func.func @transform_2(%arg0: i32) -> (i32, i32) {
    %c0_i32 = arith.constant 0 : i32
    %c0_i32_0 = arith.constant 0 : i32
    %c0_i32_1 = arith.constant 0 : i32
    return %c0_i32, %c0_i32_0 : i32, i32
  }
  func.func @transform_3(%arg0: i32) -> (i32, i32, i32) {
    %c0_i32 = arith.constant 0 : i32
    %c0_i32_0 = arith.constant 0 : i32
    %c0_i32_1 = arith.constant 0 : i32
    %c0_i32_2 = arith.constant 0 : i32
    return %c0_i32, %c0_i32_0, %c0_i32_1 : i32, i32, i32
  }
  func.func @transform_4(%arg0: i32) -> (i32, i32) {
    %c0_i32 = arith.constant 0 : i32
    %c0_i32_0 = arith.constant 0 : i32
    %c0_i32_1 = arith.constant 0 : i32
    return %c0_i32, %c0_i32_0 : i32, i32
  }
  func.func @transform_5(%arg0: i32) -> (i32, i32, i32) {
    %c0_i32 = arith.constant 0 : i32
    %c0_i32_0 = arith.constant 0 : i32
    %c0_i32_1 = arith.constant 0 : i32
    return %arg0, %c0_i32, %c0_i32_0 : i32, i32, i32
  }
}

</mosaic_0001>

<bundles_post_ra>
// kernel: sppf_forward_nhwc.1
= control target key start
LH: loop header
LB: loop body
LE: loop exit
PB: predicated region body
PF: predicated region fallthrough
CT: control target
= control target key end

     0   :  { %s6272_s18 = smov 0   ;;  %s9478_s0 = inlined_call_operand.vmem [shape: f32[2,256,4], index: 0, kind: input, shape index: {}]   ;;  %s9479_s1 = inlined_call_operand.vmem [shape: f32[4,2], index: 1, kind: input, shape index: {}]   ;;  %s9480_s2 = inlined_call_operand.vmem [shape: f32[1,2], index: 2, kind: input, shape index: {}]   ;;  %s9481_s3 = inlined_call_operand.vmem [shape: f32[4,2,8], index: 3, kind: input, shape index: {}]   ;;  %s9482_s4 = inlined_call_operand.vmem [shape: f32[1,8], index: 4, kind: input, shape index: {}]   ;;  %s9483_s5 = inlined_call_operand.vmem [shape: f32[2,256,8], index: 5, kind: output, shape index: {}]  }
   0x1 LB: > { %s5296_s19 = sadd.s32 4294967295, %s6239_s18   ;;  %p5300_p0 = scmp.ge.s32.totalorder %s6239_s18, 1  ;;  %s6239_s18 = sphi %s6272_s18, %s15_s18  }
   0x2   : > { %p187_p1 = scmp.lt.s32.totalorder %s6239_s18, 3 }
   0x4   : > { %p188_p2 = pnand %p5300_p0, %p187_p1 }
   0x6   : > { %191 = sbr.rel (%p188_p2) target bundleno = 902 (0x386), region = 40 }
   0xb   : > { %v819_v0 = vld [vmem:[%s9479_s1] sm:$0xf]  ;;  %vm924_vm0 = vcmask 1043456   ;;  %p215_p3 = scmp.lt.s32.totalorder %s5296_s19, 1  ;;  %vm827_vm1 = vcmask 31744   ;;  %vm9526_vm2 = vcmask 15360   ;;  %v242_v35 = vlaneseq }
   0xc   : > { %5708 = vmatprep.subr.msk.mxu0 %vm924_vm0, %v819_v0  ;;  %5958 = vmatprep.subr.msk.mxu1 %vm924_vm0, %v819_v0  ;;  %v6241_v33 = vmov -inf   ;;  %v1377_v34 = vld [vmem:[%s9481_s3] sm:$0x3]  ;;  %vm9511_vm3 = vcmask 1041408   ;;  %v5371_v36 = vld [vmem:[%s9481_s3 + $0x2] sm:$0x3] }
   0xd   : > { %5709 = vmatpush3.msk.msra.mxu0 %vm924_vm0, %v819_v0  ;;  %5959 = vmatpush3.msk.msra.mxu1 %vm924_vm0, %v819_v0  ;;  %s10678_s19 = smov (!%p215_p3, %s5296_s19), 1  ;;  %229 = vst.msk [vmem:[#allocation2 + $0x18] sm:$0xff] %vm9526_vm2, %v6241_v33  ;;  %230 = vst.msk [vmem:[#allocation2 + $0x120] sm:$0xff] %vm9526_vm2, %v6241_v33  ;;  %v6378_v37 = vld [vmem:[%s9480_s2] ss:$0 sm:$0xff]  ;;  %v6380_v38 = vshrl.u32 %v242_v35, 7 }
   0xe   : > { %s5541_s22 = sshll.u32 %s10678_s19, 8  ;;  %234 = vst.msk [vmem:[#allocation3] sm:$0xff] %vm9526_vm2, %v6241_v33  ;;  %235 = vst.msk [vmem:[#allocation3 + $0x8] sm:$0xff] %vm9526_vm2, %v6241_v33  ;;  %5808 = vmatprep.subr.msk.mxu0 %vm9511_vm3, %v1377_v34  ;;  %5758 = vmatprep.subr.msk.mxu1 %vm9511_vm3, %v5371_v36 }
   0xf   : > { %s6291_s25 = scalar_lea.vmem %s9478_s0, %s5541_s22  ;;  %236 = vst.msk [vmem:[#allocation3 + $0x10] sm:$0xff] %vm9526_vm2, %v6241_v33  ;;  %237 = vst.msk [vmem:[#allocation3 + $0x18] sm:$0xff] %vm9526_vm2, %v6241_v33  ;;  %v6385_v41 = vadd.s32 8, %v6380_v38  ;;  %v6388_v42 = vadd.s32 16, %v6380_v38  ;;  %v6391_v43 = vadd.s32 136, %v6380_v38  ;;  %v6394_v44 = vadd.s32 144, %v6380_v38  ;;  %s9278_s21 = scalar_lea.vmem %s9483_s5, %s5541_s22 }
  0x10   : > { %v787_v1 = vld [vmem:[%s6291_s25] sm:$0xff]  ;;  %v788_v3 = vld [vmem:[%s6291_s25 + $0x8] sm:$0xff]  ;;  %v789_v5 = vld [vmem:[%s6291_s25 + $0x10] sm:$0xff]  ;;  %238 = vst.msk [vmem:[#allocation3 + $0x120] sm:$0xff] %vm9526_vm2, %v6241_v33  ;;  %v6486_v35 = vadd.s32 48, %v6380_v38 }
  0x11   : > { %v803_v2 = vld [vmem:[%s6291_s25 + $0x80] sm:$0xff]  ;;  %5710 = vmatprep.mubr.msk.f32.mxu0 %vm827_vm1, %v787_v1  ;;  %v804_v4 = vld [vmem:[%s6291_s25 + $0x88] sm:$0xff]  ;;  %v805_v6 = vld [vmem:[%s6291_s25 + $0x90] sm:$0xff]  ;;  %239 = vst.msk [vmem:[#allocation3 + $0x128] sm:$0xff] %vm9526_vm2, %v6241_v33 }
  0x12   : > { %5734 = vmatprep.mubr.msk.f32.mxu1 %vm827_vm1, %v803_v2  ;;  %5711 = vmatmul.mubr.msk.f32.vlgmr.msra.gmra.mxu0 %vm827_vm1, %v788_v3  ;;  %v790_v7 = vld [vmem:[%s6291_s25 + $0x18] sm:$0xff]  ;;  %v791_v9 = vld [vmem:[%s6291_s25 + $0x20] sm:$0xff]  ;;  %v792_v11 = vld [vmem:[%s6291_s25 + $0x28] sm:$0xff]  ;;  %240 = vst.msk [vmem:[#allocation3 + $0x130] sm:$0xff] %vm9526_vm2, %v6241_v33  ;;  %v6424_v2 = vadd.s32 24, %v6380_v38  ;;  %v6427_v3 = vadd.s32 32, %v6380_v38 }
  0x13   : > { %5735 = vmatmul.mubr.msk.f32.vlgmr.msra.gmra.mxu1 %vm827_vm1, %v804_v4  ;;  %5713 = vmatprep.mubr.msk.f32.mxu0 %vm827_vm1, %v789_v5  ;;  %v806_v8 = vld [vmem:[%s6291_s25 + $0x98] sm:$0xff]  ;;  %v807_v10 = vld [vmem:[%s6291_s25 + $0xa0] sm:$0xff]  ;;  %v808_v12 = vld [vmem:[%s6291_s25 + $0xa8] sm:$0xff]  ;;  %241 = vst.msk [vmem:[#allocation3 + $0x138] sm:$0xff] %vm9526_vm2, %v6241_v33 }
  0x14   : > { %5737 = vmatprep.mubr.msk.f32.mxu1 %vm827_vm1, %v805_v6  ;;  %v793_v13 = vld [vmem:[%s6291_s25 + $0x30] sm:$0xff]  ;;  %v794_v15 = vld [vmem:[%s6291_s25 + $0x38] sm:$0xff]  ;;  %v795_v17 = vld [vmem:[%s6291_s25 + $0x40] sm:$0xff]  ;;  %5809 = vmatpush3.msk.msra.mxu0 %vm9511_vm3, %v1377_v34  ;;  %v6483_v34 = vadd.s32 40, %v6380_v38 }
  0x15   : > { %v809_v14 = vld [vmem:[%s6291_s25 + $0xb0] sm:$0xff]  ;;  %v810_v16 = vld [vmem:[%s6291_s25 + $0xb8] sm:$0xff]  ;;  %v811_v18 = vld [vmem:[%s6291_s25 + $0xc0] sm:$0xff]  ;;  %5759 = vmatpush3.msk.msra.mxu1 %vm9511_vm3, %v5371_v36 }
  0x16   : > { %5714 = vmatmul.mubr.msk.f32.gmra.mxu0 %vm827_vm1, %v790_v7  ;;  %v796_v19 = vld [vmem:[%s6291_s25 + $0x48] sm:$0xff]  ;;  %v797_v21 = vld [vmem:[%s6291_s25 + $0x50] sm:$0xff]  ;;  %v798_v23 = vld [vmem:[%s6291_s25 + $0x58] sm:$0xff] }
  0x17   : > { %5738 = vmatmul.mubr.msk.f32.gmra.mxu1 %vm827_vm1, %v806_v8  ;;  %5716 = vmatprep.mubr.msk.f32.mxu0 %vm827_vm1, %v791_v9  ;;  %v812_v20 = vld [vmem:[%s6291_s25 + $0xc8] sm:$0xff]  ;;  %v813_v22 = vld [vmem:[%s6291_s25 + $0xd0] sm:$0xff]  ;;  %v814_v24 = vld [vmem:[%s6291_s25 + $0xd8] sm:$0xff] }
  0x18   : > { %5740 = vmatprep.mubr.msk.f32.mxu1 %vm827_vm1, %v807_v10  ;;  %v799_v25 = vld [vmem:[%s6291_s25 + $0x60] sm:$0xff]  ;;  %v800_v27 = vld [vmem:[%s6291_s25 + $0x68] sm:$0xff]  ;;  %v801_v29 = vld [vmem:[%s6291_s25 + $0x70] sm:$0xff] }
  0x19   : > { %v815_v26 = vld [vmem:[%s6291_s25 + $0xe0] sm:$0xff]  ;;  %v816_v28 = vld [vmem:[%s6291_s25 + $0xe8] sm:$0xff]  ;;  %v817_v30 = vld [vmem:[%s6291_s25 + $0xf0] sm:$0xff] }
  0x1a   : > { %5717 = vmatmul.mubr.msk.f32.gmra.mxu0 %vm827_vm1, %v792_v11  ;;  %v802_v31 = vld [vmem:[%s6291_s25 + $0x78] sm:$0xff]  ;;  %v5438_v7 = vld [vmem:[%s9481_s3 + $0x4] sm:$0x3]  ;;  %v6442_v8 = vld [vmem:[%s9481_s3 + $0x6] sm:$0x3] }
  0x1b   : > { %5741 = vmatmul.mubr.msk.f32.gmra.mxu1 %vm827_vm1, %v808_v12  ;;  %5719 = vmatprep.mubr.msk.f32.mxu0 %vm827_vm1, %v793_v13  ;;  %v818_v32 = vld [vmem:[%s6291_s25 + $0xf8] sm:$0xff]  ;;  %v6446_v12 = vadd.s32 152, %v6380_v38  ;;  %v6449_v13 = vadd.s32 160, %v6380_v38 }
  0x1c   : > { %5743 = vmatprep.mubr.msk.f32.mxu1 %vm827_vm1, %v809_v14  ;;  %5858 = vmatprep.subr.msk.mxu1 %vm9511_vm3, %v5438_v7 }
  0x1d   : > { %5908 = vmatprep.subr.msk.mxu0 %vm9511_vm3, %v6442_v8 }
  0x1e   : > { %5720 = vmatmul.mubr.msk.f32.gmra.mxu0 %vm827_vm1, %v794_v15 }
  0x1f   : > { %5744 = vmatmul.mubr.msk.f32.gmra.mxu1 %vm827_vm1, %v810_v16  ;;  %5722 = vmatprep.mubr.msk.f32.mxu0 %vm827_vm1, %v795_v17 }
  0x20   : > { %5746 = vmatprep.mubr.msk.f32.mxu1 %vm827_vm1, %v811_v18 }
  0x22   : > { %5723 = vmatmul.mubr.msk.f32.gmra.mxu0 %vm827_vm1, %v796_v19 }
  0x23   : > { %5747 = vmatmul.mubr.msk.f32.gmra.mxu1 %vm827_vm1, %v812_v20  ;;  %5725 = vmatprep.mubr.msk.f32.mxu0 %vm827_vm1, %v797_v21 }
  0x24   : > { %5749 = vmatprep.mubr.msk.f32.mxu1 %vm827_vm1, %v813_v22 }
  0x26   : > { %5726 = vmatmul.mubr.msk.f32.gmra.mxu0 %vm827_vm1, %v798_v23 }
  0x27   : > { %5750 = vmatmul.mubr.msk.f32.gmra.mxu1 %vm827_vm1, %v814_v24  ;;  %5728 = vmatprep.mubr.msk.f32.mxu0 %vm827_vm1, %v799_v25 }
  0x28   : > { %5752 = vmatprep.mubr.msk.f32.mxu1 %vm827_vm1, %v815_v26 }
  0x2a   : > { %5729 = vmatmul.mubr.msk.f32.gmra.mxu0 %vm827_vm1, %v800_v27 }
  0x2b   : > { %5753 = vmatmul.mubr.msk.f32.gmra.mxu1 %vm827_vm1, %v816_v28  ;;  %5731 = vmatprep.mubr.msk.f32.mxu0 %vm827_vm1, %v801_v29 }
  0x2c   : > { %5755 = vmatprep.mubr.msk.f32.mxu1 %vm827_vm1, %v817_v30 }
  0x2e   : > { %5732 = vmatmul.mubr.msk.f32.gmra.mxu0 %vm827_vm1, %v802_v31 }
  0x2f   : > { %5756 = vmatmul.mubr.msk.f32.gmra.mxu1 %vm827_vm1, %v818_v32 }
  0xd2   : > { %v5712_v39 = vpop.f32.mrf.mxu0 }
  0xd3   : > { %v5736_v40 = vpop.f32.mrf.mxu1  ;;  %v6397_v45 = vadd.f32 %v5712_v39, %v6378_v37 }
  0xd4   : > { %v6400_v46 = vadd.f32 %v5736_v40, %v6378_v37  ;;  %v994_v48 = vpop.f32.mrf.mxu0 }
  0xd5   : > { %v1074_v49 = vpop.f32.mrf.mxu1  ;;  %v5340_v50 = vmul.f32 -1.442695, %v6397_v45  ;;  %v6406_v52 = vadd.f32 %v6378_v37, %v994_v48 }
  0xd6   : > { %v5356_v51 = vmul.f32 -1.442695, %v6400_v46  ;;  %v6409_v53 = vadd.f32 %v6378_v37, %v1074_v49  ;;  %v5715_v54 = vpop.f32.mrf.mxu0 }
  0xd7   : > { %v5739_v55 = vpop.f32.mrf.mxu1  ;;  %5969 = vpow2.f32 %v5340_v50  ;;  %v5339_v60 = vmul.f32 -1.442695, %v6406_v52  ;;  %v6418_v62 = vadd.f32 %v5715_v54, %v6378_v37  ;;  %v6500_v54 = vadd.s32 176, %v6380_v38 }
  0xd8   : > { %v5355_v61 = vmul.f32 -1.442695, %v6409_v53  ;;  %5971 = vpow2.f32 %v5356_v51  ;;  %v6421_v63 = vadd.f32 %v5739_v55, %v6378_v37  ;;  %v1004_v0 = vpop.f32.mrf.mxu0  ;;  %v6497_v51 = vadd.s32 168, %v6380_v38 }
  0xd9   : > { %v1084_v1 = vpop.f32.mrf.mxu1  ;;  %5973 = vpow2.f32 %v5339_v60  ;;  %v5342_v4 = vmul.f32 -1.442695, %v6418_v62  ;;  %v6431_v5 = vadd.f32 %v6378_v37, %v1004_v0 }
  0xda   : > { %v6434_v6 = vadd.f32 %v6378_v37, %v1084_v1  ;;  %5975 = vpow2.f32 %v5355_v61  ;;  %v5358_v9 = vmul.f32 -1.442695, %v6421_v63  ;;  %v5718_v10 = vpop.f32.mrf.mxu0  ;;  %v6509_v1 = vadd.s32 56, %v6380_v38 }
  0xdb   : > { %v5742_v11 = vpop.f32.mrf.mxu1  ;;  %5977 = vpow2.f32 %v5342_v4  ;;  %v5341_v14 = vmul.f32 -1.442695, %v6431_v5  ;;  %v6457_v16 = vadd.f32 %v5718_v10, %v6378_v37  ;;  %v6514_v10 = vadd.s32 64, %v6380_v38 }
  0xdc   : > { %v5357_v15 = vmul.f32 -1.442695, %v6434_v6  ;;  %5979 = vpow2.f32 %v5358_v9  ;;  %v6460_v17 = vadd.f32 %v5742_v11, %v6378_v37  ;;  %v1014_v20 = vpop.f32.mrf.mxu0 }
  0xdd   : > { %v1094_v21 = vpop.f32.mrf.mxu1  ;;  %5981 = vpow2.f32 %v5341_v14  ;;  %v5344_v22 = vmul.f32 -1.442695, %v6457_v16  ;;  %v6466_v23 = vadd.f32 %v6378_v37, %v1014_v20  ;;  %v6519_v20 = vadd.s32 184, %v6380_v38 }
  0xde   : > { %v6469_v24 = vadd.f32 %v6378_v37, %v1094_v21  ;;  %5983 = vpow2.f32 %v5357_v15  ;;  %v5360_v25 = vmul.f32 -1.442695, %v6460_v17  ;;  %v5721_v28 = vpop.f32.mrf.mxu0  ;;  %v6522_v21 = vadd.s32 192, %v6380_v38 }
  0xdf   : > { %v5745_v29 = vpop.f32.mrf.mxu1  ;;  %5985 = vpow2.f32 %v5344_v22  ;;  %v5343_v30 = vmul.f32 -1.442695, %v6466_v23  ;;  %v6477_v32 = vadd.f32 %v5721_v28, %v6378_v37 }
  0xe0   : > { %v5359_v31 = vmul.f32 -1.442695, %v6469_v24  ;;  %5987 = vpow2.f32 %v5360_v25  ;;  %v6480_v33 = vadd.f32 %v5745_v29, %v6378_v37  ;;  %v1024_v36 = vpop.f32.mrf.mxu0  ;;  %v6536_v29 = vadd.s32 80, %v6380_v38 }
  0xe1   : > { %v1104_v39 = vpop.f32.mrf.mxu1  ;;  %5989 = vpow2.f32 %v5343_v30  ;;  %v5346_v40 = vmul.f32 -1.442695, %v6477_v32  ;;  %v6490_v48 = vadd.f32 %v6378_v37, %v1024_v36 }
  0xe2   : > { %v6493_v49 = vadd.f32 %v6378_v37, %v1104_v39  ;;  %5991 = vpow2.f32 %v5359_v31  ;;  %v5362_v50 = vmul.f32 -1.442695, %v6480_v33  ;;  %v6502_v55 = vpop.f32.mrf.mxu0  ;;  %9793 = vst [vmem:[#allocation5_spill] sm:$0xff] %v6536_v29 }
  0xe3   : > { %v6504_v60 = vpop.f32.mrf.mxu1  ;;  %5993 = vpow2.f32 %v5346_v40  ;;  %v5345_v61 = vmul.f32 -1.442695, %v6490_v48 }
  0xe4   : > { %v5361_v0 = vmul.f32 -1.442695, %v6493_v49  ;;  %v5970_v4 = vpop.eup %5969  ;;  %5995 = vpow2.f32 %v5362_v50  ;;  %v6516_v11 = vpop.f32.mrf.mxu0  ;;  %v6532_v50 = vadd.s32 72, %v6380_v38 }
  0xe5   : > { %v5972_v14 = vpop.eup %5971  ;;  %v1250_v15 = vadd.f32 1.0, %v5970_v4  ;;  %5997 = vpow2.f32 %v5345_v61  ;;  %v6524_v22 = vpop.f32.mrf.mxu1 }
  0xe6   : > { %v5974_v25 = vpop.eup %5973  ;;  %v1266_v28 = vadd.f32 1.0, %v5972_v14  ;;  %5999 = vpow2.f32 %v5361_v0  ;;  %v6529_v40 = vpop.f32.mrf.mxu0  ;;  %9792 = vst [vmem:[#allocation4_spill] sm:$0xff] %v6532_v50 }
  0xe7   : > { %v5976_v31 = vpop.eup %5975  ;;  %6001 = vrcp.f32 %v1250_v15  ;;  %v1249_v36 = vadd.f32 1.0, %v5974_v25  ;;  %v6540_v39 = vpop.f32.mrf.mxu1  ;;  %v6550_v15 = vadd.s32 88, %v6380_v38 }
  0xe8   : > { %v5978_v61 = vpop.eup %5977  ;;  %6003 = vrcp.f32 %v1266_v28  ;;  %v1265_v4 = vadd.f32 1.0, %v5976_v31  ;;  %v6543_v28 = vadd.s32 200, %v6380_v38  ;;  %v6546_v31 = vadd.s32 208, %v6380_v38 }
  0xe9   : > { %v5980_v30 = vpop.eup %5979  ;;  %6005 = vrcp.f32 %v1249_v36  ;;  %v1252_v0 = vadd.f32 1.0, %v5978_v61  ;;  %v1044_v61 = vpop.f32.mrf.mxu0  ;;  %9796 = vst [vmem:[#allocation8_spill] sm:$0xff] %v6550_v15  ;;  %v9802_v15 = vand.u32 15, %v6380_v38 }
  0xea   : > { %v5982_v7 = vpop.eup %5981  ;;  %6007 = vrcp.f32 %v1265_v4  ;;  %v1268_v9 = vadd.f32 1.0, %v5980_v30  ;;  %9794 = vst [vmem:[#allocation6_spill] sm:$0xff] %v6543_v28  ;;  %9795 = vst [vmem:[#allocation7_spill] sm:$0xff] %v6546_v31  ;;  %v6554_v4 = vadd.s32 96, %v6380_v38  ;;  %v1124_v58 = vpop.f32.mrf.mxu1 }
  0xeb   : > { %v5984_v14 = vpop.eup %5983  ;;  %6009 = vrcp.f32 %v1252_v0  ;;  %v1251_v26 = vadd.f32 1.0, %v5982_v7  ;;  %v6557_v7 = vadd.s32 216, %v6380_v38  ;;  %v6560_v0 = vadd.s32 224, %v6380_v38 }
  0xec   : > { %v5986_v25 = vpop.eup %5985  ;;  %6011 = vrcp.f32 %v1268_v9  ;;  %v1267_v27 = vadd.f32 1.0, %v5984_v14  ;;  %9797 = vst [vmem:[#allocation9_spill] sm:$0xff] %v6554_v4  ;;  %vm6606_vm4 = vcmp.ge.s32.totalorder %v9802_v15, 1 }
  0xed   : > { %v5988_v18 = vpop.eup %5987  ;;  %6013 = vrcp.f32 %v1251_v26  ;;  %v1254_v19 = vadd.f32 1.0, %v5986_v25  ;;  %9798 = vst [vmem:[#allocation10_spill] sm:$0xff] %v6557_v7  ;;  %9799 = vst [vmem:[#allocation11_spill] sm:$0xff] %v6560_v0  ;;  %v6566_v26 = vadd.f32 %v6502_v55, %v6378_v37  ;;  %v5730_v25 = vpop.f32.mrf.mxu0 }
  0xee   : > { %v5990_v36 = vpop.eup %5989  ;;  %6015 = vrcp.f32 %v1267_v27  ;;  %v1270_v59 = vadd.f32 1.0, %v5988_v18  ;;  %v6571_v18 = vadd.f32 %v6504_v60, %v6378_v37  ;;  %v6581_v60 = vadd.s32 120, %v6380_v38 }
  0xef   : > { %v5992_v30 = vpop.eup %5991  ;;  %6017 = vrcp.f32 %v1254_v19  ;;  %v1253_v56 = vadd.f32 1.0, %v5990_v36  ;;  %v5754_v36 = vpop.f32.mrf.mxu1 }
  0xf0   : > { %v5994_v47 = vpop.eup %5993  ;;  %6019 = vrcp.f32 %v1270_v59  ;;  %v1269_v50 = vadd.f32 1.0, %v5992_v30  ;;  %v6578_v59 = vadd.f32 %v6378_v37, %v6516_v11  ;;  %9800 = vst [vmem:[#allocation12_spill] sm:$0xff] %v6581_v60  ;;  %v1054_v14 = vpop.f32.mrf.mxu0  ;;  %v6591_v11 = vadd.f32 %v6529_v40, %v6378_v37 }
  0xf1   : > { %v5996_v9 = vpop.eup %5995  ;;  %6021 = vrcp.f32 %v1253_v56  ;;  %v1256_v19 = vadd.f32 1.0, %v5994_v47  ;;  %v5348_v47 = vmul.f32 -1.442695, %v6566_v26  ;;  %v6586_v56 = vadd.f32 %v6378_v37, %v6524_v22  ;;  %v1134_v0 = vpop.f32.mrf.mxu1 }
  0xf2   : > { %v5998_v28 = vpop.eup %5997  ;;  %6023 = vrcp.f32 %v1269_v50  ;;  %v1272_v57 = vadd.f32 1.0, %v5996_v9  ;;  %v5364_v9 = vmul.f32 -1.442695, %v6571_v18  ;;  %v6599_v22 = vadd.f32 %v6378_v37, %v1044_v61  ;;  %v5733_v15 = vpop.f32.mrf.mxu0 }
  0xf3   : > { %v6000_v30 = vpop.eup %5999  ;;  %6025 = vrcp.f32 %v1256_v19  ;;  %v1255_v27 = vadd.f32 1.0, %v5998_v28  ;;  %v6596_v28 = vadd.f32 %v6540_v39, %v6378_v37  ;;  %v9803_v40 = vmov 0 }
  0xf4   : > { %v6002_v55 = vpop.eup %6001  ;;  %6027 = vrcp.f32 %v1272_v57  ;;  %v1271_v50 = vadd.f32 1.0, %v6000_v30  ;;  %v9804_v40 = vsel %vm6606_vm4, 4294967295, %v9803_v40  ;;  %v6612_v39 = vadd.f32 %v6378_v37, %v1124_v58 }
  0xf5   : > { %v6004_v7 = vpop.eup %6003  ;;  %v1346_v19 = vmul.f32 %v6002_v55, %v6397_v45  ;;  %6029 = vrcp.f32 %v1255_v27  ;;  %9805 = vst [vmem:[#allocation14_spill] sm:$0xff] %v9804_v40  ;;  %v5347_v45 = vmul.f32 -1.442695, %v6578_v59  ;;  %v9808_v58 = vmov 0 }
  0xf6   : > { %v6006_v57 = vpop.eup %6005  ;;  %v6602_v30 = vmul.f32 %v6004_v7, %v6400_v46  ;;  %6031 = vrcp.f32 %v1271_v50  ;;  %9806 = vst [vmem:[#allocation15_spill] sm:$0xff] %v6612_v39  ;;  %v5363_v46 = vmul.f32 -1.442695, %v6586_v56  ;;  %v6618_v7 = vadd.s32 128, %v6380_v38 }
  0xf7   : > { %v6008_v27 = vpop.eup %6007  ;;  %1379 = vst.msk [vmem:[#allocation2 + $0x28] sm:$0xff] %vm9526_vm2, %v1346_v19  ;;  %v1345_v61 = vmul.f32 %v6006_v57, %v6406_v52  ;;  %6033 = vpow2.f32 %v5348_v47  ;;  %v9807_v50 = vand.u32 15, %v6380_v38  ;;  %v5350_v52 = vmul.f32 -1.442695, %v6591_v11 }
  0xf8   : > { %9801 = vst [vmem:[#allocation13_spill] sm:$0xff] %v6602_v30  ;;  %v6010_v55 = vpop.eup %6009  ;;  %1395 = vst.msk [vmem:[#allocation2 + $0xa8] sm:$0xff] %vm9526_vm2, %v6602_v30  ;;  %v6629_v4 = vmul.f32 %v6008_v27, %v6409_v53  ;;  %6035 = vpow2.f32 %v5364_v9  ;;  %v6633_v47 = vadd.f32 %v5730_v25, %v6378_v37  ;;  %v5366_v31 = vmul.f32 -1.442695, %v6596_v28  ;;  %v5757_v53 = vpop.f32.mrf.mxu1 }
  0xf9   : > { %vm6624_vm5 = vcmp.ge.s32.totalorder %v9807_v50, 2  ;;  %v6012_v57 = vpop.eup %6011  ;;  %1378 = vst.msk [vmem:[#allocation2 + $0x20] sm:$0xff] %vm9526_vm2, %v1345_v61  ;;  %v1348_v30 = vmul.f32 %v6010_v55, %v6418_v62  ;;  %v5349_v50 = vmul.f32 -1.442695, %v6599_v22  ;;  %v6640_v29 = vadd.f32 %v5754_v36, %v6378_v37  ;;  %5810 = vmatprep.mubr.msk.f32.mxu0 %vm9526_vm2, %v1345_v61 }
  0xfa   : > { %v9809_v58 = vsel %vm6624_vm5, 4294967295, %v9808_v58  ;;  %9811 = vst [vmem:[#allocation17_spill] sm:$0xff] %v6629_v4  ;;  %9812 = vst [vmem:[#allocation18_spill] sm:$0xff] %v6633_v47  ;;  %v6014_v9 = vpop.eup %6013  ;;  %v6646_v25 = vmul.f32 %v6012_v57, %v6421_v63  ;;  %6037 = vpow2.f32 %v5347_v45  ;;  %v5365_v62 = vmul.f32 -1.442695, %v6612_v39  ;;  %5811 = vmatmul.mubr.msk.f32.vlgmr.msra.gmra.mxu0 %vm9526_vm2, %v1346_v19  ;;  %v1064_v57 = vpop.f32.mrf.mxu0 }
  0xfb   : > { %9810 = vst [vmem:[#allocation16_spill] sm:$0xff] %v9809_v58  ;;  %9813 = vst [vmem:[#allocation19_spill] sm:$0xff] %v6640_v29  ;;  %v6650_v27 = vadd.f32 %v6378_v37, %v1054_v14  ;;  %v6016_v36 = vpop.eup %6015  ;;  %v9816_v61 = vand.u32 15, %v6388_v42  ;;  %v9817_v55 = vmov 0  ;;  %v1347_v63 = vmul.f32 %v6014_v9, %v6431_v5  ;;  %5909 = vmatpush3.msk.msra.mxu0 %vm9511_vm3, %v6442_v8 }
  0xfc   : > { %1394 = vst.msk [vmem:[#allocation2 + $0xa0] sm:$0xff] %vm9526_vm2, %v6629_v4  ;;  %9814 = vst [vmem:[#allocation20_spill] sm:$0xff] %v6646_v25  ;;  %6039 = vpow2.f32 %v5363_v46  ;;  %v6662_v45 = vadd.f32 %v6378_v37, %v1134_v0  ;;  %v6665_v14 = vadd.f32 %v5733_v15, %v6378_v37  ;;  %v6018_v19 = vpop.eup %6017  ;;  %v9823_v4 = vmov 0 }
  0xfd   : > { %9815 = vst [vmem:[#allocation21_spill] sm:$0xff] %v6650_v27  ;;  %1381 = vst.msk [vmem:[#allocation2 + $0x38] sm:$0xff] %vm9526_vm2, %v1348_v30  ;;  %vm6656_vm6 = vcmp.ge.s32.totalorder %v9816_v61, 1  ;;  %v9822_v61 = vand.u32 15, %v6385_v41  ;;  %v6678_v5 = vmul.f32 %v6016_v36, %v6434_v6  ;;  %6041 = vpow2.f32 %v5350_v52  ;;  %v6020_v8 = vpop.eup %6019  ;;  %5813 = vmatprep.mubr.msk.f32.mxu0 %vm9526_vm2, %v1347_v63 }
  0xfe   : > { %v9818_v55 = vsel %vm6656_vm6, 4294967295, %v9817_v55  ;;  %9820 = vst [vmem:[#allocation23_spill] sm:$0xff] %v6662_v45  ;;  %9821 = vst [vmem:[#allocation24_spill] sm:$0xff] %v6665_v14  ;;  %v5352_v0 = vmul.f32 -1.442695, %v6633_v47  ;;  %v6682_v46 = vadd.f32 %v5757_v53, %v6378_v37  ;;  %v9828_v15 = vand.u32 15, %v6388_v42  ;;  %v6022_v53 = vpop.eup %6021  ;;  %5814 = vmatmul.mubr.msk.f32.gmra.mxu0 %vm9526_vm2, %v1348_v30 }
  0xff   : > { %9819 = vst [vmem:[#allocation22_spill] sm:$0xff] %v9818_v55  ;;  %1397 = vst.msk [vmem:[#allocation2 + $0xb8] sm:$0xff] %vm9526_vm2, %v6646_v25  ;;  %vm6673_vm7 = vcmp.le.s32.totalorder %v9822_v61, 14  ;;  %v9829_v9 = vmov 0  ;;  %v1350_v61 = vmul.f32 %v6018_v19, %v6457_v16  ;;  %6043 = vpow2.f32 %v5366_v31  ;;  %v1411_v19 = vld [vmem:[#allocation2 + $0x28] sm:$0xff] }
 0x100   : > { %v9824_v4 = vsel %vm6673_vm7, 4294967295, %v9823_v4  ;;  %9826 = vst [vmem:[#allocation26_spill] sm:$0xff] %v6678_v5  ;;  %9827 = vst [vmem:[#allocation27_spill] sm:$0xff] %v6682_v46  ;;  %vm6686_vm8 = vcmp.ge.s32.totalorder %v9828_v15, 2  ;;  %v5368_v6 = vmul.f32 -1.442695, %v6640_v29  ;;  %v6712_v16 = vmul.f32 %v6020_v8, %v6460_v17 }
 0x101   : > { %9825 = vst [vmem:[#allocation25_spill] sm:$0xff] %v9824_v4  ;;  %v9830_v9 = vsel %vm6686_vm8, 4294967295, %v9829_v9  ;;  %1380 = vst.msk [vmem:[#allocation2 + $0x30] sm:$0xff] %vm9526_vm2, %v1347_v63  ;;  %v6694_v52 = vadd.s32 248, %v6380_v38  ;;  %v9832_v36 = vand.u32 15, %v6385_v41  ;;  %v9833_v42 = vmov 0  ;;  %v6024_v63 = vpop.eup %6023 }
 0x102   : > { %9831 = vst [vmem:[#allocation28_spill] sm:$0xff] %v9830_v9  ;;  %v9836_v15 = vand.u32 15, %v6394_v44  ;;  %v9837_v25 = vmov 0  ;;  %1396 = vst.msk [vmem:[#allocation2 + $0xb0] sm:$0xff] %vm9526_vm2, %v6678_v5  ;;  %6045 = vpow2.f32 %v5349_v50  ;;  %v5351_v31 = vmul.f32 -1.442695, %v6650_v27 }
 0x103   : > { %vm6699_vm9 = vcmp.le.s32.totalorder %v9832_v36, 13  ;;  %9840 = vst [vmem:[#allocation31_spill] sm:$0xff] %v6712_v16  ;;  %v6716_v41 = vadd.f32 %v6378_v37, %v1064_v57  ;;  %v9842_v36 = vand.u32 15, %v6391_v43  ;;  %1383 = vst.msk [vmem:[#allocation2 + $0x48] sm:$0xff] %vm9526_vm2, %v1350_v61  ;;  %v1349_v17 = vmul.f32 %v6022_v53, %v6466_v23  ;;  %v6026_v57 = vpop.eup %6025  ;;  %v1410_v8 = vld [vmem:[#allocation2 + $0x20] sm:$0xff] }
 0x104   : > { %v9834_v42 = vsel %vm6699_vm9, 4294967295, %v9833_v42  ;;  %vm6705_vm10 = vcmp.ge.s32.totalorder %v9836_v15, 1  ;;  %v9843_v15 = vmov 0  ;;  %6047 = vpow2.f32 %v5365_v62  ;;  %v1442_v30 = vld [vmem:[#allocation2 + $0x1f] sm:$0xff]  ;;  %v1443_v5 = vld [vmem:[#allocation2 + $0x27] sm:$0xff]  ;;  %1399 = vst.msk [vmem:[#allocation2 + $0xc8] sm:$0xff] %vm9526_vm2, %v6712_v16 }
 0x105   : > { %9835 = vst [vmem:[#allocation29_spill] sm:$0xff] %v9834_v42  ;;  %v9838_v25 = vsel %vm6705_vm10, 4294967295, %v9837_v25  ;;  %9841 = vst [vmem:[#allocation32_spill] sm:$0xff] %v6716_v41  ;;  %vm6721_vm11 = vcmp.le.s32.totalorder %v9842_v36, 14  ;;  %v5367_v50 = vmul.f32 -1.442695, %v6662_v45  ;;  %v6738_v23 = vmul.f32 %v6024_v63, %v6469_v24  ;;  %5816 = vmatprep.mubr.msk.f32.mxu0 %vm9526_vm2, %v1349_v17 }
 0x106   : > { %9839 = vst [vmem:[#allocation30_spill] sm:$0xff] %v9838_v25  ;;  %v9844_v15 = vsel %vm6721_vm11, 4294967295, %v9843_v15  ;;  %v5354_v37 = vmul.f32 -1.442695, %v6665_v14  ;;  %v9846_v27 = vand.u32 15, %v6394_v44  ;;  %v9847_v36 = vmov 0  ;;  %v6028_v14 = vpop.eup %6027  ;;  %5817 = vmatmul.mubr.msk.f32.gmra.mxu0 %vm9526_vm2, %v1350_v61 }
 0x107   : > { %9845 = vst [vmem:[#allocation33_spill] sm:$0xff] %v9844_v15  ;;  %9850 = vst [vmem:[#allocation35_spill] sm:$0xff] %v6738_v23  ;;  %6049 = vpow2.f32 %v5352_v0  ;;  %v5370_v53 = vmul.f32 -1.442695, %v6682_v46  ;;  %v1538_v45 = vsel %vm6606_vm4, %v1442_v30, -inf  ;;  %v1571_v44 = vmax.f32 %v1411_v19, %v1443_v5  ;;  %v6030_v5 = vpop.eup %6029  ;;  %v1427_v19 = vld [vmem:[#allocation2 + $0xa8] sm:$0xff] }
 0x108   : > { %vm6731_vm12 = vcmp.ge.s32.totalorder %v9846_v27, 2  ;;  %v1602_v27 = vld [vmem:[#allocation2 + $0x1e] sm:$0xff]  ;;  %v9851_v29 = vand.u32 15, %v6391_v43  ;;  %v9852_v47 = vmov 0  ;;  %v9855_v24 = vand.u32 15, %v6427_v3  ;;  %1382 = vst.msk [vmem:[#allocation2 + $0x40] sm:$0xff] %vm9526_vm2, %v1349_v17  ;;  %v6032_v62 = vpop.eup %6031 }
 0x109   : > { %v9848_v36 = vsel %vm6731_vm12, 4294967295, %v9847_v36  ;;  %v9856_v0 = vmov 0  ;;  %v1352_v63 = vmul.f32 %v6026_v57, %v6477_v32  ;;  %6051 = vpow2.f32 %v5368_v6  ;;  %1398 = vst.msk [vmem:[#allocation2 + $0xc0] sm:$0xff] %vm9526_vm2, %v6738_v23  ;;  %v1603_v32 = vld [vmem:[#allocation2 + $0x26] sm:$0xff]  ;;  %v1620_v55 = vld [vmem:[#allocation2 + $0xae] sm:$0xff] }
 0x10a   : > { %9849 = vst [vmem:[#allocation34_spill] sm:$0xff] %v9848_v36  ;;  %vm6746_vm13 = vcmp.le.s32.totalorder %v9851_v29, 13  ;;  %vm6752_vm14 = vcmp.ge.s32.totalorder %v9855_v24, 1  ;;  %v1570_v43 = vmax.f32 %v1410_v8, %v1538_v45  ;;  %v1459_v29 = vld [vmem:[#allocation2 + $0xa7] sm:$0xff]  ;;  %v6762_v30 = vmul.f32 %v6028_v14, %v6480_v33  ;;  %v1940_v42 = vld [vmem:[#allocation2 + $0xb2] sm:$0xff] }
 0x10b   : > { %v9853_v47 = vsel %vm6746_vm13, 4294967295, %v9852_v47  ;;  %v9857_v0 = vsel %vm6752_vm14, 4294967295, %v9856_v0  ;;  %6053 = vpow2.f32 %v5351_v31  ;;  %v5353_v24 = vmul.f32 -1.442695, %v6716_v41  ;;  %v1762_v17 = vld [vmem:[#allocation2 + $0x21] sm:$0xff]  ;;  %1385 = vst.msk [vmem:[#allocation2 + $0x58] sm:$0xff] %vm9526_vm2, %v1352_v63  ;;  %v6034_v31 = vpop.eup %6033 }
 0x10c   : > { %9854 = vst [vmem:[#allocation36_spill] sm:$0xff] %v9853_v47  ;;  %9858 = vst [vmem:[#allocation37_spill] sm:$0xff] %v9857_v0  ;;  %v1698_v6 = vsel %vm6624_vm5, %v1602_v27, -inf  ;;  %v1587_v57 = vmax.f32 %v1427_v19, %v1459_v29  ;;  %v9860_v45 = vand.u32 15, %v6427_v3  ;;  %v9861_v8 = vmov 0  ;;  %v1619_v29 = vld [vmem:[#allocation2 + $0xa6] sm:$0xff] }
 0x10d   : > { %9859 = vst [vmem:[#allocation38_spill] sm:$0xff] %v6762_v30  ;;  %v9864_v33 = vand.u32 15, %v6424_v2  ;;  %v9865_v14 = vmov 0  ;;  %v1351_v61 = vmul.f32 %v6030_v5, %v6490_v48  ;;  %6055 = vpow2.f32 %v5367_v50  ;;  %v6782_v3 = vld [vmem:[#allocation2 + $0x38] sm:$0xff]  ;;  %1401 = vst.msk [vmem:[#allocation2 + $0xd8] sm:$0xff] %vm9526_vm2, %v6762_v30  ;;  %v6036_v48 = vpop.eup %6035  ;;  %v1444_v50 = vld [vmem:[#allocation2 + $0x2f] sm:$0xff] }
 0x10e   : > { %vm6770_vm15 = vcmp.ge.s32.totalorder %v9860_v45, 2  ;;  %v1730_v27 = vmax.f32 %v1570_v43, %v1698_v6  ;;  %v1731_v19 = vmax.f32 %v1571_v44, %v1603_v32  ;;  %v1412_v45 = vld [vmem:[#allocation2 + $0x30] sm:$0xff]  ;;  %v9868_v16 = vand.u32 15, %v6449_v13 }
 0x10f   : > { %v9862_v8 = vsel %vm6770_vm15, 4294967295, %v9861_v8  ;;  %vm6776_vm0 = vcmp.le.s32.totalorder %v9864_v33, 14  ;;  %v9869_v23 = vmov 0  ;;  %v6793_v33 = vmul.f32 %v6032_v62, %v6493_v49  ;;  %v1445_v44 = vld [vmem:[#allocation2 + $0x37] sm:$0xff]  ;;  %v1604_v5 = vld [vmem:[#allocation2 + $0x2e] sm:$0xff]  ;;  %1384 = vst.msk [vmem:[#allocation2 + $0x50] sm:$0xff] %vm9526_vm2, %v1351_v61  ;;  %5819 = vmatprep.mubr.msk.f32.mxu0 %vm9526_vm2, %v1351_v61 }
 0x110   : > { %9863 = vst [vmem:[#allocation39_spill] sm:$0xff] %v9862_v8  ;;  %v9866_v14 = vsel %vm6776_vm0, 4294967295, %v9865_v14  ;;  %vm6786_vm1 = vcmp.ge.s32.totalorder %v9868_v16, 1  ;;  %6057 = vpow2.f32 %v5354_v37  ;;  %v9873_v43 = vand.u32 15, %v6424_v2  ;;  %v1922_v62 = vld [vmem:[#allocation2 + $0x22] sm:$0xff]  ;;  %5820 = vmatmul.mubr.msk.f32.gmra.mxu0 %vm9526_vm2, %v1352_v63  ;;  %v1461_v63 = vld [vmem:[#allocation2 + $0xb7] sm:$0xff] }
 0x111   : > { %9867 = vst [vmem:[#allocation40_spill] sm:$0xff] %v9866_v14  ;;  %v9870_v23 = vsel %vm6786_vm1, 4294967295, %v9869_v23  ;;  %9872 = vst [vmem:[#allocation42_spill] sm:$0xff] %v6793_v33  ;;  %v9874_v32 = vmov 0  ;;  %v1258_v16 = vadd.f32 1.0, %v6034_v31  ;;  %6059 = vpow2.f32 %v5370_v53  ;;  %v1763_v60 = vld [vmem:[#allocation2 + $0x29] sm:$0xff] }
 0x112   : > { %9871 = vst [vmem:[#allocation41_spill] sm:$0xff] %v9870_v23  ;;  %vm6797_vm3 = vcmp.le.s32.totalorder %v9873_v43, 13  ;;  %v6803_v6 = vadd.s32 104, %v6380_v38  ;;  %v6806_v49 = vadd.s32 112, %v6380_v38  ;;  %v1890_v37 = vmax.f32 %v1730_v27, %v1762_v17  ;;  %1400 = vst.msk [vmem:[#allocation2 + $0xd0] sm:$0xff] %vm9526_vm2, %v6793_v33  ;;  %v6827_v17 = vpop.eup %6037  ;;  %v1923_v27 = vld [vmem:[#allocation2 + $0x2a] sm:$0xff] }
 0x113   : > { %v9875_v32 = vsel %vm6797_vm3, 4294967295, %v9874_v32  ;;  %v1747_v30 = vmax.f32 %v1587_v57, %v1619_v29  ;;  %v1540_v2 = vsel %vm6656_vm6, %v1444_v50, -inf  ;;  %v1573_v43 = vmax.f32 %v6782_v3, %v1445_v44  ;;  %v1429_v57 = vld [vmem:[#allocation2 + $0xb8] sm:$0xff]  ;;  %v1428_v29 = vld [vmem:[#allocation2 + $0xb0] sm:$0xff] }
 0x114   : > { %9876 = vst [vmem:[#allocation43_spill] sm:$0xff] %v9875_v32  ;;  %v9877_v31 = vand.u32 15, %v6449_v13  ;;  %v9878_v53 = vmov 0  ;;  %v9881_v58 = vand.u32 15, %v6446_v12  ;;  %v9882_v41 = vmov 0  ;;  %v1460_v33 = vld [vmem:[#allocation2 + $0xaf] sm:$0xff] }
 0x115   : > { %v1572_v61 = vmax.f32 %v1412_v45, %v1540_v2  ;;  %v1859_v13 = vsel %vm6673_vm7, %v1763_v60, -inf  ;;  %6061 = vrcp.f32 %v1258_v16  ;;  %v1274_v3 = vadd.f32 1.0, %v6036_v48  ;;  %v1925_v47 = vld [vmem:[#allocation2 + $0x3a] sm:$0xff] }
 0x116   : > { %vm6814_vm5 = vcmp.ge.s32.totalorder %v9877_v31, 2  ;;  %vm6820_vm4 = vcmp.le.s32.totalorder %v9881_v58, 14  ;;  %v6831_v58 = vpop.eup %6039  ;;  %v2050_v50 = vmax.f32 %v1890_v37, %v1922_v62  ;;  %v1700_v44 = vsel %vm6686_vm8, %v1604_v5, -inf  ;;  %v1605_v5 = vld [vmem:[#allocation2 + $0x36] sm:$0xff]  ;;  %v1779_v62 = vld [vmem:[#allocation2 + $0xa9] sm:$0xff] }
 0x117   : > { %v9879_v53 = vsel %vm6814_vm5, 4294967295, %v9878_v53  ;;  %v9883_v41 = vsel %vm6820_vm4, 4294967295, %v9882_v41  ;;  %v1891_v31 = vmax.f32 %v1731_v19, %v1859_v13  ;;  %v9885_v46 = vand.u32 15, %v6446_v12  ;;  %v6847_v16 = vpop.eup %6041  ;;  %v1764_v13 = vld [vmem:[#allocation2 + $0x31] sm:$0xff]  ;;  %v1941_v39 = vld [vmem:[#allocation2 + $0xba] sm:$0xff] }
 0x118   : > { %9880 = vst [vmem:[#allocation44_spill] sm:$0xff] %v9879_v53  ;;  %9884 = vst [vmem:[#allocation45_spill] sm:$0xff] %v9883_v41  ;;  %v9886_v45 = vmov 0  ;;  %v9889_v60 = vand.u32 15, %v6486_v35  ;;  %v9890_v48 = vmov 0  ;;  %6063 = vpow2.f32 %v5353_v24  ;;  %v6853_v2 = vpop.eup %6043  ;;  %v1448_v23 = vld [vmem:[#allocation2 + $0x4f] sm:$0xff] }
 0x119   : > { %vm6837_vm2 = vcmp.le.s32.totalorder %v9885_v46, 13  ;;  %v1732_v19 = vmax.f32 %v1572_v61, %v1700_v44  ;;  %v2019_v37 = vsel %vm6699_vm9, %v1923_v27, -inf  ;;  %v1556_v12 = vsel %vm6705_vm10, %v1460_v33, -inf  ;;  %v1939_v61 = vld [vmem:[#allocation2 + $0xaa] sm:$0xff] }
 0x11a   : > { %v9887_v45 = vsel %vm6837_vm2, 4294967295, %v9886_v45  ;;  %vm6843_vm7 = vcmp.ge.s32.totalorder %v9889_v60, 1  ;;  %v1589_v46 = vmax.f32 %v1429_v57, %v1461_v63  ;;  %vm9893_vm8 = vcmask 15360   ;;  %v1924_v60 = vld [vmem:[#allocation2 + $0x32] sm:$0xff] }
 0x11b   : > { %9888 = vst [vmem:[#allocation46_spill] sm:$0xff] %v9887_v45  ;;  %v9891_v48 = vsel %vm6843_vm7, 4294967295, %v9890_v48  ;;  %2082 = vst.msk [vmem:[#allocation3 + $0x20] sm:$0xff] %vm9893_vm8, %v2050_v50  ;;  %v2051_v4 = vmax.f32 %v1891_v31, %v2019_v37  ;;  %v1588_v24 = vmax.f32 %v1428_v29, %v1556_v12  ;;  %v1875_v9 = vsel %vm6721_vm11, %v1779_v62, -inf  ;;  %v6870_v50 = vpop.eup %6045  ;;  %v1621_v63 = vld [vmem:[#allocation2 + $0xb6] sm:$0xff]  ;;  %v1414_v12 = vld [vmem:[#allocation2 + $0x40] sm:$0xff] }
 0x11c   : > { %9892 = vst [vmem:[#allocation47_spill] sm:$0xff] %v9891_v48  ;;  %v9894_v44 = vand.u32 15, %v6486_v35  ;;  %v9895_v27 = vmov 0  ;;  %v9898_v33 = vand.u32 15, %v6483_v34  ;;  %v9899_v57 = vmov 0  ;;  %v1446_v62 = vld [vmem:[#allocation2 + $0x3f] sm:$0xff] }
 0x11d   : > { %6065 = vrcp.f32 %v1274_v3  ;;  %v1733_v29 = vmax.f32 %v1573_v43, %v1605_v5  ;;  %v1892_v31 = vmax.f32 %v1732_v19, %v1764_v13  ;;  %v1716_v37 = vsel %vm6731_vm12, %v1620_v55, -inf  ;;  %v1780_v5 = vld [vmem:[#allocation2 + $0xb1] sm:$0xff]  ;;  %v1447_v55 = vld [vmem:[#allocation2 + $0x47] sm:$0xff] }
 0x11e   : > { %vm6860_vm9 = vcmp.ge.s32.totalorder %v9894_v44, 2  ;;  %vm6866_vm10 = vcmp.le.s32.totalorder %v9898_v33, 14  ;;  %v1907_v35 = vmax.f32 %v1747_v30, %v1875_v9  ;;  %v9902_v44 = vand.u32 15, %v6500_v54  ;;  %v6880_v33 = vpop.eup %6047  ;;  %v1606_v30 = vld [vmem:[#allocation2 + $0x3e] sm:$0xff] }
 0x11f   : > { %v9896_v27 = vsel %vm6860_vm9, 4294967295, %v9895_v27  ;;  %v9900_v57 = vsel %vm6866_vm10, 4294967295, %v9899_v57  ;;  %v9903_v25 = vmov 0  ;;  %vm9906_vm11 = vcmask 15360  }
 0x120   : > { %9897 = vst [vmem:[#allocation48_spill] sm:$0xff] %v9896_v27  ;;  %9901 = vst [vmem:[#allocation49_spill] sm:$0xff] %v9900_v57  ;;  %vm6876_vm8 = vcmp.ge.s32.totalorder %v9902_v44, 1  ;;  %v1748_v3 = vmax.f32 %v1588_v24, %v1716_v37  ;;  %v1749_v43 = vmax.f32 %v1589_v46, %v1621_v63  ;;  %v2035_v19 = vsel %vm6746_vm13, %v1939_v61, -inf  ;;  %v6899_v46 = vpop.eup %6049  ;;  %v1415_v63 = vld [vmem:[#allocation2 + $0x48] sm:$0xff] }
 0x121   : > { %v9904_v25 = vsel %vm6876_vm8, 4294967295, %v9903_v25  ;;  %2083 = vst.msk [vmem:[#allocation3 + $0x28] sm:$0xff] %vm9906_vm11, %v2051_v4  ;;  %v1542_v9 = vsel %vm6752_vm14, %v1446_v62, -inf  ;;  %v9907_v13 = vand.u32 15, %v6483_v34  ;;  %v9908_v44 = vmov 0  ;;  %v1765_v62 = vld [vmem:[#allocation2 + $0x39] sm:$0xff] }
 0x122   : > { %9905 = vst [vmem:[#allocation50_spill] sm:$0xff] %v9904_v25  ;;  %v9911_v36 = vand.u32 15, %v6497_v51  ;;  %v9912_v4 = vmov 0  ;;  %v2052_v24 = vmax.f32 %v1892_v31, %v1924_v60  ;;  %v2067_v61 = vmax.f32 %v1907_v35, %v2035_v19  ;;  %v1430_v35 = vld [vmem:[#allocation2 + $0xc0] sm:$0xff] }
 0x123   : > { %vm6889_vm12 = vcmp.le.s32.totalorder %v9907_v13, 13  ;;  %v1574_v37 = vmax.f32 %v1414_v12, %v1542_v9  ;;  %v9915_v34 = vand.u32 15, %v6500_v54  ;;  %v9916_v13 = vmov 0  ;;  %v1462_v12 = vld [vmem:[#allocation2 + $0xbf] sm:$0xff]  ;;  %v1463_v9 = vld [vmem:[#allocation2 + $0xc7] sm:$0xff] }
 0x124   : > { %v9909_v44 = vsel %vm6889_vm12, 4294967295, %v9908_v44  ;;  %vm6895_vm11 = vcmp.le.s32.totalorder %v9911_v36, 14  ;;  %v1257_v15 = vadd.f32 1.0, %v6827_v17  ;;  %v6908_v36 = vpop.eup %6051  ;;  %v1908_v0 = vmax.f32 %v1748_v3, %v1780_v5  ;;  %v1431_v3 = vld [vmem:[#allocation2 + $0xc8] sm:$0xff] }
 0x125   : > { %9910 = vst [vmem:[#allocation51_spill] sm:$0xff] %v9909_v44  ;;  %v9913_v4 = vsel %vm6895_vm11, 4294967295, %v9912_v4  ;;  %vm6903_vm13 = vcmp.ge.s32.totalorder %v9915_v34, 2  ;;  %v1575_v40 = vmax.f32 %v1415_v63, %v1447_v55  ;;  %v1702_v60 = vsel %vm6770_vm15, %v1606_v30, -inf  ;;  %v6920_v17 = vpop.eup %6053  ;;  %v1622_v63 = vld [vmem:[#allocation2 + $0xbe] sm:$0xff] }
 0x126   : > { %9914 = vst [vmem:[#allocation52_spill] sm:$0xff] %v9913_v4  ;;  %v9917_v13 = vsel %vm6903_vm13, 4294967295, %v9916_v13  ;;  %v1861_v31 = vsel %vm6776_vm0, %v1765_v62, -inf  ;;  %v9919_v54 = vand.u32 15, %v6497_v51  ;;  %v9920_v19 = vmov 0  ;;  %v6927_v62 = vpop.eup %6055 }
 0x127   : > { %9918 = vst [vmem:[#allocation53_spill] sm:$0xff] %v9917_v13  ;;  %vm9923_vm6 = vcmask 15360   ;;  %v1734_v5 = vmax.f32 %v1574_v37, %v1702_v60  ;;  %v1893_v55 = vmax.f32 %v1733_v29, %v1861_v31  ;;  %v1558_v30 = vsel %vm6786_vm1, %v1462_v12, -inf  ;;  %v6931_v37 = vpop.eup %6057  ;;  %v1607_v29 = vld [vmem:[#allocation2 + $0x46] sm:$0xff] }
 0x128   : > { %vm6916_vm14 = vcmp.le.s32.totalorder %v9919_v54, 13  ;;  %2084 = vst.msk [vmem:[#allocation3 + $0x30] sm:$0xff] %vm9923_vm6, %v2052_v24  ;;  %vm9924_vm13 = vmmov %vm9923_vm6  ;;  %v1273_v51 = vadd.f32 1.0, %v6831_v58  ;;  %v2068_v34 = vmax.f32 %v1908_v0, %v1940_v42  ;;  %v1766_v54 = vld [vmem:[#allocation2 + $0x41] sm:$0xff]  ;;  %v2021_v14 = vsel %vm6797_vm3, %v1925_v47, -inf  ;;  %v6937_v0 = vpop.eup %6059 }
 0x129   : > { %v9921_v19 = vsel %vm6916_vm14, 4294967295, %v9920_v19  ;;  %2099 = vst.msk [vmem:[#allocation3 + $0xa8] sm:$0xff] %vm9924_vm13, %v2067_v61  ;;  %v1590_v24 = vmax.f32 %v1430_v35, %v1558_v30  ;;  %v1591_v8 = vmax.f32 %v1431_v3, %v1463_v9  ;;  %v1781_v61 = vld [vmem:[#allocation2 + $0xb9] sm:$0xff]  ;;  %v1894_v60 = vmax.f32 %v1734_v5, %v1766_v54  ;;  %v1926_v31 = vld [vmem:[#allocation2 + $0x42] sm:$0xff]  ;;  %v1416_v30 = vld [vmem:[#allocation2 + $0x50] sm:$0xff] }
 0x12a   : > { %9922 = vst [vmem:[#allocation54_spill] sm:$0xff] %v9921_v19  ;;  %v2053_v12 = vmax.f32 %v1893_v55, %v2021_v14  ;;  %v1718_v58 = vsel %vm6814_vm5, %v1622_v63, -inf  ;;  %v1877_v42 = vsel %vm6820_vm4, %v1781_v61, -inf  ;;  %2100 = vst.msk [vmem:[#allocation3 + $0xb0] sm:$0xff] %vm9923_vm6, %v2068_v34  ;;  %v1735_v47 = vmax.f32 %v1575_v40, %v1607_v29  ;;  %v1623_v35 = vld [vmem:[#allocation2 + $0xc6] sm:$0xff]  ;;  %v1608_v54 = vld [vmem:[#allocation2 + $0x4e] sm:$0xff]  ;;  %v6062_v40 = vpop.eup %6061 }
 0x12b   : > { %v1750_v3 = vmax.f32 %v1590_v24, %v1718_v58  ;;  %v1909_v9 = vmax.f32 %v1749_v43, %v1877_v42  ;;  %6067 = vrcp.f32 %v1257_v15  ;;  %v2054_v5 = vmax.f32 %v1894_v60, %v1926_v31  ;;  %vm9925_vm13 = vmmov %vm9923_vm6  ;;  %v1782_v14 = vld [vmem:[#allocation2 + $0xc1] sm:$0xff]  ;;  %v1767_v61 = vld [vmem:[#allocation2 + $0x49] sm:$0xff]  ;;  %v6945_v15 = vpop.eup %6063 }
 0x12c   : > { %2085 = vst.msk [vmem:[#allocation3 + $0x38] sm:$0xff] %vm9925_vm13, %v2053_v12  ;;  %v2037_v55 = vsel %vm6837_vm2, %v1941_v39, -inf  ;;  %v1544_v63 = vsel %vm6843_vm7, %v1448_v23, -inf  ;;  %6069 = vrcp.f32 %v1273_v51  ;;  %v1751_v34 = vmax.f32 %v1591_v8, %v1623_v35  ;;  %v1927_v58 = vld [vmem:[#allocation2 + $0x4a] sm:$0xff]  ;;  %v1942_v60 = vld [vmem:[#allocation2 + $0xc2] sm:$0xff]  ;;  %vm9926_vm13 = vmmov %vm9923_vm6 }
 0x12d   : > { %v1910_v24 = vmax.f32 %v1750_v3, %v1782_v14  ;;  %v2069_v43 = vmax.f32 %v1909_v9, %v2037_v55  ;;  %v1576_v29 = vmax.f32 %v1416_v30, %v1544_v63  ;;  %2086 = vst.msk [vmem:[#allocation3 + $0x40] sm:$0xff] %vm9923_vm6, %v2054_v5  ;;  %v1704_v39 = vsel %vm6860_vm9, %v1608_v54, -inf  ;;  %v1432_v31 = vld [vmem:[#allocation2 + $0xd0] sm:$0xff]  ;;  %v6066_v14 = vpop.eup %6065 }
 0x12e   : > { %v1863_v23 = vsel %vm6866_vm10, %v1767_v61, -inf  ;;  %v1464_v12 = vld [vmem:[#allocation2 + $0xcf] sm:$0xff]  ;;  %v6953_v51 = vmul.f32 %v6062_v40, %v6566_v26  ;;  %v6956_v8 = vadd.s32 232, %v6380_v38  ;;  %v2023_v63 = vsel %vm6889_vm12, %v1927_v58, -inf }
 0x12f   : > { %v2070_v42 = vmax.f32 %v1910_v24, %v1942_v60  ;;  %2101 = vst.msk [vmem:[#allocation3 + $0xb8] sm:$0xff] %vm9926_vm13, %v2069_v43  ;;  %v1736_v35 = vmax.f32 %v1576_v29, %v1704_v39  ;;  %v1895_v3 = vmax.f32 %v1735_v47, %v1863_v23  ;;  %v1560_v9 = vsel %vm6876_vm8, %v1464_v12, -inf  ;;  %v1624_v30 = vld [vmem:[#allocation2 + $0xce] sm:$0xff]  ;;  %vm9927_vm13 = vmmov %vm9923_vm6 }
 0x130   : > { %v1783_v5 = vld [vmem:[#allocation2 + $0xc9] sm:$0xff]  ;;  %v1768_v55 = vld [vmem:[#allocation2 + $0x51] sm:$0xff]  ;;  %v1592_v26 = vmax.f32 %v1432_v31, %v1560_v9  ;;  %1387 = vst.msk [vmem:[#allocation2 + $0x68] sm:$0xff] %vm9923_vm6, %v6953_v51  ;;  %v6968_v47 = vadd.s32 240, %v6380_v38  ;;  %vm9928_vm5 = vnez %v9917_v13  ;;  %v6976_v23 = vmul.f32 %v6066_v14, %v6571_v18  ;;  %v1144_v38 = vpop.f32.mrf.mxu1  ;;  %v2146_v9 = vld [vmem:[#allocation3] sm:$0xff] }
 0x131   : > { %v1879_v54 = vsel %vm6895_vm11, %v1783_v5, -inf  ;;  %v1943_v61 = vld [vmem:[#allocation2 + $0xca] sm:$0xff]  ;;  %2102 = vst.msk [vmem:[#allocation3 + $0xc0] sm:$0xff] %vm9927_vm13, %v2070_v42  ;;  %v1896_v40 = vmax.f32 %v1736_v35, %v1768_v55  ;;  %v2055_v24 = vmax.f32 %v1895_v3, %v2023_v63  ;;  %v1720_v43 = vsel %vm9928_vm5, %v1624_v30, -inf  ;;  %v1928_v58 = vld [vmem:[#allocation2 + $0x52] sm:$0xff]  ;;  %vm9929_vm13 = vmmov %vm9923_vm6 }
 0x132   : > { %v1911_v29 = vmax.f32 %v1751_v34, %v1879_v54  ;;  %v1752_v60 = vmax.f32 %v1592_v26, %v1720_v43  ;;  %v2039_v39 = vsel %vm6916_vm14, %v1943_v61, -inf  ;;  %v1260_v31 = vadd.f32 1.0, %v6847_v16  ;;  %v1784_v42 = vld [vmem:[#allocation2 + $0xd1] sm:$0xff]  ;;  %1403 = vst.msk [vmem:[#allocation2 + $0xe8] sm:$0xff] %vm9929_vm13, %v6976_v23  ;;  %v6986_v5 = vld [vmem:[#allocation3 + $0x20] sm:$0xff]  ;;  %v6988_v14 = vld [vmem:[#allocation3 + $0x28] sm:$0xff] }
 0x133   : > { %v2056_v12 = vmax.f32 %v1896_v40, %v1928_v58  ;;  %2087 = vst.msk [vmem:[#allocation3 + $0x48] sm:$0xff] %vm9923_vm6, %v2055_v24  ;;  %v1276_v3 = vadd.f32 1.0, %v6853_v2  ;;  %v1259_v34 = vadd.f32 1.0, %v6870_v50  ;;  %v1275_v18 = vadd.f32 1.0, %v6880_v33  ;;  %v2147_v55 = vld [vmem:[#allocation3 + $0x8] sm:$0xff]  ;;  %v1944_v2 = vld [vmem:[#allocation2 + $0xd2] sm:$0xff]  ;;  %vm9930_vm5 = vmmov %vm9923_vm6 }
 0x134   : > { %v2071_v35 = vmax.f32 %v1911_v29, %v2039_v39  ;;  %v1912_v30 = vmax.f32 %v1752_v60, %v1784_v42  ;;  %6071 = vrcp.f32 %v1260_v31  ;;  %v1262_v16 = vadd.f32 1.0, %v6899_v46  ;;  %v6225_v33 = vld [vmem:[%s9480_s2] ss:$0 sm:$0xff]  ;;  %v6999_v26 = vld [vmem:[#allocation3 + $0x30] sm:$0xff]  ;;  %v7001_v54 = vld [vmem:[#allocation3 + $0x38] sm:$0xff] }
 0x135   : > { %2088 = vst.msk [vmem:[#allocation3 + $0x50] sm:$0xff] %vm9923_vm6, %v2056_v12  ;;  %6073 = vrcp.f32 %v1276_v3  ;;  %v1278_v50 = vadd.f32 1.0, %v6908_v36  ;;  %v1261_v63 = vadd.f32 1.0, %v6920_v17  ;;  %v6997_v46 = vadd.f32 %v6225_v33, %v1144_v38  ;;  %v2148_v43 = vld [vmem:[#allocation3 + $0x10] sm:$0xff]  ;;  %v2149_v36 = vld [vmem:[#allocation3 + $0x18] sm:$0xff]  ;;  %v7006_v29 = vld [vmem:[#allocation3 + $0x40] sm:$0xff] }
 0x136   : > { %2103 = vst.msk [vmem:[#allocation3 + $0xc8] sm:$0xff] %vm9930_vm5, %v2071_v35  ;;  %v2072_v61 = vmax.f32 %v1912_v30, %v1944_v2  ;;  %6075 = vrcp.f32 %v1259_v34  ;;  %v1277_v40 = vadd.f32 1.0, %v6927_v62  ;;  %v1264_v24 = vadd.f32 1.0, %v6931_v37  ;;  %v1449_v42 = vld [vmem:[#allocation2 + $0x57] sm:$0xff] }
 0x137   : > { %6077 = vrcp.f32 %v1275_v18  ;;  %v1280_v17 = vadd.f32 1.0, %v6937_v0  ;;  %v2150_v58 = vmax.f32 %v6986_v5, %v2146_v9  ;;  %v2151_v60 = vmax.f32 %v6988_v14, %v2147_v55  ;;  %v1465_v35 = vld [vmem:[#allocation2 + $0xd7] sm:$0xff]  ;;  %v7157_v13 = vld [vmem:[#allocation2 + $0x68] sm:$0xff] }
 0x138   : > { %v6068_v39 = vpop.eup %6067  ;;  %2104 = vst.msk [vmem:[#allocation3 + $0xd0] sm:$0xff] %vm9930_vm5, %v2072_v61  ;;  %v9931_v31 = vand.u32 15, %v6514_v10  ;;  %v9932_v62 = vmov 0  ;;  %6079 = vrcp.f32 %v1262_v16  ;;  %v1263_v37 = vadd.f32 1.0, %v6945_v15  ;;  %v1433_v61 = vld [vmem:[#allocation2 + $0xd8] sm:$0xff] }
 0x139   : > { %v2152_v0 = vmax.f32 %v6999_v26, %v2148_v43  ;;  %v2153_v38 = vmax.f32 %v7001_v54, %v2149_v36  ;;  %v6070_v12 = vpop.eup %6069  ;;  %v9935_v3 = vand.u32 15, %v6509_v1  ;;  %v9936_v34 = vmov 0 }
 0x13a   : > { %vm7013_vm13 = vcmp.ge.s32.totalorder %v9931_v31, 1  ;;  %v1353_v9 = vmul.f32 %v6068_v39, %v6578_v59  ;;  %6081 = vrcp.f32 %v1278_v50  ;;  %v2182_v30 = vmax.f32 %v2150_v58, %v2148_v43  ;;  %v7036_v2 = vld [vmem:[#allocation3 + $0x48] sm:$0xff]  ;;  %v1417_v50 = vld [vmem:[#allocation2 + $0x58] sm:$0xff] }
 0x13b   : > { %v9933_v62 = vsel %vm7013_vm13, 4294967295, %v9932_v62  ;;  %vm7022_vm6 = vcmp.le.s32.totalorder %v9935_v3, 14  ;;  %v2183_v18 = vmax.f32 %v2151_v60, %v2149_v36  ;;  %v9939_v15 = vmov %v9931_v31 }
 0x13c   : > { %9934 = vst [vmem:[#allocation55_spill] sm:$0xff] %v9933_v62  ;;  %v9937_v34 = vsel %vm7022_vm6, 4294967295, %v9936_v34  ;;  %vm7029_vm5 = vcmp.ge.s32.totalorder %v9939_v15, 2  ;;  %v9940_v16 = vmov 0  ;;  %v7034_v55 = vmul.f32 %v6070_v12, %v6586_v56  ;;  %v7096_v15 = vld [vmem:[#allocation3 + $0xa8] sm:$0xff] }
 0x13d   : > { %9938 = vst [vmem:[#allocation56_spill] sm:$0xff] %v9937_v34  ;;  %v9941_v16 = vsel %vm7029_vm5, 4294967295, %v9940_v16  ;;  %6083 = vrcp.f32 %v1261_v63  ;;  %v2184_v33 = vmax.f32 %v2152_v0, %v6986_v5  ;;  %v2154_v59 = vmax.f32 %v7006_v29, %v6986_v5  ;;  %v7071_v12 = vld [vmem:[#allocation3 + $0xc8] sm:$0xff]  ;;  %9968 = vst [vmem:[#allocation64_spill] sm:$0xff] %v7096_v15 }
 0x13e   : > { %9942 = vst [vmem:[#allocation57_spill] sm:$0xff] %v9941_v16  ;;  %v9943_v43 = vmov %v9935_v3  ;;  %v9944_v10 = vmov 0  ;;  %vm9947_vm1 = vcmask 15360   ;;  %v9948_v56 = vand.u32 15, %v6522_v21  ;;  %9959 = vst [vmem:[#allocation61_spill] sm:$0xff] %v7071_v12 }
 0x13f   : > { %vm7043_vm8 = vcmp.le.s32.totalorder %v9943_v43, 13  ;;  %1386 = vst.msk [vmem:[#allocation2 + $0x60] sm:$0xff] %vm9947_vm1, %v1353_v9  ;;  %v9949_v63 = vmov 0  ;;  %6085 = vrcp.f32 %v1277_v40  ;;  %v5369_v36 = vmul.f32 -1.442695, %v6997_v46  ;;  %vm9952_vm2 = vmmov %vm9947_vm1  ;;  %v7068_v40 = vld [vmem:[#allocation3 + $0x50] sm:$0xff] }
 0x140   : > { %v9945_v10 = vsel %vm7043_vm8, 4294967295, %v9944_v10  ;;  %vm7050_vm14 = vcmp.ge.s32.totalorder %v9948_v56, 1  ;;  %5822 = vmatprep.mubr.msk.f32.mxu0 %vm9952_vm2, %v1353_v9  ;;  %v2216_v5 = vmax.f32 %v2182_v30, %v6999_v26  ;;  %v2217_v1 = vmax.f32 %v2183_v18, %v7001_v54  ;;  %vm9957_vm11 = vmmov %vm9952_vm2 }
 0x141   : > { %9946 = vst [vmem:[#allocation58_spill] sm:$0xff] %v9945_v10  ;;  %v9950_v63 = vsel %vm7050_vm14, 4294967295, %v9949_v63  ;;  %v1577_v58 = vmax.f32 %v1417_v50, %v1449_v42  ;;  %v1593_v60 = vmax.f32 %v1433_v61, %v1465_v35  ;;  %v9953_v39 = vand.u32 15, %v6519_v20  ;;  %1402 = vst.msk [vmem:[#allocation2 + $0xe0] sm:$0xff] %vm9957_vm11, %v7034_v55  ;;  %v1625_v50 = vld [vmem:[#allocation2 + $0xd6] sm:$0xff] }
 0x142   : > { %9951 = vst [vmem:[#allocation59_spill] sm:$0xff] %v9950_v63  ;;  %v9954_v31 = vmov 0  ;;  %6087 = vrcp.f32 %v1264_v24  ;;  %vm9958_vm4 = vmmov %vm9952_vm2  ;;  %v2218_v0 = vmax.f32 %v2184_v33, %v7006_v29  ;;  %v9960_v42 = vmov %v9948_v56  ;;  %v7106_v33 = vld [vmem:[#allocation3 + $0xd0] sm:$0xff] }
 0x143   : > { %vm7060_vm1 = vcmp.le.s32.totalorder %v9953_v39, 14  ;;  %5823 = vmatmul.mubr.msk.f32.gmra.mxu0 %vm9958_vm4, %v6953_v51  ;;  %vm7075_vm2 = vcmp.ge.s32.totalorder %v9960_v42, 2  ;;  %v9961_v35 = vmov 0  ;;  %v9964_v3 = vmov %v9953_v39  ;;  %vm9969_vm11 = vmmov %vm9958_vm4  ;;  %9972 = vst [vmem:[#allocation66_spill] sm:$0xff] %v7106_v33  ;;  %v6226_v42 = vld [vmem:[%s9481_s3 + $0x4] sm:$0x3] }
 0x144   : > { %v9955_v31 = vsel %vm7060_vm1, 4294967295, %v9954_v31  ;;  %v9962_v35 = vsel %vm7075_vm2, 4294967295, %v9961_v35  ;;  %vm7081_vm9 = vcmp.le.s32.totalorder %v9964_v3, 13  ;;  %v9965_v9 = vmov 0  ;;  %vm9970_vm7 = vmmov %vm9958_vm4  ;;  %v7126_v3 = vld [vmem:[#allocation3 + $0xb8] sm:$0xff] }
 0x145   : > { %9956 = vst [vmem:[#allocation60_spill] sm:$0xff] %v9955_v31  ;;  %9963 = vst [vmem:[#allocation62_spill] sm:$0xff] %v9962_v35  ;;  %v9966_v9 = vsel %vm7081_vm9, 4294967295, %v9965_v9  ;;  %6089 = vrcp.f32 %v1280_v17  ;;  %v2250_v51 = vmax.f32 %v2216_v5, %v7006_v29  ;;  %v2251_v24 = vmax.f32 %v2217_v1, %v7036_v2  ;;  %v9978_v17 = vld [vmem:[#allocation5_spill] sm:$0xff] }
 0x146   : > { %9967 = vst [vmem:[#allocation63_spill] sm:$0xff] %v9966_v9  ;;  %v7088_v30 = vmax.f32 %v2153_v38, %v6988_v14  ;;  %6091 = vrcp.f32 %v1263_v37  ;;  %v2252_v21 = vmax.f32 %v2218_v0, %v7068_v40  ;;  %v7092_v18 = vmax.f32 %v2154_v59, %v6999_v26  ;;  %v7104_v38 = vld [vmem:[#allocation3 + $0xb0] sm:$0xff]  ;;  %9976 = vst [vmem:[#allocation67_spill] sm:$0xff] %v7126_v3  ;;  %v1450_v61 = vld [vmem:[#allocation2 + $0x5f] sm:$0xff] }
 0x147   : > { %v2155_v20 = vmax.f32 %v7036_v2, %v6988_v14  ;;  %6093 = vpow2.f32 %v5369_v36  ;;  %5760 = vmatprep.mubr.msk.f32.mxu1 %vm9958_vm4, %v2250_v51  ;;  %2933 = vst.msk [vmem:[#allocation2 + $0x20] sm:$0xff] %vm9969_vm11, %v2250_v51  ;;  %v2156_v37 = vmax.f32 %v7068_v40, %v6999_v26  ;;  %9971 = vst [vmem:[#allocation65_spill] sm:$0xff] %v7104_v38  ;;  %v1609_v59 = vld [vmem:[#allocation2 + $0x56] sm:$0xff]  ;;  %v6072_v36 = vpop.eup %6071  ;;  %v1610_v0 = vld [vmem:[#allocation2 + $0x5e] sm:$0xff]  ;;  %v10003_v48 = vmov 0 }
 0x148   : > { %2934 = vst.msk [vmem:[#allocation2 + $0x28] sm:$0xff] %vm9970_vm7, %v2251_v24  ;;  %v2171_v14 = vmax.f32 %v7071_v12, %v7096_v15  ;;  %5761 = vmatmul.mubr.msk.f32.vlgmr.msra.gmra.mxu1 %vm9958_vm4, %v2251_v24  ;;  %vm9973_vm7 = vmmov %vm9958_vm4  ;;  %v2172_v26 = vmax.f32 %v7106_v33, %v7104_v38  ;;  %v1737_v5 = vmax.f32 %v1577_v58, %v1609_v59  ;;  %v6074_v51 = vpop.eup %6073  ;;  %v1418_v24 = vld [vmem:[#allocation2 + $0x60] sm:$0xff]  ;;  %v10010_v57 = vmov 0  ;;  %v10028_v33 = vld [vmem:[#allocation9_spill] sm:$0xff] }
 0x149   : > { %2935 = vst.msk [vmem:[#allocation2 + $0x30] sm:$0xff] %vm9973_vm7, %v2252_v21  ;;  %v7117_v1 = vmax.f32 %v1593_v60, %v1625_v50  ;;  %vm9974_vm11 = vmmov %vm9958_vm4  ;;  %vm9975_vm4 = vcmask 1041408   ;;  %v7128_v58 = vld [vmem:[#allocation2 + $0x67] sm:$0xff]  ;;  %v1356_v60 = vmul.f32 %v6072_v36, %v6591_v11  ;;  %v7136_v50 = vmax.f32 %v2155_v20, %v7001_v54  ;;  %v6076_v39 = vpop.eup %6075  ;;  %v1769_v43 = vld [vmem:[#allocation2 + $0x59] sm:$0xff] }
 0x14a   : > { %5763 = vmatprep.mubr.msk.f32.mxu1 %vm9974_vm11, %v2252_v21  ;;  %5859 = vmatpush3.msk.msra.mxu1 %vm9975_vm4, %v6226_v42  ;;  %v1546_v42 = vsel %vm7013_vm13, %v1450_v61, -inf  ;;  %v7141_v56 = vmul.f32 %v6074_v51, %v6596_v28  ;;  %v9979_v11 = vand.u32 15, %v9978_v17  ;;  %v9980_v36 = vmov 0  ;;  %v7152_v20 = vld [vmem:[#allocation3 + $0xc0] sm:$0xff]  ;;  %v6078_v61 = vpop.eup %6077  ;;  %vm10007_vm12 = vmmov %vm9974_vm11 }
 0x14b   : > { %v7150_v21 = vmax.f32 %v2156_v37, %v7006_v29  ;;  %9983 = vst [vmem:[#allocation69_spill] sm:$0xff] %v7152_v20  ;;  %v7155_v59 = vmax.f32 %v2171_v14, %v7126_v3  ;;  %v1578_v53 = vmax.f32 %v1418_v24, %v1546_v42  ;;  %v1865_v28 = vsel %vm7022_vm6, %v1769_v43, -inf  ;;  %v1929_v51 = vld [vmem:[#allocation2 + $0x5a] sm:$0xff]  ;;  %1389 = vst.msk [vmem:[#allocation2 + $0x78] sm:$0xff] %vm9974_vm11, %v1356_v60  ;;  %v6080_v45 = vpop.eup %6079  ;;  %v7176_v34 = vld [vmem:[#allocation2 + $0xe7] sm:$0xff] }
 0x14c   : > { %9977 = vst [vmem:[#allocation68_spill] sm:$0xff] %v7141_v56  ;;  %vm7145_vm7 = vcmp.ge.s32.totalorder %v9979_v11, 1  ;;  %v9985_v11 = vld [vmem:[#allocation4_spill] sm:$0xff]  ;;  %v9987_v37 = vmov 0  ;;  %v1355_v19 = vmul.f32 %v6076_v39, %v6599_v22  ;;  %v7170_v14 = vmax.f32 %v2172_v26, %v7152_v20  ;;  %1405 = vst.msk [vmem:[#allocation2 + $0xf8] sm:$0xff] %vm9974_vm11, %v7141_v56  ;;  %v7195_v24 = vld [vmem:[#allocation2 + $0xe8] sm:$0xff] }
 0x14d   : > { %v9981_v36 = vsel %vm7145_vm7, 4294967295, %v9980_v36  ;;  %9984 = vst [vmem:[#allocation70_spill] sm:$0xff] %v7155_v59  ;;  %v9986_v25 = vand.u32 15, %v9985_v11  ;;  %v1706_v43 = vsel %vm7029_vm5, %v1610_v0, -inf  ;;  %v1897_v42 = vmax.f32 %v1737_v5, %v1865_v28  ;;  %v1434_v4 = vld [vmem:[#allocation2 + $0xe0] sm:$0xff]  ;;  %v9999_v5 = vld [vmem:[#allocation15_spill] sm:$0xff]  ;;  %v6082_v28 = vpop.eup %6081 }
 0x14e   : > { %9982 = vst [vmem:[#allocation5_spill] sm:$0xff] %v9981_v36  ;;  %9990 = vst [vmem:[#allocation71_spill] sm:$0xff] %v7170_v14  ;;  %v1466_v41 = vld [vmem:[#allocation2 + $0xdf] sm:$0xff]  ;;  %v9991_v22 = vand.u32 15, %v9978_v17  ;;  %v9995_v26 = vand.u32 15, %v9985_v11  ;;  %v9996_v39 = vmov 0  ;;  %v7193_v0 = vmul.f32 %v6078_v61, %v9999_v5  ;;  %5825 = vmatprep.mubr.msk.f32.mxu0 %vm10007_vm12, %v1355_v19 }
 0x14f   : > { %vm7164_vm4 = vcmp.le.s32.totalorder %v9986_v25, 14  ;;  %v9992_v25 = vmov 0  ;;  %v1738_v16 = vmax.f32 %v1578_v53, %v1706_v43  ;;  %v2025_v17 = vsel %vm7043_vm8, %v1929_v51, -inf  ;;  %v1626_v27 = vld [vmem:[#allocation2 + $0xde] sm:$0xff]  ;;  %1388 = vst.msk [vmem:[#allocation2 + $0x70] sm:$0xff] %vm9974_vm11, %v1355_v19  ;;  %v10006_v61 = vld [vmem:[#allocation18_spill] sm:$0xff]  ;;  %v6084_v53 = vpop.eup %6083  ;;  %5826 = vmatmul.mubr.msk.f32.gmra.mxu0 %vm10007_vm12, %v1356_v60 }
 0x150   : > { %v9988_v37 = vsel %vm7164_vm4, 4294967295, %v9987_v37  ;;  %vm7182_vm6 = vcmp.ge.s32.totalorder %v9991_v22, 2  ;;  %vm7188_vm13 = vcmp.le.s32.totalorder %v9995_v26, 13  ;;  %10000 = vst [vmem:[#allocation15_spill] sm:$0xff] %v7193_v0  ;;  %v1562_v22 = vsel %vm7050_vm14, %v1466_v41, -inf  ;;  %v1785_v62 = vld [vmem:[#allocation2 + $0xd9] sm:$0xff]  ;;  %vm10013_vm14 = vmmov %vm10007_vm12 }
 0x151   : > { %9989 = vst [vmem:[#allocation4_spill] sm:$0xff] %v9988_v37  ;;  %v9993_v25 = vsel %vm7182_vm6, 4294967295, %v9992_v25  ;;  %v9997_v39 = vsel %vm7188_vm13, 4294967295, %v9996_v39  ;;  %v10001_v11 = vld [vmem:[#allocation7_spill] sm:$0xff]  ;;  %v7209_v5 = vmul.f32 %v6080_v45, %v10006_v61  ;;  %v1770_v51 = vld [vmem:[#allocation2 + $0x61] sm:$0xff]  ;;  %v2057_v43 = vmax.f32 %v1897_v42, %v2025_v17  ;;  %1404 = vst.msk [vmem:[#allocation2 + $0xf0] sm:$0xff] %vm10013_vm14, %v7193_v0  ;;  %v6086_v45 = vpop.eup %6085 }
 0x152   : > { %9994 = vst [vmem:[#allocation72_spill] sm:$0xff] %v9993_v25  ;;  %9998 = vst [vmem:[#allocation73_spill] sm:$0xff] %v9997_v39  ;;  %v10002_v26 = vand.u32 15, %v10001_v11  ;;  %v1594_v63 = vmax.f32 %v1434_v4, %v1562_v22  ;;  %v1595_v41 = vmax.f32 %v7195_v24, %v7176_v34  ;;  %v1881_v10 = vsel %vm7060_vm1, %v1785_v62, -inf  ;;  %v1945_v44 = vld [vmem:[#allocation2 + $0xda] sm:$0xff]  ;;  %v1930_v19 = vld [vmem:[#allocation2 + $0x62] sm:$0xff]  ;;  %v6088_v17 = vpop.eup %6087 }
 0x153   : > { %v1898_v4 = vmax.f32 %v1738_v16, %v1770_v51  ;;  %v1722_v34 = vsel %vm7075_vm2, %v1626_v27, -inf  ;;  %v1913_v62 = vmax.f32 %v7117_v1, %v1881_v10  ;;  %v2041_v24 = vsel %vm7081_vm9, %v1945_v44, -inf  ;;  %vm10018_vm14 = vmmov %vm10007_vm12  ;;  %v2965_v60 = vld [vmem:[#allocation2 + $0x20] sm:$0xff]  ;;  %v7238_v16 = vld [vmem:[#allocation2 + $0x28] sm:$0xff]  ;;  %2089 = vst.msk [vmem:[#allocation3 + $0x58] sm:$0xff] %vm10007_vm12, %v2057_v43  ;;  %v6090_v43 = vpop.eup %6089 }
 0x154   : > { %vm7204_vm5 = vcmp.ge.s32.totalorder %v10002_v26, 1  ;;  %v10008_v26 = vld [vmem:[#allocation6_spill] sm:$0xff]  ;;  %v10015_v42 = vmov 0  ;;  %1391 = vst.msk [vmem:[#allocation2 + $0x88] sm:$0xff] %vm10018_vm14, %v7209_v5  ;;  %v1754_v27 = vmax.f32 %v1594_v63, %v1722_v34  ;;  %v10020_v44 = vmov 0  ;;  %v10023_v1 = vld [vmem:[#allocation19_spill] sm:$0xff] }
 0x155   : > { %v10004_v48 = vsel %vm7204_vm5, 4294967295, %v10003_v48  ;;  %v10009_v32 = vand.u32 15, %v10008_v26  ;;  %v10019_v10 = vand.u32 15, %v10008_v26  ;;  %v7248_v22 = vmul.f32 %v6082_v28, %v10023_v1  ;;  %v10026_v51 = vld [vmem:[#allocation23_spill] sm:$0xff]  ;;  %v7254_v9 = vld [vmem:[#allocation2 + $0x27] sm:$0xff]  ;;  %v2999_v31 = vld [vmem:[#allocation2 + $0x2f] sm:$0xff] }
 0x156   : > { %10005 = vst [vmem:[#allocation7_spill] sm:$0xff] %v10004_v48  ;;  %v2997_v35 = vld [vmem:[#allocation2 + $0x1f] sm:$0xff]  ;;  %v2058_v34 = vmax.f32 %v1898_v4, %v1930_v19  ;;  %v10029_v12 = vand.u32 15, %v10028_v33  ;;  %v10030_v20 = vmov 0  ;;  %vm10036_vm9 = vcmask 15360   ;;  %v10124_v14 = vld [vmem:[#allocation26_spill] sm:$0xff] }
 0x157   : > { %vm7218_vm11 = vcmp.le.s32.totalorder %v10009_v32, 14  ;;  %v10014_v32 = vand.u32 15, %v10001_v11  ;;  %vm7243_vm2 = vcmp.le.s32.totalorder %v10019_v10, 13  ;;  %10024 = vst [vmem:[#allocation19_spill] sm:$0xff] %v7248_v22  ;;  %v10025_v11 = vld [vmem:[#allocation21_spill] sm:$0xff]  ;;  %v2073_v10 = vmax.f32 %v1913_v62, %v2041_v24  ;;  %v10033_v28 = vld [vmem:[#allocation24_spill] sm:$0xff]  ;;  %vm10041_vm3 = vmmov %vm10036_vm9 }
 0x158   : > { %v10011_v57 = vsel %vm7218_vm11, 4294967295, %v10010_v57  ;;  %v10021_v44 = vsel %vm7243_vm2, 4294967295, %v10020_v44  ;;  %v1357_v61 = vmul.f32 %v6084_v53, %v10025_v11  ;;  %v1611_v63 = vld [vmem:[#allocation2 + $0x66] sm:$0xff]  ;;  %vm7258_vm14 = vcmp.ge.s32.totalorder %v10029_v12, 1  ;;  %v3093_v11 = vld [vmem:[#allocation2 + $0x1e] sm:$0xff]  ;;  %1407 = vst.msk [vmem:[#allocation2 + $0x108] sm:$0xff] %vm10036_vm9, %v7248_v22  ;;  %vm10042_vm10 = vmmov %vm10041_vm3 }
 0x159   : > { %10012 = vst [vmem:[#allocation18_spill] sm:$0xff] %v10011_v57  ;;  %vm7232_vm1 = vcmp.ge.s32.totalorder %v10014_v32, 2  ;;  %10022 = vst [vmem:[#allocation74_spill] sm:$0xff] %v10021_v44  ;;  %v7252_v32 = vmul.f32 %v6086_v45, %v10026_v51  ;;  %v1786_v26 = vld [vmem:[#allocation2 + $0xe1] sm:$0xff]  ;;  %v10031_v20 = vsel %vm7258_vm14, 4294967295, %v10030_v20  ;;  %v7263_v53 = vmul.f32 %v6088_v17, %v10033_v28  ;;  %v10034_v45 = vld [vmem:[#allocation14_spill] sm:$0xff]  ;;  %v6092_v51 = vpop.eup %6091 }
 0x15a   : > { %v10016_v42 = vsel %vm7232_vm1, 4294967295, %v10015_v42  ;;  %10032 = vst [vmem:[#allocation23_spill] sm:$0xff] %v10031_v20  ;;  %vm10035_vm12 = vnez %v10034_v45  ;;  %v1627_v3 = vld [vmem:[#allocation2 + $0xe6] sm:$0xff]  ;;  %v1914_v38 = vmax.f32 %v1754_v27, %v1786_v26  ;;  %v10039_v12 = vmov 0  ;;  %1390 = vst.msk [vmem:[#allocation2 + $0x80] sm:$0xff] %vm10041_vm3, %v1357_v61  ;;  %v10043_v62 = vld [vmem:[#allocation27_spill] sm:$0xff] }
 0x15b   : > { %10017 = vst [vmem:[#allocation6_spill] sm:$0xff] %v10016_v42  ;;  %10027 = vst [vmem:[#allocation21_spill] sm:$0xff] %v7252_v32  ;;  %v3029_v1 = vsel %vm10035_vm12, %v2997_v35, -inf  ;;  %v10037_v4 = vld [vmem:[#allocation8_spill] sm:$0xff]  ;;  %v7279_v35 = vmul.f32 %v6090_v43, %v10043_v62  ;;  %v2967_v24 = vld [vmem:[#allocation2 + $0x30] sm:$0xff]  ;;  %v10048_v45 = vmax.f32 %v7157_v13, %v7128_v58  ;;  %v10051_v62 = vmov 0 }
 0x15c   : > { %v10038_v19 = vand.u32 15, %v10037_v4  ;;  %1406 = vst.msk [vmem:[#allocation2 + $0x100] sm:$0xff] %vm10042_vm10, %v7252_v32  ;;  %vm10045_vm12 = vmmov %vm10041_vm3  ;;  %v10046_v17 = vld [vmem:[#allocation22_spill] sm:$0xff]  ;;  %v3061_v26 = vmax.f32 %v2965_v60, %v3029_v1  ;;  %v1946_v22 = vld [vmem:[#allocation2 + $0xe2] sm:$0xff]  ;;  %v10054_v60 = vmov 0  ;;  %v10078_v36 = vmov 0 }
 0x15d   : > { %10044 = vst [vmem:[#allocation9_spill] sm:$0xff] %v7279_v35  ;;  %5828 = vmatprep.mubr.msk.f32.mxu0 %vm10045_vm12, %v1357_v61  ;;  %vm10047_vm0 = vnez %v10046_v17  ;;  %v7284_v28 = vld [vmem:[#allocation2 + $0x2e] sm:$0xff]  ;;  %v1739_v15 = vmax.f32 %v10048_v45, %v1611_v63  ;;  %2090 = vst.msk [vmem:[#allocation3 + $0x60] sm:$0xff] %vm10041_vm3, %v2058_v34  ;;  %v1421_v43 = vld [vmem:[#allocation2 + $0x78] sm:$0xff]  ;;  %v10050_v61 = vand.u32 15, %v10028_v33  ;;  %v3062_v33 = vmax.f32 %v7238_v16, %v7254_v9 }
 0x15e   : > { %vm7271_vm8 = vcmp.le.s32.totalorder %v10038_v19, 14  ;;  %v3031_v27 = vsel %vm10047_vm0, %v2999_v31, -inf  ;;  %v6094_v19 = vpop.eup %6093  ;;  %vm10049_vm9 = vmmov %vm10041_vm3  ;;  %v10053_v31 = vand.u32 15, %v10037_v4  ;;  %v10058_v13 = vld [vmem:[#allocation32_spill] sm:$0xff]  ;;  %v7314_v45 = vmax.f32 %v1595_v41, %v1627_v3  ;;  %v1420_v4 = vld [vmem:[#allocation2 + $0x70] sm:$0xff] }
 0x15f   : > { %v10040_v12 = vsel %vm7271_vm8, 4294967295, %v10039_v12  ;;  %2105 = vst.msk [vmem:[#allocation3 + $0xd8] sm:$0xff] %vm10049_vm9, %v2073_v10  ;;  %vm7293_vm10 = vcmp.ge.s32.totalorder %v10050_v61, 2  ;;  %vm10057_vm0 = vmmov %vm10041_vm3  ;;  %v1359_v58 = vmul.f32 %v6092_v51, %v10058_v13  ;;  %v10060_v63 = vld [vmem:[#allocation16_spill] sm:$0xff]  ;;  %v7312_v10 = vld [vmem:[#allocation2 + $0x29] sm:$0xff]  ;;  %v2074_v1 = vmax.f32 %v1914_v38, %v1946_v22 }
 0x160   : > { %v10052_v62 = vsel %vm7293_vm10, 4294967295, %v10051_v62  ;;  %vm7299_vm12 = vcmp.le.s32.totalorder %v10053_v31, 13  ;;  %1393 = vst.msk [vmem:[#allocation2 + $0x98] sm:$0xff] %vm10057_vm0, %v7263_v53  ;;  %vm10059_vm3 = vmmov %vm10057_vm0  ;;  %vm10061_vm9 = vnez %v10060_v63  ;;  %v1452_v61 = vld [vmem:[#allocation2 + $0x6f] sm:$0xff]  ;;  %v1453_v31 = vld [vmem:[#allocation2 + $0x77] sm:$0xff]  ;;  %v10064_v51 = vmov 0 }
 0x161   : > { %v10055_v60 = vsel %vm7299_vm12, 4294967295, %v10054_v60  ;;  %5829 = vmatmul.mubr.msk.f32.gmra.mxu0 %vm10059_vm3, %v7209_v5  ;;  %v3125_v34 = vsel %vm10061_vm9, %v3093_v11, -inf  ;;  %v10062_v17 = vld [vmem:[#allocation11_spill] sm:$0xff]  ;;  %1409 = vst.msk [vmem:[#allocation2 + $0x118] sm:$0xff] %vm10059_vm3, %v7279_v35  ;;  %v1279_v9 = vadd.f32 1.0, %v6094_v19  ;;  %v1548_v3 = vsel %vm7145_vm7, %v1452_v61, -inf  ;;  %vm10072_vm15 = vmmov %vm10059_vm3 }
 0x162   : > { %10056 = vst [vmem:[#allocation24_spill] sm:$0xff] %v10055_v60  ;;  %v10063_v32 = vand.u32 15, %v10062_v17  ;;  %v7324_v5 = vmax.f32 %v3061_v26, %v3125_v34  ;;  %v1581_v41 = vmax.f32 %v1421_v43, %v1453_v31  ;;  %v1612_v38 = vld [vmem:[#allocation2 + $0x6e] sm:$0xff]  ;;  %v10069_v13 = vmov 0  ;;  %1392 = vst.msk [vmem:[#allocation2 + $0x90] sm:$0xff] %vm10072_vm15, %v1359_v58  ;;  %v3094_v26 = vld [vmem:[#allocation2 + $0x26] sm:$0xff] }
 0x163   : > { %v1771_v16 = vld [vmem:[#allocation2 + $0x69] sm:$0xff]  ;;  %v10074_v19 = vld [vmem:[#allocation28_spill] sm:$0xff]  ;;  %v1437_v43 = vld [vmem:[#allocation2 + $0xf8] sm:$0xff]  ;;  %v1580_v61 = vmax.f32 %v1420_v4, %v1548_v3  ;;  %v10077_v63 = vand.u32 15, %v10062_v17  ;;  %6095 = vrcp.f32 %v1279_v9  ;;  %v10082_v17 = vmov 0 }
 0x164   : > { %vm7318_vm0 = vcmp.ge.s32.totalorder %v10063_v32, 1  ;;  %v10067_v22 = vld [vmem:[#allocation10_spill] sm:$0xff]  ;;  %v7336_v32 = vmax.f32 %v2967_v24, %v3031_v27  ;;  %v1867_v31 = vsel %vm7164_vm4, %v1771_v16, -inf  ;;  %v3158_v24 = vmax.f32 %v3062_v33, %v3094_v26  ;;  %v3189_v27 = vld [vmem:[#allocation2 + $0x21] sm:$0xff]  ;;  %v1773_v42 = vld [vmem:[#allocation2 + $0x79] sm:$0xff] }
 0x165   : > { %v10065_v51 = vsel %vm7318_vm0, 4294967295, %v10064_v51  ;;  %v10068_v11 = vand.u32 15, %v10067_v22  ;;  %vm10073_vm0 = vmmov %vm10059_vm3  ;;  %vm10075_vm3 = vnez %v10074_v19  ;;  %vm7346_vm15 = vcmp.ge.s32.totalorder %v10077_v63, 2  ;;  %v1436_v4 = vld [vmem:[#allocation2 + $0xf0] sm:$0xff]  ;;  %v1455_v57 = vld [vmem:[#allocation2 + $0x87] sm:$0xff] }
 0x166   : > { %10066 = vst [vmem:[#allocation8_spill] sm:$0xff] %v10065_v51  ;;  %5831 = vmatprep.mubr.msk.f32.mxu0 %vm10073_vm0, %v1359_v58  ;;  %vm10076_vm7 = vmmov %vm10073_vm0  ;;  %v10079_v36 = vsel %vm7346_vm15, 4294967295, %v10078_v36  ;;  %v1708_v58 = vsel %vm7182_vm6, %v1612_v38, -inf  ;;  %v1899_v34 = vmax.f32 %v1739_v15, %v1867_v31  ;;  %v1468_v3 = vld [vmem:[#allocation2 + $0xef] sm:$0xff]  ;;  %v1469_v16 = vld [vmem:[#allocation2 + $0xf7] sm:$0xff]  ;;  %v10081_v37 = vand.u32 15, %v10067_v22 }
 0x167   : > { %vm7330_vm9 = vcmp.le.s32.totalorder %v10068_v11, 14  ;;  %2106 = vst.msk [vmem:[#allocation3 + $0xe0] sm:$0xff] %vm10076_vm7, %v2074_v1  ;;  %v1931_v11 = vld [vmem:[#allocation2 + $0x6a] sm:$0xff]  ;;  %10080 = vst [vmem:[#allocation32_spill] sm:$0xff] %v10079_v36  ;;  %v10085_v63 = vand.u32 15, %v6618_v7  ;;  %v10086_v33 = vmov 0  ;;  %v1597_v31 = vmax.f32 %v1437_v43, %v1469_v16 }
 0x168   : > { %v10070_v13 = vsel %vm7330_vm9, 4294967295, %v10069_v13  ;;  %v2027_v1 = vsel %vm7188_vm13, %v1931_v11, -inf  ;;  %vm7356_vm7 = vcmp.le.s32.totalorder %v10081_v37, 13  ;;  %vm10089_vm4 = vcmask 15360   ;;  %v10090_v15 = vld [vmem:[#allocation25_spill] sm:$0xff]  ;;  %v1613_v22 = vld [vmem:[#allocation2 + $0x76] sm:$0xff] }
 0x169   : > { %10071 = vst [vmem:[#allocation27_spill] sm:$0xff] %v10070_v13  ;;  %v10083_v17 = vsel %vm7356_vm7, 4294967295, %v10082_v17  ;;  %vm7362_vm0 = vcmp.ge.s32.totalorder %v10085_v63, 1  ;;  %5832 = vmatmul.mubr.msk.f32.gmra.mxu0 %vm10089_vm4, %v7263_v53  ;;  %vm10091_vm13 = vnez %v10090_v15  ;;  %v7371_v38 = vld [vmem:[#allocation2 + $0x2a] sm:$0xff]  ;;  %v1740_v37 = vmax.f32 %v1580_v61, %v1708_v58  ;;  %v3285_v15 = vld [vmem:[#allocation2 + $0x22] sm:$0xff] }
 0x16a   : > { %10084 = vst [vmem:[#allocation11_spill] sm:$0xff] %v10083_v17  ;;  %v10087_v33 = vsel %vm7362_vm0, 4294967295, %v10086_v33  ;;  %v3222_v9 = vsel %vm10091_vm13, %v7312_v10, -inf  ;;  %v1564_v26 = vsel %vm7204_vm5, %v1468_v3, -inf  ;;  %v1628_v11 = vld [vmem:[#allocation2 + $0xee] sm:$0xff]  ;;  %v10092_v39 = vand.u32 15, %v6618_v7 }
 0x16b   : > { %10088 = vst [vmem:[#allocation10_spill] sm:$0xff] %v10087_v33  ;;  %v1787_v63 = vld [vmem:[#allocation2 + $0xe9] sm:$0xff]  ;;  %v10093_v25 = vmov 0  ;;  %v3253_v10 = vmax.f32 %v7324_v5, %v3189_v27  ;;  %v1741_v35 = vmax.f32 %v1581_v41, %v1613_v22  ;;  %v1772_v61 = vld [vmem:[#allocation2 + $0x71] sm:$0xff]  ;;  %v2059_v58 = vmax.f32 %v1899_v34, %v2027_v1  ;;  %v10097_v7 = vld [vmem:[#allocation12_spill] sm:$0xff] }
 0x16c   : > { %vm7377_vm6 = vcmp.ge.s32.totalorder %v10092_v39, 2  ;;  %v10096_v53 = vld [vmem:[#allocation17_spill] sm:$0xff]  ;;  %v1596_v48 = vmax.f32 %v1436_v4, %v1564_v26  ;;  %v1629_v3 = vld [vmem:[#allocation2 + $0xf6] sm:$0xff]  ;;  %v1883_v43 = vsel %vm7218_vm11, %v1787_v63, -inf  ;;  %v10098_v39 = vand.u32 15, %v10097_v7  ;;  %v1422_v7 = vld [vmem:[#allocation2 + $0x80] sm:$0xff] }
 0x16d   : > { %v10094_v25 = vsel %vm7377_vm6, 4294967295, %v10093_v25  ;;  %5834 = vmatprep.mubr.msk.f32.mxu0 %vm10089_vm4, %v10096_v53  ;;  %v1947_v16 = vld [vmem:[#allocation2 + $0xea] sm:$0xff]  ;;  %v10099_v56 = vmov 0  ;;  %v10103_v5 = vmov 0  ;;  %v10106_v41 = vand.u32 15, %v6806_v49  ;;  %v1932_v1 = vld [vmem:[#allocation2 + $0x72] sm:$0xff] }
 0x16e   : > { %10095 = vst [vmem:[#allocation75_spill] sm:$0xff] %v10094_v25  ;;  %vm7388_vm13 = vcmp.le.s32.totalorder %v10098_v39, 14  ;;  %v10102_v53 = vmov %v10098_v39  ;;  %v10107_v34 = vmov 0  ;;  %v1900_v27 = vmax.f32 %v1740_v37, %v1772_v61  ;;  %v1788_v26 = vld [vmem:[#allocation2 + $0xf1] sm:$0xff]  ;;  %v1454_v61 = vld [vmem:[#allocation2 + $0x7f] sm:$0xff]  ;;  %v1423_v44 = vld [vmem:[#allocation2 + $0x88] sm:$0xff] }
 0x16f   : > { %v10100_v56 = vsel %vm7388_vm13, 4294967295, %v10099_v56  ;;  %vm7394_vm4 = vcmp.le.s32.totalorder %v10102_v53, 13  ;;  %vm7400_vm5 = vcmp.ge.s32.totalorder %v10106_v41, 1  ;;  %v1724_v4 = vsel %vm7232_vm1, %v1628_v11, -inf  ;;  %v1614_v11 = vld [vmem:[#allocation2 + $0x7e] sm:$0xff]  ;;  %v1439_v0 = vld [vmem:[#allocation2 + $0x108] sm:$0xff] }
 0x170   : > { %10101 = vst [vmem:[#allocation17_spill] sm:$0xff] %v10100_v56  ;;  %v10104_v5 = vsel %vm7394_vm4, 4294967295, %v10103_v5  ;;  %v10108_v34 = vsel %vm7400_vm5, 4294967295, %v10107_v34  ;;  %v1757_v22 = vmax.f32 %v1597_v31, %v1629_v3  ;;  %v1915_v63 = vmax.f32 %v7314_v45, %v1883_v43 }
 0x171   : > { %10105 = vst [vmem:[#allocation12_spill] sm:$0xff] %v10104_v5  ;;  %10109 = vst [vmem:[#allocation76_spill] sm:$0xff] %v10108_v34  ;;  %v10110_v39 = vmov %v10106_v41  ;;  %v10111_v53 = vmov 0  ;;  %vm10114_vm4 = vcmask 15360   ;;  %v1756_v41 = vmax.f32 %v1596_v48, %v1724_v4  ;;  %v1948_v4 = vld [vmem:[#allocation2 + $0xf2] sm:$0xff] }
 0x172   : > { %vm7409_vm11 = vcmp.ge.s32.totalorder %v10110_v39, 2  ;;  %2091 = vst.msk [vmem:[#allocation3 + $0x68] sm:$0xff] %vm10114_vm4, %v2059_v58  ;;  %v2043_v37 = vsel %vm7243_vm2, %v1947_v16, -inf  ;;  %v10115_v31 = vand.u32 15, %v6803_v6  ;;  %v10116_v45 = vmov 0  ;;  %v10123_v58 = vld [vmem:[#allocation13_spill] sm:$0xff]  ;;  %vm10125_vm2 = vmmov %vm10114_vm4 }
 0x173   : > { %v10112_v53 = vsel %vm7409_vm11, 4294967295, %v10111_v53  ;;  %v10120_v3 = vmov 0  ;;  %5835 = vmatmul.mubr.msk.f32.gmra.mxu0 %vm10114_vm4, %v10123_v58  ;;  %v3254_v48 = vmax.f32 %v3158_v24, %v3222_v9  ;;  %v3349_v43 = vmax.f32 %v3253_v10, %v3285_v15  ;;  %v10126_v6 = vld [vmem:[#allocation29_spill] sm:$0xff]  ;;  %v1933_v9 = vld [vmem:[#allocation2 + $0x7a] sm:$0xff]  ;;  %vm10128_vm4 = vmmov %vm10125_vm2 }
 0x174   : > { %10113 = vst [vmem:[#allocation77_spill] sm:$0xff] %v10112_v53  ;;  %vm7418_vm1 = vcmp.le.s32.totalorder %v10115_v31, 14  ;;  %v10119_v49 = vmov %v10115_v31  ;;  %v2060_v16 = vmax.f32 %v1900_v27, %v1932_v1  ;;  %v2075_v39 = vmax.f32 %v1915_v63, %v2043_v37  ;;  %5837 = vmatprep.mubr.msk.f32.mxu0 %vm10125_vm2, %v10124_v14  ;;  %v1438_v10 = vld [vmem:[#allocation2 + $0x100] sm:$0xff] }
 0x175   : > { %v10117_v45 = vsel %vm7418_vm1, 4294967295, %v10116_v45  ;;  %vm7424_vm5 = vcmp.le.s32.totalorder %v10119_v49, 13  ;;  %v1550_v31 = vsel %vm7258_vm14, %v1454_v61, -inf  ;;  %vm10127_vm1 = vnez %v10126_v6  ;;  %3381 = vst.msk [vmem:[#allocation3 + $0x20] sm:$0xff] %vm10128_vm4, %v3349_v43  ;;  %vm10129_vm14 = vmmov %vm10125_vm2  ;;  %v1470_v1 = vld [vmem:[#allocation2 + $0xff] sm:$0xff] }
 0x176   : > { %10118 = vst [vmem:[#allocation78_spill] sm:$0xff] %v10117_v45  ;;  %v10121_v3 = vsel %vm7424_vm5, 4294967295, %v10120_v3  ;;  %v3318_v49 = vsel %vm10127_vm1, %v7371_v38, -inf  ;;  %v1916_v59 = vmax.f32 %v1756_v41, %v1788_v26  ;;  %v1582_v58 = vmax.f32 %v1422_v7, %v1550_v31  ;;  %2092 = vst.msk [vmem:[#allocation3 + $0x70] sm:$0xff] %vm10129_vm14, %v2060_v16  ;;  %v1615_v63 = vld [vmem:[#allocation2 + $0x86] sm:$0xff]  ;;  %v1789_v61 = vld [vmem:[#allocation2 + $0xf9] sm:$0xff] }
 0x177   : > { %10122 = vst [vmem:[#allocation79_spill] sm:$0xff] %v10121_v3  ;;  %v1583_v24 = vmax.f32 %v1423_v44, %v1455_v57  ;;  %v1869_v15 = vsel %vm7271_vm8, %v1773_v42, -inf  ;;  %vm10130_vm5 = vmmov %vm10125_vm2  ;;  %v1710_v14 = vsel %vm7293_vm10, %v1614_v11, -inf  ;;  %v2029_v38 = vsel %vm7299_vm12, %v1933_v9, -inf  ;;  %v1471_v57 = vld [vmem:[#allocation2 + $0x107] sm:$0xff]  ;;  %v1630_v44 = vld [vmem:[#allocation2 + $0xfe] sm:$0xff] }
 0x178   : > { %2107 = vst.msk [vmem:[#allocation3 + $0xe8] sm:$0xff] %vm10130_vm5, %v2075_v39  ;;  %v1901_v27 = vmax.f32 %v1741_v35, %v1869_v15  ;;  %v3350_v26 = vmax.f32 %v3254_v48, %v3318_v49  ;;  %v2076_v42 = vmax.f32 %v1916_v59, %v1948_v4  ;;  %v1742_v7 = vmax.f32 %v1582_v58, %v1710_v14  ;;  %v10132_v43 = vld [vmem:[#allocation20_spill] sm:$0xff]  ;;  %vm10133_vm5 = vmmov %vm10128_vm4  ;;  %v10134_v48 = vld [vmem:[#allocation35_spill] sm:$0xff] }
 0x179   : > { %vm10131_vm2 = vnez %v10065_v51  ;;  %v1599_v37 = vmax.f32 %v1439_v0, %v1471_v57  ;;  %5838 = vmatmul.mubr.msk.f32.gmra.mxu0 %vm10133_vm5, %v10132_v43  ;;  %v1774_v11 = vld [vmem:[#allocation2 + $0x81] sm:$0xff]  ;;  %v1885_v31 = vsel %vm7330_vm9, %v1789_v61, -inf  ;;  %vm10135_vm14 = vmmov %vm10128_vm4  ;;  %v10136_v59 = vsel %vm10075_vm3, %v7284_v28, -inf  ;;  %v1424_v43 = vld [vmem:[#allocation2 + $0x90] sm:$0xff] }
 0x17a   : > { %v1566_v41 = vsel %vm10131_vm2, %v1470_v1, -inf  ;;  %v2061_v35 = vmax.f32 %v1901_v27, %v2029_v38  ;;  %v1631_v39 = vld [vmem:[#allocation2 + $0x106] sm:$0xff]  ;;  %v1949_v15 = vld [vmem:[#allocation2 + $0xfa] sm:$0xff]  ;;  %5840 = vmatprep.mubr.msk.f32.mxu0 %vm10135_vm14, %v10134_v48  ;;  %v7459_v0 = vmax.f32 %v7336_v32, %v10136_v59  ;;  %3382 = vst.msk [vmem:[#allocation3 + $0x28] sm:$0xff] %vm10128_vm4, %v3350_v26  ;;  %vm10137_vm5 = vmmov %vm10128_vm4  ;;  %v1743_v4 = vmax.f32 %v1583_v24, %v1615_v63 }
 0x17b   : > { %v1598_v16 = vmax.f32 %v1438_v10, %v1566_v41  ;;  %2108 = vst.msk [vmem:[#allocation3 + $0xf0] sm:$0xff] %vm10137_vm5, %v2076_v42  ;;  %v1902_v49 = vmax.f32 %v1742_v7, %v1774_v11  ;;  %v1726_v58 = vsel %vm7346_vm15, %v1630_v44, -inf  ;;  %v1917_v9 = vmax.f32 %v1757_v22, %v1885_v31  ;;  %v1458_v10 = vld [vmem:[#allocation2 + $0x9f] sm:$0xff]  ;;  %vm10138_vm14 = vmmov %vm10128_vm4  ;;  %v6096_v42 = vpop.eup %6095  ;;  %v1456_v11 = vld [vmem:[#allocation2 + $0x8f] sm:$0xff] }
 0x17c   : > { %v1618_v14 = vld [vmem:[#allocation2 + $0x9e] sm:$0xff]  ;;  %2093 = vst.msk [vmem:[#allocation3 + $0x78] sm:$0xff] %vm10138_vm14, %v2061_v35  ;;  %v7468_v32 = vmax.f32 %v1599_v37, %v1631_v39  ;;  %v2045_v57 = vsel %vm7356_vm7, %v1949_v15, -inf  ;;  %v1554_v24 = vsel %vm7362_vm0, %v1458_v10, -inf  ;;  %v10139_v22 = vand.u32 15, %v6694_v52  ;;  %v1616_v10 = vld [vmem:[#allocation2 + $0x8e] sm:$0xff] }
 0x17d   : > { %v7465_v27 = vld [vmem:[#allocation2 + $0x99] sm:$0xff]  ;;  %v1934_v1 = vld [vmem:[#allocation2 + $0x82] sm:$0xff]  ;;  %v1758_v28 = vmax.f32 %v1598_v16, %v1726_v58  ;;  %v10140_v44 = vmov 0  ;;  %v2077_v41 = vmax.f32 %v1917_v9, %v2045_v57  ;;  %v1714_v61 = vsel %vm7377_vm6, %v1618_v14, -inf  ;;  %v10150_v14 = vld [vmem:[#allocation42_spill] sm:$0xff] }
 0x17e   : > { %v1426_v38 = vld [vmem:[#allocation2 + $0xa0] sm:$0xff]  ;;  %vm7478_vm4 = vcmp.le.s32.totalorder %v10139_v22, 14  ;;  %v2062_v63 = vmax.f32 %v1902_v49, %v1934_v1  ;;  %v10143_v35 = vld [vmem:[#allocation31_spill] sm:$0xff]  ;;  %v1873_v15 = vsel %vm7388_vm13, %v7465_v27, -inf  ;;  %vm10144_vm14 = vnez %v10104_v5  ;;  %v1775_v57 = vld [vmem:[#allocation2 + $0x89] sm:$0xff] }
 0x17f   : > { %v7474_v26 = vld [vmem:[#allocation2 + $0x9a] sm:$0xff]  ;;  %v10141_v44 = vsel %vm7478_vm4, 4294967295, %v10140_v44  ;;  %v1586_v37 = vmax.f32 %v1426_v38, %v1554_v24  ;;  %5841 = vmatmul.mubr.msk.f32.gmra.mxu0 %vm10137_vm5, %v10143_v35  ;;  %v10145_v59 = vmov %v10139_v22  ;;  %v10146_v49 = vmov 0  ;;  %v1950_v27 = vld [vmem:[#allocation2 + $0x102] sm:$0xff]  ;;  %v1935_v24 = vld [vmem:[#allocation2 + $0x8a] sm:$0xff] }
 0x180   : > { %10142 = vst [vmem:[#allocation13_spill] sm:$0xff] %v10141_v44  ;;  %v1790_v7 = vld [vmem:[#allocation2 + $0x101] sm:$0xff]  ;;  %v1425_v31 = vld [vmem:[#allocation2 + $0x98] sm:$0xff]  ;;  %v2033_v48 = vsel %vm10144_vm14, %v7474_v26, -inf  ;;  %vm7494_vm1 = vcmp.le.s32.totalorder %v10145_v59, 13  ;;  %vm10149_vm5 = vnez %v10108_v34  ;;  %vm10151_vm3 = vcmask 15360  }
 0x181   : > { %v1778_v16 = vld [vmem:[#allocation2 + $0xa1] sm:$0xff]  ;;  %v1918_v39 = vmax.f32 %v1758_v28, %v1790_v7  ;;  %v10147_v49 = vsel %vm7494_vm1, 4294967295, %v10146_v49  ;;  %v1457_v58 = vld [vmem:[#allocation2 + $0x97] sm:$0xff]  ;;  %v1552_v9 = vsel %vm10149_vm5, %v1456_v11, -inf  ;;  %5843 = vmatprep.mubr.msk.f32.mxu0 %vm10151_vm3, %v10150_v14  ;;  %vm10152_vm6 = vmmov %vm10151_vm3  ;;  %v1746_v38 = vmax.f32 %v1586_v37, %v1714_v61 }
 0x182   : > { %10148 = vst [vmem:[#allocation26_spill] sm:$0xff] %v10147_v49  ;;  %2094 = vst.msk [vmem:[#allocation3 + $0x80] sm:$0xff] %vm10152_vm6, %v2062_v63  ;;  %v1584_v1 = vmax.f32 %v1424_v43, %v1552_v9  ;;  %v1585_v52 = vmax.f32 %v1425_v31, %v1457_v58  ;;  %v1712_v28 = vsel %vm7409_vm11, %v1616_v10, -inf  ;;  %v10154_v26 = vand.u32 15, %v6968_v47  ;;  %v1617_v11 = vld [vmem:[#allocation2 + $0x96] sm:$0xff]  ;;  %v7533_v59 = vld [vmem:[#allocation3 + $0x60] sm:$0xff] }
 0x183   : > { %vm10153_vm0 = vmmov %vm10151_vm3  ;;  %v10155_v22 = vmov 0  ;;  %v2078_v7 = vmax.f32 %v1918_v39, %v1950_v27  ;;  %vm10158_vm6 = vnez %v10117_v45  ;;  %vm10159_vm3 = vnez %v10121_v3  ;;  %v7531_v31 = vld [vmem:[#allocation3 + $0x58] sm:$0xff]  ;;  %v7535_v14 = vld [vmem:[#allocation3 + $0x68] sm:$0xff] }
 0x184   : > { %2109 = vst.msk [vmem:[#allocation3 + $0xf8] sm:$0xff] %vm10153_vm0, %v2077_v41  ;;  %vm7508_vm14 = vcmp.ge.s32.totalorder %v10154_v26, 1  ;;  %v1871_v63 = vsel %vm10158_vm6, %v1775_v57, -inf  ;;  %v2031_v41 = vsel %vm10159_vm3, %v1935_v24, -inf  ;;  %v10160_v37 = vmov %v10154_v26  ;;  %v10168_v27 = vld [vmem:[#allocation38_spill] sm:$0xff]  ;;  %v1938_v24 = vld [vmem:[#allocation2 + $0xa2] sm:$0xff] }
 0x185   : > { %v10156_v22 = vsel %vm7508_vm14, 4294967295, %v10155_v22  ;;  %vm7518_vm0 = vcmp.ge.s32.totalorder %v10160_v37, 2  ;;  %v10161_v61 = vmov 0  ;;  %v10164_v43 = vand.u32 15, %v6956_v8  ;;  %v7539_v57 = vld [vmem:[#allocation3 + $0x70] sm:$0xff] }
 0x186   : > { %10157 = vst [vmem:[#allocation20_spill] sm:$0xff] %v10156_v22  ;;  %v10162_v61 = vsel %vm7518_vm0, 4294967295, %v10161_v61  ;;  %v10165_v35 = vmov 0  ;;  %v7529_v39 = vmul.f32 %v6096_v42, %v6997_v46  ;;  %v1906_v58 = vmax.f32 %v1746_v38, %v1778_v16  ;;  %v1776_v46 = vld [vmem:[#allocation2 + $0x91] sm:$0xff] }
 0x187   : > { %10163 = vst [vmem:[#allocation35_spill] sm:$0xff] %v10162_v61  ;;  %vm7524_vm12 = vcmp.le.s32.totalorder %v10164_v43, 14  ;;  %v1744_v9 = vmax.f32 %v1584_v1, %v1712_v28  ;;  %v1745_v47 = vmax.f32 %v1585_v52, %v1617_v11  ;;  %v1903_v10 = vmax.f32 %v1743_v4, %v1871_v63  ;;  %v7560_v63 = vld [vmem:[#allocation2 + $0x119] sm:$0xff]  ;;  %v10273_v5 = vld [vmem:[#allocation18_spill] sm:$0xff] }
 0x188   : > { %v10166_v35 = vsel %vm7524_vm12, 4294967295, %v10165_v35  ;;  %vm10169_vm3 = vcmask 15360   ;;  %v10172_v42 = vmax.f32 %v7088_v30, %v7036_v2  ;;  %v10173_v4 = vmax.f32 %v7092_v18, %v7068_v40  ;;  %v7558_v30 = vld [vmem:[#allocation3 + $0x78] sm:$0xff] }
 0x189   : > { %10167 = vst [vmem:[#allocation31_spill] sm:$0xff] %v10166_v35  ;;  %5844 = vmatmul.mubr.msk.f32.gmra.mxu0 %vm10169_vm3, %v10168_v27  ;;  %vm10170_vm13 = vmmov %vm10169_vm3  ;;  %v2221_v1 = vmax.f32 %v7136_v50, %v7531_v31  ;;  %v2222_v52 = vmax.f32 %v7150_v21, %v7533_v59  ;;  %v2066_v28 = vmax.f32 %v1906_v58, %v1938_v24  ;;  %v1936_v37 = vld [vmem:[#allocation2 + $0x92] sm:$0xff]  ;;  %v10178_v58 = vand.u32 15, %v6956_v8 }
 0x18a   : > { %2110 = vst.msk [vmem:[#allocation3 + $0x100] sm:$0xff] %vm10170_vm13, %v2078_v7  ;;  %vm10171_vm6 = vmmov %vm10169_vm3  ;;  %v2253_v16 = vmax.f32 %v10172_v42, %v7531_v31  ;;  %v2254_v38 = vmax.f32 %v10173_v4, %v7533_v59  ;;  %5846 = vmatprep.mubr.msk.f32.mxu0 %vm10169_vm3, %v7034_v55  ;;  %v1904_v26 = vmax.f32 %v1744_v9, %v1776_v46  ;;  %v10179_v9 = vmov 0  ;;  %v7602_v46 = vld [vmem:[#allocation3 + $0xe8] sm:$0xff] }
 0x18b   : > { %1408 = vst.msk [vmem:[#allocation2 + $0x110] sm:$0xff] %vm10171_vm6, %v7529_v39  ;;  %v1905_v7 = vmax.f32 %v1745_v47, %v1873_v15  ;;  %v2063_v11 = vmax.f32 %v1903_v10, %v2031_v41  ;;  %vm10174_vm13 = vmmov %vm10169_vm3  ;;  %v2255_v55 = vmax.f32 %v2221_v1, %v7535_v14  ;;  %v2256_v18 = vmax.f32 %v2222_v52, %v7539_v57  ;;  %v7571_v15 = vld [vmem:[#allocation3 + $0xd8] sm:$0xff]  ;;  %v7595_v10 = vld [vmem:[#allocation3 + $0x80] sm:$0xff] }
 0x18c   : > { %5764 = vmatmul.mubr.msk.f32.gmra.mxu1 %vm10174_vm13, %v2253_v16  ;;  %vm10175_vm6 = vmmov %vm10169_vm3  ;;  %v2157_v21 = vmax.f32 %v7531_v31, %v7001_v54  ;;  %v2158_v50 = vmax.f32 %v7533_v59, %v7006_v29  ;;  %2098 = vst.msk [vmem:[#allocation3 + $0xa0] sm:$0xff] %vm10169_vm3, %v2066_v28  ;;  %v2064_v41 = vmax.f32 %v1904_v26, %v1936_v37  ;;  %v7586_v29 = vld [vmem:[#allocation3 + $0xe0] sm:$0xff]  ;;  %v1889_v42 = vsel %vm7478_vm4, %v7560_v63, -inf  ;;  %v7618_v26 = vld [vmem:[#allocation3 + $0xf0] sm:$0xff] }
 0x18d   : > { %2936 = vst.msk [vmem:[#allocation2 + $0x38] sm:$0xff] %vm10175_vm6, %v2253_v16  ;;  %vm10176_vm8 = vmmov %vm10169_vm3  ;;  %v2065_v43 = vmax.f32 %v1905_v7, %v2033_v48  ;;  %v2159_v54 = vmax.f32 %v7535_v14, %v7036_v2  ;;  %v7588_v47 = vld [vmem:[#allocation2 + $0x11a] sm:$0xff]  ;;  %v2160_v27 = vmax.f32 %v7539_v57, %v7068_v40  ;;  %v2161_v24 = vmax.f32 %v7558_v30, %v7531_v31 }
 0x18e   : > { %2937 = vst.msk [vmem:[#allocation2 + $0x40] sm:$0xff] %vm10176_vm8, %v2254_v38  ;;  %vm10177_vm13 = vmmov %vm10169_vm3  ;;  %vm7577_vm8 = vcmp.le.s32.totalorder %v10178_v58, 13  ;;  %v2189_v8 = vmax.f32 %v2157_v21, %v7036_v2  ;;  %v10185_v48 = vld [vmem:[#allocation15_spill] sm:$0xff]  ;;  %v2162_v16 = vmax.f32 %v7595_v10, %v7533_v59 }
 0x18f   : > { %2095 = vst.msk [vmem:[#allocation3 + $0x88] sm:$0xff] %vm10177_vm13, %v2063_v11  ;;  %v10180_v9 = vsel %vm7577_vm8, 4294967295, %v10179_v9  ;;  %vm10182_vm6 = vmmov %vm10169_vm3  ;;  %v2191_v2 = vmax.f32 %v2159_v54, %v7531_v31  ;;  %v2192_v28 = vmax.f32 %v2160_v27, %v7533_v59  ;;  %v10191_v7 = vld [vmem:[#allocation71_spill] sm:$0xff]  ;;  %v2049_v11 = vsel %vm7494_vm1, %v7588_v47, -inf }
 0x190   : > { %10181 = vst [vmem:[#allocation42_spill] sm:$0xff] %v10180_v9  ;;  %5766 = vmatprep.mubr.msk.f32.mxu1 %vm10182_vm6, %v2254_v38  ;;  %vm10183_vm11 = vmmov %vm10169_vm3  ;;  %v1441_v38 = vld [vmem:[#allocation2 + $0x118] sm:$0xff]  ;;  %v2223_v1 = vmax.f32 %v2189_v8, %v7535_v14  ;;  %v2238_v31 = vmax.f32 %v10191_v7, %v7586_v29  ;;  %v2193_v59 = vmax.f32 %v2161_v24, %v7535_v14  ;;  %v10362_v9 = vld [vmem:[#allocation60_spill] sm:$0xff] }
 0x191   : > { %5847 = vmatmul.mubr.msk.f32.gmra.mxu0 %vm10183_vm11, %v6976_v23  ;;  %2938 = vst.msk [vmem:[#allocation2 + $0x48] sm:$0xff] %vm10169_vm3, %v2255_v55  ;;  %vm10184_vm13 = vmmov %vm10169_vm3  ;;  %v2190_v23 = vmax.f32 %v2158_v50, %v7068_v40  ;;  %v10189_v40 = vld [vmem:[#allocation70_spill] sm:$0xff]  ;;  %v10192_v50 = vld [vmem:[#allocation68_spill] sm:$0xff] }
 0x192   : > { %2939 = vst.msk [vmem:[#allocation2 + $0x50] sm:$0xff] %vm10184_vm13, %v2256_v18  ;;  %vm10186_vm10 = vmmov %vm10169_vm3  ;;  %v2237_v4 = vmax.f32 %v10189_v40, %v7571_v15  ;;  %v1440_v63 = vld [vmem:[#allocation2 + $0x110] sm:$0xff] }
 0x193   : > { %5849 = vmatprep.mubr.msk.f32.mxu0 %vm10186_vm10, %v10185_v48  ;;  %vm10187_vm11 = vmmov %vm10169_vm3  ;;  %v2224_v52 = vmax.f32 %v2190_v23, %v7539_v57  ;;  %v1472_v37 = vld [vmem:[#allocation2 + $0x10f] sm:$0xff]  ;;  %v1473_v21 = vld [vmem:[#allocation2 + $0x117] sm:$0xff]  ;;  %v2257_v48 = vmax.f32 %v2223_v1, %v7558_v30 }
 0x194   : > { %2096 = vst.msk [vmem:[#allocation3 + $0x90] sm:$0xff] %vm10187_vm11, %v2064_v41  ;;  %vm10188_vm6 = vmmov %vm10169_vm3  ;;  %v7631_v41 = vmax.f32 %v2237_v4, %v7602_v46  ;;  %v1601_v58 = vmax.f32 %v1441_v38, %v1473_v21  ;;  %v1632_v54 = vld [vmem:[#allocation2 + $0x10e] sm:$0xff]  ;;  %v2194_v38 = vmax.f32 %v2162_v16, %v7539_v57  ;;  %v7652_v21 = vmax.f32 %v2238_v31, %v7618_v26 }
 0x195   : > { %2097 = vst.msk [vmem:[#allocation3 + $0x98] sm:$0xff] %vm10188_vm6, %v2065_v43  ;;  %vm10190_vm10 = vmmov %vm10169_vm3  ;;  %v1568_v43 = vsel %vm7508_vm14, %v1472_v37, -inf  ;;  %v1791_v8 = vld [vmem:[#allocation2 + $0x109] sm:$0xff]  ;;  %v1728_v24 = vsel %vm7518_vm0, %v1632_v54, -inf  ;;  %v2130_v37 = vld [vmem:[#allocation3 + $0xa0] sm:$0xff] }
 0x196   : > { %5767 = vmatmul.mubr.msk.f32.gmra.mxu1 %vm10190_vm10, %v2255_v55  ;;  %v2225_v55 = vmax.f32 %v2191_v2, %v7558_v30  ;;  %vm10193_vm13 = vmmov %vm10169_vm3  ;;  %v10194_v23 = vld [vmem:[#allocation21_spill] sm:$0xff]  ;;  %v1600_v27 = vmax.f32 %v1440_v63, %v1568_v43  ;;  %v1633_v2 = vld [vmem:[#allocation2 + $0x116] sm:$0xff]  ;;  %v1887_v40 = vsel %vm7524_vm12, %v1791_v8, -inf  ;;  %2940 = vst.msk [vmem:[#allocation2 + $0x58] sm:$0xff] %vm10169_vm3, %v2257_v48  ;;  %v2226_v63 = vmax.f32 %v2192_v28, %v7595_v10 }
 0x197   : > { %5769 = vmatprep.mubr.msk.f32.mxu1 %vm10169_vm3, %v2256_v18  ;;  %5850 = vmatmul.mubr.msk.f32.gmra.mxu0 %vm10193_vm13, %v10192_v50  ;;  %v2258_v18 = vmax.f32 %v2224_v52, %v7595_v10  ;;  %vm10195_vm11 = vmmov %vm10169_vm3  ;;  %v1951_v4 = vld [vmem:[#allocation2 + $0x10a] sm:$0xff]  ;;  %v1761_v1 = vmax.f32 %v1601_v58, %v1633_v2  ;;  %v1919_v52 = vmax.f32 %v7468_v32, %v1887_v40  ;;  %v10200_v58 = vld [vmem:[#allocation19_spill] sm:$0xff] }
 0x198   : > { %5852 = vmatprep.mubr.msk.f32.mxu0 %vm10195_vm11, %v10194_v23  ;;  %vm10196_vm6 = vmmov %vm10169_vm3  ;;  %v2127_v7 = vld [vmem:[#allocation3 + $0x88] sm:$0xff]  ;;  %v1760_v16 = vmax.f32 %v1600_v27, %v1728_v24  ;;  %v2047_v50 = vsel %vm7577_vm8, %v1951_v4, -inf  ;;  %v1792_v54 = vld [vmem:[#allocation2 + $0x111] sm:$0xff]  ;;  %v2166_v27 = vmax.f32 %v2130_v37, %v7595_v10  ;;  %2955 = vst.msk [vmem:[#allocation2 + $0xd0] sm:$0xff] %vm10169_vm3, %v7652_v21 }
 0x199   : > { %2954 = vst.msk [vmem:[#allocation2 + $0xc8] sm:$0xff] %vm10196_vm6, %v7631_v41  ;;  %vm10197_vm10 = vmmov %vm10169_vm3  ;;  %v2259_v32 = vmax.f32 %v2225_v55, %v2127_v7  ;;  %v2227_v43 = vmax.f32 %v2193_v59, %v2127_v7  ;;  %v7659_v8 = vmax.f32 %v1761_v1, %v1889_v42  ;;  %v2163_v31 = vmax.f32 %v2127_v7, %v7535_v14  ;;  %v7668_v2 = vld [vmem:[#allocation2 + $0x3f] sm:$0xff]  ;;  %v1952_v24 = vld [vmem:[#allocation2 + $0x112] sm:$0xff] }
 0x19a   : > { %5770 = vmatmul.mubr.msk.f32.gmra.mxu1 %vm10197_vm10, %v2257_v48  ;;  %vm10198_vm13 = vmmov %vm10169_vm3  ;;  %v2079_v48 = vmax.f32 %v1919_v52, %v2047_v50  ;;  %v1920_v55 = vmax.f32 %v1760_v16, %v1792_v54  ;;  %v10208_v52 = vld [vmem:[#allocation9_spill] sm:$0xff]  ;;  %v3288_v6 = vld [vmem:[#allocation2 + $0x3a] sm:$0xff] }
 0x19b   : > { %2941 = vst.msk [vmem:[#allocation2 + $0x60] sm:$0xff] %vm10198_vm13, %v2258_v18  ;;  %vm10199_vm11 = vmmov %vm10169_vm3  ;;  %v2128_v28 = vld [vmem:[#allocation3 + $0x90] sm:$0xff]  ;;  %v10211_v50 = vld [vmem:[#allocation37_spill] sm:$0xff] }
 0x19c   : > { %5772 = vmatprep.mubr.msk.f32.mxu1 %vm10199_vm11, %v2258_v18  ;;  %vm10201_vm6 = vmmov %vm10169_vm3  ;;  %v2129_v23 = vld [vmem:[#allocation3 + $0x98] sm:$0xff]  ;;  %v2260_v59 = vmax.f32 %v2226_v63, %v2128_v28  ;;  %v2228_v42 = vmax.f32 %v2194_v38, %v2128_v28  ;;  %v2164_v14 = vmax.f32 %v2128_v28, %v7539_v57  ;;  %v2198_v4 = vmax.f32 %v2166_v27, %v2128_v28  ;;  %v10210_v63 = vld [vmem:[#allocation64_spill] sm:$0xff] }
 0x19d   : > { %5853 = vmatmul.mubr.msk.f32.gmra.mxu0 %vm10201_vm6, %v10200_v58  ;;  %vm10202_vm10 = vmmov %vm10169_vm3  ;;  %v2261_v18 = vmax.f32 %v2227_v43, %v2129_v23  ;;  %v2165_v40 = vmax.f32 %v2129_v23, %v7558_v30  ;;  %v2080_v1 = vmax.f32 %v1920_v55, %v1952_v24  ;;  %v2167_v16 = vmax.f32 %v10210_v63, %v2127_v7  ;;  %v10213_v58 = vld [vmem:[#allocation65_spill] sm:$0xff]  ;;  %v10216_v27 = vld [vmem:[#allocation67_spill] sm:$0xff] }
 0x19e   : > { %5855 = vmatprep.mubr.msk.f32.mxu0 %vm10202_vm10, %v7529_v39  ;;  %vm10203_vm13 = vmmov %vm10169_vm3  ;;  %v2195_v39 = vmax.f32 %v2163_v31, %v7558_v30  ;;  %2943 = vst.msk [vmem:[#allocation2 + $0x70] sm:$0xff] %vm10169_vm3, %v2260_v59  ;;  %v2262_v38 = vmax.f32 %v2228_v42, %v2130_v37  ;;  %v2196_v30 = vmax.f32 %v2164_v14, %v7595_v10  ;;  %v3290_v19 = vld [vmem:[#allocation2 + $0x4a] sm:$0xff] }
 0x19f   : > { %2942 = vst.msk [vmem:[#allocation2 + $0x68] sm:$0xff] %vm10203_vm13, %v2259_v32  ;;  %vm10204_vm11 = vmmov %vm10169_vm3  ;;  %v2197_v43 = vmax.f32 %v2165_v40, %v2127_v7  ;;  %v2232_v54 = vmax.f32 %v2198_v4, %v10213_v58  ;;  %v2168_v31 = vmax.f32 %v10213_v58, %v2128_v28  ;;  %v2169_v55 = vmax.f32 %v10216_v27, %v2129_v23 }
 0x1a0   : > { %2111 = vst.msk [vmem:[#allocation3 + $0x108] sm:$0xff] %vm10204_vm11, %v2079_v48  ;;  %vm10205_vm6 = vmmov %vm10169_vm3  ;;  %vm10212_vm11 = vnez %v10211_v50  ;;  %v2199_v48 = vmax.f32 %v2167_v16, %v2129_v23  ;;  %v3191_v50 = vld [vmem:[#allocation2 + $0x31] sm:$0xff] }
 0x1a1   : > { %5773 = vmatmul.mubr.msk.f32.gmra.mxu1 %vm10205_vm6, %v2259_v32  ;;  %vm10206_vm10 = vmmov %vm10169_vm3  ;;  %v3033_v57 = vsel %vm10212_vm11, %v7668_v2, -inf  ;;  %v2229_v32 = vmax.f32 %v2195_v39, %v2129_v23  ;;  %v2230_v39 = vmax.f32 %v2196_v30, %v2130_v37  ;;  %v2231_v10 = vmax.f32 %v2197_v43, %v10210_v63  ;;  %v7716_v43 = vld [vmem:[#allocation3 + $0xf8] sm:$0xff]  ;;  %v3098_v2 = vld [vmem:[#allocation2 + $0x46] sm:$0xff] }
 0x1a2   : > { %5775 = vmatprep.mubr.msk.f32.mxu1 %vm10206_vm10, %v2260_v59  ;;  %vm10207_vm13 = vmmov %vm10169_vm3  ;;  %v10217_v59 = vld [vmem:[#allocation69_spill] sm:$0xff]  ;;  %v2233_v14 = vmax.f32 %v2199_v48, %v10216_v27  ;;  %v2200_v40 = vmax.f32 %v2168_v31, %v2130_v37  ;;  %v2201_v28 = vmax.f32 %v2169_v55, %v10210_v63  ;;  %v2177_v47 = vmax.f32 %v7716_v43, %v7571_v15 }
 0x1a3   : > { %2944 = vst.msk [vmem:[#allocation2 + $0x78] sm:$0xff] %vm10207_vm13, %v2261_v18  ;;  %vm10209_vm4 = vmmov %vm10169_vm3  ;;  %v2170_v42 = vmax.f32 %v10217_v59, %v2130_v37  ;;  %v2263_v24 = vmax.f32 %v2229_v32, %v10210_v63  ;;  %v2266_v7 = vmax.f32 %v2232_v54, %v10217_v59  ;;  %v2265_v4 = vmax.f32 %v2231_v10, %v10216_v27  ;;  %v10222_v32 = vld [vmem:[#allocation66_spill] sm:$0xff]  ;;  %v2142_v54 = vld [vmem:[#allocation3 + $0x100] sm:$0xff] }
 0x1a4   : > { %5856 = vmatmul.mubr.msk.f32.gmra.mxu0 %vm10209_vm4, %v10208_v52  ;;  %vm10214_vm6 = vmmov %vm10169_vm3  ;;  %v10221_v52 = vld [vmem:[#allocation61_spill] sm:$0xff]  ;;  %v2234_v63 = vmax.f32 %v2200_v40, %v10217_v59  ;;  %v2176_v55 = vmax.f32 %v7618_v26, %v10222_v32 }
 0x1a5   : > { %2112 = vst.msk [vmem:[#allocation3 + $0x110] sm:$0xff] %vm10214_vm6, %v2080_v1  ;;  %vm10215_vm10 = vmmov %vm10169_vm3  ;;  %v2202_v23 = vmax.f32 %v2170_v42, %v10213_v58  ;;  %v2173_v1 = vmax.f32 %v7571_v15, %v10216_v27  ;;  %v7708_v37 = vmax.f32 %v2233_v14, %v10221_v52  ;;  %v2235_v16 = vmax.f32 %v2201_v28, %v10221_v52 }
 0x1a6   : > { %2945 = vst.msk [vmem:[#allocation2 + $0x80] sm:$0xff] %vm10215_vm10, %v2262_v38  ;;  %vm10218_vm4 = vmmov %vm10169_vm3  ;;  %v2175_v27 = vmax.f32 %v7602_v46, %v10221_v52 }
 0x1a7   : > { %5776 = vmatmul.mubr.msk.f32.gmra.mxu1 %vm10218_vm4, %v2261_v18  ;;  %vm10219_vm13 = vmmov %vm10169_vm3  ;;  %v2264_v18 = vmax.f32 %v2230_v39, %v10213_v58  ;;  %v2236_v30 = vmax.f32 %v2202_v23, %v10222_v32  ;;  %2948 = vst.msk [vmem:[#allocation2 + $0x98] sm:$0xff] %vm10169_vm3, %v2265_v4  ;;  %v2205_v58 = vmax.f32 %v2173_v1, %v10221_v52  ;;  %v7720_v31 = vld [vmem:[#allocation3 + $0x108] sm:$0xff]  ;;  %v2968_v1 = vld [vmem:[#allocation2 + $0x38] sm:$0xff] }
 0x1a8   : > { %5778 = vmatprep.mubr.msk.f32.mxu1 %vm10169_vm3, %v2262_v38  ;;  %2946 = vst.msk [vmem:[#allocation2 + $0x88] sm:$0xff] %vm10219_vm13, %v2263_v24  ;;  %vm10220_vm6 = vmmov %vm10169_vm3  ;;  %v2174_v38 = vmax.f32 %v7586_v29, %v10217_v59  ;;  %v2268_v59 = vmax.f32 %v2234_v63, %v10222_v32  ;;  %v7731_v42 = vmax.f32 %v2235_v16, %v7571_v15  ;;  %v3000_v52 = vld [vmem:[#allocation2 + $0x37] sm:$0xff] }
 0x1a9   : > { %2949 = vst.msk [vmem:[#allocation2 + $0xa0] sm:$0xff] %vm10220_vm6, %v2266_v7  ;;  %vm10223_vm10 = vmmov %vm10169_vm3  ;;  %v2081_v39 = vmax.f32 %v7659_v8, %v2049_v11  ;;  %v2239_v10 = vmax.f32 %v2205_v58, %v7602_v46  ;;  %v2207_v40 = vmax.f32 %v2175_v27, %v7571_v15  ;;  %v2208_v23 = vmax.f32 %v2176_v55, %v7586_v29  ;;  %v3097_v55 = vld [vmem:[#allocation2 + $0x3e] sm:$0xff] }
 0x1aa   : > { %vm10224_vm4 = vmmov %vm10169_vm3  ;;  %v2206_v48 = vmax.f32 %v2174_v38, %v10222_v32  ;;  %v2178_v11 = vmax.f32 %v2142_v54, %v7586_v29  ;;  %v2179_v8 = vmax.f32 %v7720_v31, %v7602_v46  ;;  %v2969_v38 = vld [vmem:[#allocation2 + $0x40] sm:$0xff]  ;;  %v2209_v58 = vmax.f32 %v2177_v47, %v7602_v46 }
 0x1ab   : > { %5779 = vmatmul.mubr.msk.f32.gmra.mxu1 %vm10223_vm10, %v2263_v24  ;;  %2947 = vst.msk [vmem:[#allocation2 + $0x90] sm:$0xff] %vm10224_vm4, %v2264_v18  ;;  %vm10225_vm13 = vmmov %vm10169_vm3  ;;  %v7734_v24 = vmax.f32 %v2236_v30, %v7586_v29  ;;  %v7759_v63 = vmax.f32 %v2239_v10, %v7716_v43  ;;  %v2241_v32 = vmax.f32 %v2207_v40, %v7716_v43  ;;  %v2970_v30 = vld [vmem:[#allocation2 + $0x48] sm:$0xff]  ;;  %v2214_v46 = vld [vmem:[#allocation3 + $0x120] sm:$0xff] }
 0x1ac   : > { %5781 = vmatprep.mubr.msk.f32.mxu1 %vm10225_vm13, %v2264_v18  ;;  %vm10226_vm6 = vmmov %vm10169_vm3  ;;  %v2240_v14 = vmax.f32 %v2206_v48, %v7618_v26  ;;  %v2144_v28 = vld [vmem:[#allocation3 + $0x110] sm:$0xff]  ;;  %v2242_v15 = vmax.f32 %v2208_v23, %v2142_v54  ;;  %v3002_v29 = vld [vmem:[#allocation2 + $0x47] sm:$0xff]  ;;  %v2210_v48 = vmax.f32 %v2178_v11, %v7618_v26  ;;  %v7768_v27 = vmax.f32 %v2179_v8, %v7716_v43 }
 0x1ad   : > { %2950 = vst.msk [vmem:[#allocation2 + $0xa8] sm:$0xff] %vm10226_vm6, %v7708_v37  ;;  %vm10227_vm10 = vmmov %vm10169_vm3  ;;  %v2180_v18 = vmax.f32 %v2144_v28, %v7618_v26  ;;  %v3194_v10 = vld [vmem:[#allocation2 + $0x49] sm:$0xff]  ;;  %v3064_v40 = vmax.f32 %v2968_v1, %v3000_v52  ;;  %v2243_v23 = vmax.f32 %v2209_v58, %v7720_v31  ;;  %v3066_v8 = vmax.f32 %v2970_v30, %v3002_v29  ;;  %v10239_v52 = vld [vmem:[#allocation40_spill] sm:$0xff] }
 0x1ae   : > { %2951 = vst.msk [vmem:[#allocation2 + $0xb0] sm:$0xff] %vm10227_vm10, %v2268_v59  ;;  %vm10228_vm4 = vmmov %vm10169_vm3  ;;  %v7761_v16 = vmax.f32 %v2240_v14, %v2142_v54  ;;  %v7775_v14 = vmax.f32 %v2241_v32, %v7720_v31  ;;  %v2248_v26 = vld [vmem:[#allocation3 + $0x130] sm:$0xff]  ;;  %v2244_v47 = vmax.f32 %v2210_v48, %v2144_v28  ;;  %v7790_v1 = vld [vmem:[#allocation3 + $0x128] sm:$0xff] }
 0x1af   : > { %2952 = vst.msk [vmem:[#allocation2 + $0xb8] sm:$0xff] %vm10228_vm4, %v7731_v42  ;;  %vm10229_vm13 = vmmov %vm10169_vm3  ;;  %v7877_v33 = vld [vmem:[#allocation2 + $0x87] sm:$0xff] }
 0x1b0   : > { %2953 = vst.msk [vmem:[#allocation2 + $0xc0] sm:$0xff] %vm10169_vm3, %v7734_v24  ;;  %vm10230_vm6 = vmmov %vm10169_vm3  ;;  %v7801_v29 = vmax.f32 %v2244_v47, %v2214_v46  ;;  %v2971_v47 = vld [vmem:[#allocation2 + $0x50] sm:$0xff] }
 0x1b1   : > { %2113 = vst.msk [vmem:[#allocation3 + $0x118] sm:$0xff] %vm10229_vm13, %v2081_v39  ;;  %5782 = vmatmul.mubr.msk.f32.gmra.mxu1 %vm10230_vm6, %v2265_v4  ;;  %vm10231_vm10 = vmmov %vm10169_vm3  ;;  %v2212_v4 = vmax.f32 %v2180_v18, %v2142_v54  ;;  %v3192_v39 = vld [vmem:[#allocation2 + $0x39] sm:$0xff]  ;;  %v3065_v54 = vmax.f32 %v2969_v38, %v3033_v57 }
 0x1b2   : > { %5784 = vmatprep.mubr.msk.f32.mxu1 %vm10231_vm10, %v2266_v7  ;;  %vm10232_vm4 = vmmov %vm10169_vm3  ;;  %2957 = vst.msk [vmem:[#allocation2 + $0xe0] sm:$0xff] %vm10169_vm3, %v7761_v16  ;;  %v7777_v7 = vmax.f32 %v2242_v15, %v2144_v28  ;;  %v3096_v18 = vld [vmem:[#allocation2 + $0x36] sm:$0xff]  ;;  %v10241_v15 = vld [vmem:[#allocation49_spill] sm:$0xff] }
 0x1b3   : > { %2956 = vst.msk [vmem:[#allocation2 + $0xd8] sm:$0xff] %vm10232_vm4, %v7759_v63  ;;  %v2246_v11 = vmax.f32 %v2212_v4, %v2214_v46  ;;  %vm10233_vm13 = vmmov %vm10169_vm3  ;;  %v10237_v57 = vld [vmem:[#allocation39_spill] sm:$0xff]  ;;  %v3160_v38 = vmax.f32 %v3064_v40, %v3096_v18  ;;  %vm10242_vm11 = vnez %v10241_v15  ;;  %v3162_v4 = vmax.f32 %v3066_v8, %v3098_v2 }
 0x1b4   : > { %vm10234_vm6 = vmmov %vm10169_vm3  ;;  %10236 = vst [vmem:[#allocation38_spill] sm:$0xff] %v7790_v1  ;;  %vm10238_vm4 = vnez %v10237_v57  ;;  %v3226_v30 = vsel %vm10242_vm11, %v3194_v10, -inf  ;;  %v3193_v57 = vld [vmem:[#allocation2 + $0x41] sm:$0xff]  ;;  %v3287_v15 = vld [vmem:[#allocation2 + $0x32] sm:$0xff] }
 0x1b5   : > { %5785 = vmatmul.mubr.msk.f32.gmra.mxu1 %vm10233_vm13, %v7708_v37  ;;  %2958 = vst.msk [vmem:[#allocation2 + $0xe8] sm:$0xff] %vm10234_vm6, %v7775_v14  ;;  %vm10235_vm10 = vmmov %vm10169_vm3  ;;  %v3129_v28 = vsel %vm10238_vm4, %v3097_v55, -inf  ;;  %vm10240_vm3 = vnez %v10239_v52  ;;  %v7798_v37 = vld [vmem:[#allocation3 + $0x20] sm:$0xff]  ;;  %v7803_v58 = vmax.f32 %v2246_v11, %v2248_v26  ;;  %v7805_v55 = vld [vmem:[#allocation3 + $0x28] sm:$0xff] }
 0x1b6   : > { %2959 = vst.msk [vmem:[#allocation2 + $0xf0] sm:$0xff] %vm10235_vm10, %v7777_v7  ;;  %v3224_v32 = vsel %vm10240_vm3, %v3192_v39, -inf  ;;  %10243 = vst [vmem:[#allocation15_spill] sm:$0xff] %v7798_v37  ;;  %v3161_v48 = vmax.f32 %v3065_v54, %v3129_v28  ;;  %v3255_v39 = vmax.f32 %v7459_v0, %v3191_v50  ;;  %v3289_v10 = vld [vmem:[#allocation2 + $0x42] sm:$0xff]  ;;  %v10246_v52 = vld [vmem:[#allocation43_spill] sm:$0xff] }
 0x1b7   : > { %vm10244_vm13 = vmmov %vm10234_vm6  ;;  %10245 = vst [vmem:[#allocation70_spill] sm:$0xff] %v7805_v55  ;;  %v3256_v18 = vmax.f32 %v3160_v38, %v3224_v32  ;;  %vm10247_vm6 = vnez %v10246_v52  ;;  %v3003_v11 = vld [vmem:[#allocation2 + $0x4f] sm:$0xff]  ;;  %v7820_v8 = vld [vmem:[#allocation2 + $0x5f] sm:$0xff] }
 0x1b8   : > { %5787 = vmatprep.mubr.msk.f32.mxu1 %vm10244_vm13, %v2268_v59  ;;  %v2145_v40 = vld [vmem:[#allocation3 + $0x118] sm:$0xff]  ;;  %v3320_v25 = vsel %vm10247_vm6, %v3288_v6, -inf  ;;  %2961 = vst.msk [vmem:[#allocation2 + $0x100] sm:$0xff] %vm10244_vm13, %v7801_v29  ;;  %vm10250_vm11 = vmmov %vm10244_vm13  ;;  %v3257_v50 = vmax.f32 %v3161_v48, %v3193_v57  ;;  %v3258_v6 = vmax.f32 %v3162_v4, %v3226_v30  ;;  %v6227_v28 = vld [vmem:[#allocation3] sm:$0xff] }
 0x1b9   : > { %v10248_v59 = vld [vmem:[#allocation51_spill] sm:$0xff]  ;;  %v7812_v26 = vmax.f32 %v2243_v23, %v2145_v40  ;;  %v2245_v54 = vmax.f32 %v7768_v27, %v2145_v40  ;;  %2963 = vst.msk [vmem:[#allocation2 + $0x110] sm:$0xff] %vm10250_vm11, %v7803_v58  ;;  %v2181_v0 = vmax.f32 %v2145_v40, %v7716_v43  ;;  %vm10251_vm6 = vmmov %vm10250_vm11  ;;  %v3351_v23 = vmax.f32 %v3255_v39, %v3287_v15  ;;  %v7829_v32 = vld [vmem:[#allocation2 + $0x6f] sm:$0xff] }
 0x1ba   : > { %vm10249_vm10 = vnez %v10248_v59  ;;  %5788 = vmatmul.mubr.msk.f32.gmra.mxu1 %vm10251_vm6, %v7731_v42  ;;  %v3352_v2 = vmax.f32 %v3256_v18, %v3320_v25  ;;  %v3449_v27 = vmax.f32 %v7798_v37, %v6227_v28  ;;  %v7827_v38 = vld [vmem:[#allocation2 + $0x58] sm:$0xff]  ;;  %vm10253_vm11 = vmmov %vm10251_vm6  ;;  %v3353_v57 = vmax.f32 %v3257_v50, %v3289_v10  ;;  %v6228_v15 = vld [vmem:[#allocation3 + $0x8] sm:$0xff] }
 0x1bb   : > { %v3322_v46 = vsel %vm10249_vm10, %v3290_v19, -inf  ;;  %v7824_v19 = vld [vmem:[#allocation3 + $0x138] sm:$0xff]  ;;  %5790 = vmatprep.mubr.msk.f32.mxu1 %vm10253_vm11, %v7734_v24  ;;  %vm10254_vm13 = vmmov %vm10251_vm6  ;;  %v7838_v42 = vmax.f32 %v2245_v54, %v7790_v1  ;;  %v2213_v25 = vmax.f32 %v2181_v0, %v7720_v31  ;;  %v3450_v30 = vmax.f32 %v7805_v55, %v6228_v15  ;;  %v2973_v48 = vld [vmem:[#allocation2 + $0x60] sm:$0xff]  ;;  %3383 = vst.msk [vmem:[#allocation3 + $0x30] sm:$0xff] %vm10251_vm6, %v3351_v23 }
 0x1bc   : > { %10252 = vst [vmem:[#allocation71_spill] sm:$0xff] %v7824_v19  ;;  %v7831_v43 = vld [vmem:[#allocation2 + $0x7f] sm:$0xff]  ;;  %2960 = vst.msk [vmem:[#allocation2 + $0xf8] sm:$0xff] %vm10254_vm13, %v7812_v26  ;;  %v7842_v4 = vld [vmem:[#allocation2 + $0x57] sm:$0xff]  ;;  %v3354_v39 = vmax.f32 %v3258_v6, %v3322_v46 }
 0x1bd   : > { %v7844_v40 = vld [vmem:[#allocation2 + $0x8f] sm:$0xff]  ;;  %vm10255_vm11 = vmmov %vm10251_vm6  ;;  %v7855_v54 = vld [vmem:[#allocation2 + $0x78] sm:$0xff]  ;;  %v2247_v59 = vmax.f32 %v2213_v25, %v7790_v1 }
 0x1be   : > { %3384 = vst.msk [vmem:[#allocation3 + $0x38] sm:$0xff] %vm10255_vm11, %v3352_v2  ;;  %v7848_v24 = vld [vmem:[#allocation3 + $0x10] sm:$0xff]  ;;  %v7853_v31 = vld [vmem:[#allocation2 + $0x68] sm:$0xff]  ;;  %v2977_v0 = vld [vmem:[#allocation2 + $0x80] sm:$0xff]  ;;  %v3043_v55 = vsel %vm10149_vm5, %v7844_v40, -inf  ;;  %vm10274_vm5 = vnez %v10273_v5 }
 0x1bf   : > { %10256 = vst [vmem:[#allocation68_spill] sm:$0xff] %v7848_v24  ;;  %v7851_v18 = vmax.f32 %v3449_v27, %v7848_v24  ;;  %v2975_v10 = vld [vmem:[#allocation2 + $0x70] sm:$0xff]  ;;  %v7857_v50 = vld [vmem:[#allocation2 + $0x67] sm:$0xff]  ;;  %v10257_v46 = vld [vmem:[#allocation47_spill] sm:$0xff] }
 0x1c0   : > { %v7859_v28 = vld [vmem:[#allocation2 + $0x77] sm:$0xff]  ;;  %vm10258_vm13 = vnez %v10257_v46  ;;  %v2990_v15 = vld [vmem:[#allocation2 + $0xe8] sm:$0xff]  ;;  %2962 = vst.msk [vmem:[#allocation2 + $0x108] sm:$0xff] %vm10255_vm11, %v7838_v42  ;;  %vm10261_vm10 = vmmov %vm10255_vm11  ;;  %vm10265_vm11 = vnez %v10031_v20 }
 0x1c1   : > { %v3035_v6 = vsel %vm10258_vm13, %v3003_v11, -inf  ;;  %v10259_v23 = vld [vmem:[#allocation55_spill] sm:$0xff]  ;;  %v3022_v27 = vld [vmem:[#allocation2 + $0xe7] sm:$0xff]  ;;  %3385 = vst.msk [vmem:[#allocation3 + $0x40] sm:$0xff] %vm10261_vm10, %v3353_v57  ;;  %v2979_v11 = vld [vmem:[#allocation2 + $0x90] sm:$0xff]  ;;  %v3041_v25 = vsel %vm10265_vm11, %v7831_v43, -inf  ;;  %5791 = vmatmul.mubr.msk.f32.gmra.mxu1 %vm10261_vm10, %v7631_v41 }
 0x1c2   : > { %vm10260_vm6 = vnez %v10259_v23  ;;  %v7870_v52 = vld [vmem:[#allocation3 + $0x18] sm:$0xff]  ;;  %v7875_v46 = vld [vmem:[#allocation2 + $0x88] sm:$0xff]  ;;  %v3086_v57 = vmax.f32 %v2990_v15, %v3022_v27  ;;  %v2991_v1 = vld [vmem:[#allocation2 + $0xf0] sm:$0xff]  ;;  %v7891_v24 = vmax.f32 %v2971_v47, %v3035_v6  ;;  %v7904_v47 = vmax.f32 %v2247_v59, %v7824_v19 }
 0x1c3   : > { %v3037_v2 = vsel %vm10260_vm6, %v7820_v8, -inf  ;;  %10262 = vst [vmem:[#allocation21_spill] sm:$0xff] %v7870_v52  ;;  %v7873_v37 = vmax.f32 %v3450_v30, %v7870_v52  ;;  %v10263_v8 = vld [vmem:[#allocation5_spill] sm:$0xff]  ;;  %vm10266_vm4 = vmmov %vm10261_vm10  ;;  %v10268_v43 = vld [vmem:[#allocation7_spill] sm:$0xff] }
 0x1c4   : > { %vm10264_vm3 = vnez %v10263_v8  ;;  %v3023_v30 = vld [vmem:[#allocation2 + $0xef] sm:$0xff]  ;;  %3386 = vst.msk [vmem:[#allocation3 + $0x48] sm:$0xff] %vm10266_vm4, %v3354_v39  ;;  %vm10267_vm11 = vmmov %vm10266_vm4  ;;  %v3118_v41 = vld [vmem:[#allocation2 + $0xe6] sm:$0xff]  ;;  %vm10269_vm10 = vnez %v10268_v43  ;;  %v7906_v40 = vmax.f32 %v2973_v48, %v3037_v2  ;;  %v7926_v2 = vmax.f32 %v2977_v0, %v3041_v25 }
 0x1c5   : > { %v3039_v23 = vsel %vm10264_vm3, %v7829_v32, -inf  ;;  %v3119_v52 = vld [vmem:[#allocation2 + $0xee] sm:$0xff]  ;;  %5793 = vmatprep.mubr.msk.f32.mxu1 %vm10267_vm11, %v7652_v21  ;;  %v3055_v15 = vsel %vm10269_vm10, %v3023_v30, -inf  ;;  %10272 = vst [vmem:[#allocation19_spill] sm:$0xff] %v7904_v47  ;;  %v3182_v6 = vmax.f32 %v3086_v57, %v3118_v41  ;;  %v7912_v43 = vld [vmem:[#allocation2 + $0x98] sm:$0xff]  ;;  %v3205_v61 = vld [vmem:[#allocation2 + $0xa1] sm:$0xff] }
 0x1c6   : > { %v7895_v20 = vld [vmem:[#allocation2 + $0x4e] sm:$0xff]  ;;  %v3087_v32 = vmax.f32 %v2991_v1, %v3055_v15  ;;  %v7914_v30 = vld [vmem:[#allocation2 + $0x97] sm:$0xff]  ;;  %v7922_v48 = vmax.f32 %v2975_v10, %v3039_v23  ;;  %v7936_v23 = vmax.f32 %v2979_v11, %v3043_v55  ;;  %v3025_v5 = vld [vmem:[#allocation2 + $0xff] sm:$0xff] }
 0x1c7   : > { %v10270_v27 = vld [vmem:[#allocation6_spill] sm:$0xff]  ;;  %v2992_v15 = vld [vmem:[#allocation2 + $0xf8] sm:$0xff]  ;;  %v10281_v55 = vld [vmem:[#allocation57_spill] sm:$0xff] }
 0x1c8   : > { %vm10271_vm4 = vnez %v10270_v27  ;;  %v3214_v8 = vld [vmem:[#allocation2 + $0xe9] sm:$0xff]  ;;  %v3024_v27 = vld [vmem:[#allocation2 + $0xf7] sm:$0xff]  ;;  %vm10282_vm10 = vnez %v10281_v55 }
 0x1c9   : > { %v3151_v39 = vsel %vm10271_vm4, %v3119_v52, -inf  ;;  %v3310_v34 = vld [vmem:[#allocation2 + $0xea] sm:$0xff]  ;;  %v3246_v3 = vsel %vm10274_vm5, %v3214_v8, -inf  ;;  %v7916_v52 = vld [vmem:[#allocation2 + $0x5e] sm:$0xff]  ;;  %vm10277_vm4 = vcmask 15360   ;;  %v3088_v0 = vmax.f32 %v2992_v15, %v3024_v27  ;;  %v3120_v25 = vld [vmem:[#allocation2 + $0xf6] sm:$0xff] }
 0x1ca   : > { %v10275_v21 = vld [vmem:[#allocation74_spill] sm:$0xff]  ;;  %2964 = vst.msk [vmem:[#allocation2 + $0x118] sm:$0xff] %vm10277_vm4, %v7904_v47  ;;  %v7930_v8 = vld [vmem:[#allocation2 + $0x7e] sm:$0xff]  ;;  %v3183_v57 = vmax.f32 %v3087_v32, %v3151_v39  ;;  %v3278_v41 = vmax.f32 %v3182_v6, %v3246_v3 }
 0x1cb   : > { %vm10276_vm11 = vnez %v10275_v21  ;;  %v2993_v21 = vld [vmem:[#allocation2 + $0x100] sm:$0xff]  ;;  %v7938_v1 = vld [vmem:[#allocation2 + $0x8e] sm:$0xff]  ;;  %v3184_v56 = vmax.f32 %v3088_v0, %v3120_v25  ;;  %v3020_v49 = vld [vmem:[#allocation2 + $0xd7] sm:$0xff] }
 0x1cc   : > { %v3342_v60 = vsel %vm10276_vm11, %v3310_v34, -inf  ;;  %v7928_v34 = vld [vmem:[#allocation2 + $0x6e] sm:$0xff]  ;;  %vm10278_vm11 = vmmov %vm10277_vm4  ;;  %v10279_v32 = vld [vmem:[#allocation48_spill] sm:$0xff] }
 0x1cd   : > { %5794 = vmatmul.mubr.msk.f32.gmra.mxu1 %vm10278_vm11, %v7759_v63  ;;  %v3215_v59 = vld [vmem:[#allocation2 + $0xf1] sm:$0xff]  ;;  %vm10280_vm11 = vnez %v10279_v32  ;;  %v3374_v6 = vmax.f32 %v3278_v41, %v3342_v60  ;;  %v3121_v27 = vld [vmem:[#allocation2 + $0xfe] sm:$0xff]  ;;  %v3122_v25 = vld [vmem:[#allocation2 + $0x106] sm:$0xff] }
 0x1ce   : > { %5796 = vmatprep.mubr.msk.f32.mxu1 %vm10277_vm4, %v7761_v16  ;;  %v2995_v63 = vld [vmem:[#allocation2 + $0x110] sm:$0xff]  ;;  %v3131_v39 = vsel %vm10280_vm11, %v7895_v20, -inf  ;;  %v3279_v10 = vmax.f32 %v3183_v57, %v3215_v59  ;;  %v3057_v16 = vsel %vm10131_vm2, %v3025_v5, -inf  ;;  %v3216_v15 = vld [vmem:[#allocation2 + $0xf9] sm:$0xff]  ;;  %v3153_v20 = vsel %vm7346_vm15, %v3121_v27, -inf  ;;  %v2994_v59 = vld [vmem:[#allocation2 + $0x108] sm:$0xff] }
 0x1cf   : > { %v3312_v19 = vld [vmem:[#allocation2 + $0xfa] sm:$0xff]  ;;  %v3311_v45 = vld [vmem:[#allocation2 + $0xf2] sm:$0xff]  ;;  %v3089_v32 = vmax.f32 %v2993_v21, %v3057_v16  ;;  %v3248_v60 = vsel %vm7330_vm9, %v3216_v15, -inf  ;;  %v3026_v57 = vld [vmem:[#allocation2 + $0x107] sm:$0xff]  ;;  %vm10285_vm2 = vcmask 15360   ;;  %vm10287_vm15 = vnez %v10052_v62 }
 0x1d0   : > { %v10283_v47 = vld [vmem:[#allocation72_spill] sm:$0xff]  ;;  %vm10286_vm5 = vmmov %vm10285_vm2  ;;  %v3375_v5 = vmax.f32 %v3279_v10, %v3311_v45  ;;  %v3344_v41 = vsel %vm7356_vm7, %v3312_v19, -inf  ;;  %v3090_v0 = vmax.f32 %v2994_v59, %v3026_v57  ;;  %v3027_v21 = vld [vmem:[#allocation2 + $0x10f] sm:$0xff]  ;;  %v3280_v15 = vmax.f32 %v3184_v56, %v3248_v60 }
 0x1d1   : > { %vm10284_vm4 = vnez %v10283_v47  ;;  %5797 = vmatmul.mubr.msk.f32.gmra.mxu1 %vm10285_vm2, %v7775_v14  ;;  %3406 = vst.msk [vmem:[#allocation3 + $0xe8] sm:$0xff] %vm10286_vm5, %v3374_v6  ;;  %vm10288_vm9 = vmmov %vm10285_vm2  ;;  %v3185_v27 = vmax.f32 %v3089_v32, %v3153_v20  ;;  %v3059_v14 = vsel %vm7508_vm14, %v3027_v21, -inf  ;;  %v3123_v6 = vld [vmem:[#allocation2 + $0x10e] sm:$0xff]  ;;  %vm10289_vm2 = vnez %v10112_v53  ;;  %v3217_v57 = vld [vmem:[#allocation2 + $0x101] sm:$0xff] }
 0x1d2   : > { %5799 = vmatprep.mubr.msk.f32.mxu1 %vm10288_vm9, %v7777_v7  ;;  %v3218_v45 = vld [vmem:[#allocation2 + $0x109] sm:$0xff]  ;;  %3407 = vst.msk [vmem:[#allocation3 + $0xf0] sm:$0xff] %vm10286_vm5, %v3375_v5  ;;  %v3186_v59 = vmax.f32 %v3090_v0, %v3122_v25  ;;  %v3091_v16 = vmax.f32 %v2995_v63, %v3059_v14  ;;  %v2996_v32 = vld [vmem:[#allocation2 + $0x118] sm:$0xff]  ;;  %v3376_v60 = vmax.f32 %v3280_v15, %v3344_v41  ;;  %v3155_v19 = vsel %vm7518_vm0, %v3123_v6, -inf  ;;  %vm10290_vm9 = vmmov %vm10286_vm5 }
 0x1d3   : > { %v3314_v10 = vld [vmem:[#allocation2 + $0x10a] sm:$0xff]  ;;  %v3250_v7 = vsel %vm7524_vm12, %v3218_v45, -inf  ;;  %v3028_v20 = vld [vmem:[#allocation2 + $0x117] sm:$0xff]  ;;  %v3281_v21 = vmax.f32 %v3185_v27, %v3217_v57  ;;  %v3313_v3 = vld [vmem:[#allocation2 + $0x102] sm:$0xff]  ;;  %vm10291_vm5 = vnez %v10141_v44  ;;  %v7990_v27 = vmax.f32 %v7891_v24, %v3131_v39 }
 0x1d4   : > { %v3346_v56 = vsel %vm7577_vm8, %v3314_v10, -inf  ;;  %v3092_v11 = vmax.f32 %v2996_v32, %v3028_v20  ;;  %v3124_v22 = vld [vmem:[#allocation2 + $0x116] sm:$0xff]  ;;  %v3282_v63 = vmax.f32 %v3186_v59, %v3250_v7  ;;  %v3187_v25 = vmax.f32 %v3091_v16, %v3155_v19  ;;  %vm10292_vm0 = vmmov %vm10290_vm9  ;;  %v7997_v19 = vld [vmem:[#allocation3 + $0x40] sm:$0xff] }
 0x1d5   : > { %v3220_v5 = vld [vmem:[#allocation2 + $0x119] sm:$0xff]  ;;  %5800 = vmatmul.mubr.msk.f32.gmra.mxu1 %vm10290_vm9, %v7812_v26  ;;  %v7985_v10 = vld [vmem:[#allocation3 + $0x30] sm:$0xff]  ;;  %vm10293_vm8 = vmmov %vm10292_vm0  ;;  %v3377_v15 = vmax.f32 %v3281_v21, %v3313_v3 }
 0x1d6   : > { %v3100_v0 = vld [vmem:[#allocation2 + $0x56] sm:$0xff]  ;;  %v3252_v14 = vsel %vm10291_vm5, %v3220_v5, -inf  ;;  %5802 = vmatprep.mubr.msk.f32.mxu1 %vm10292_vm0, %v7801_v29  ;;  %3408 = vst.msk [vmem:[#allocation3 + $0xf8] sm:$0xff] %vm10293_vm8, %v3376_v60  ;;  %v3188_v26 = vmax.f32 %v3092_v11, %v3124_v22  ;;  %v7999_v59 = vld [vmem:[#allocation3 + $0x48] sm:$0xff]  ;;  %v3515_v57 = vmax.f32 %v7851_v18, %v7985_v10  ;;  %v3378_v24 = vmax.f32 %v3282_v63, %v3346_v56  ;;  %vm10297_vm8 = vmmov %vm10292_vm0 }
 0x1d7   : > { %v3316_v45 = vld [vmem:[#allocation2 + $0x11a] sm:$0xff]  ;;  %v3219_v6 = vld [vmem:[#allocation2 + $0x111] sm:$0xff]  ;;  %v3102_v7 = vld [vmem:[#allocation2 + $0x66] sm:$0xff]  ;;  %v10294_v22 = vmax.f32 %v7827_v38, %v7842_v4  ;;  %3409 = vst.msk [vmem:[#allocation3 + $0x100] sm:$0xff] %vm10292_vm0, %v3377_v15  ;;  %v10295_v18 = vsel %vm10282_vm10, %v7916_v52, -inf  ;;  %vm10311_vm5 = vnez %v10040_v12 }
 0x1d8   : > { %v7987_v41 = vld [vmem:[#allocation3 + $0x38] sm:$0xff]  ;;  %v3348_v16 = vsel %vm7494_vm1, %v3316_v45, -inf  ;;  %v3283_v39 = vmax.f32 %v3187_v25, %v3219_v6  ;;  %v3284_v20 = vmax.f32 %v3188_v26, %v3252_v14  ;;  %v3549_v21 = vmax.f32 %v3515_v57, %v7997_v19  ;;  %v3198_v38 = vld [vmem:[#allocation2 + $0x69] sm:$0xff]  ;;  %vm10298_vm9 = vmmov %vm10292_vm0 }
 0x1d9   : > { %v3516_v29 = vmax.f32 %v7873_v37, %v7987_v41  ;;  %v3104_v32 = vld [vmem:[#allocation2 + $0x76] sm:$0xff]  ;;  %v3164_v3 = vmax.f32 %v10294_v22, %v3100_v0  ;;  %v8015_v56 = vmax.f32 %v7906_v40, %v10295_v18  ;;  %v10296_v37 = vmax.f32 %v7853_v31, %v7857_v50  ;;  %5803 = vmatmul.mubr.msk.f32.gmra.mxu1 %vm10297_vm8, %v7838_v42  ;;  %v3106_v25 = vld [vmem:[#allocation2 + $0x86] sm:$0xff]  ;;  %vm10301_vm8 = vmmov %vm10292_vm0 }
 0x1da   : > { %v3196_v11 = vld [vmem:[#allocation2 + $0x59] sm:$0xff]  ;;  %3410 = vst.msk [vmem:[#allocation3 + $0x108] sm:$0xff] %vm10298_vm9, %v3378_v24  ;;  %v10299_v40 = vsel %vm10284_vm4, %v7928_v34, -inf  ;;  %v10300_v31 = vmax.f32 %v7855_v54, %v7859_v28  ;;  %v3202_v14 = vld [vmem:[#allocation2 + $0x89] sm:$0xff]  ;;  %5805 = vmatprep.mubr.msk.f32.mxu1 %vm10292_vm0, %v7803_v58  ;;  %v3380_v45 = vmax.f32 %v3284_v20, %v3348_v16  ;;  %v10302_v34 = vsel %vm10287_vm15, %v7930_v8, -inf  ;;  %v3195_v6 = vld [vmem:[#allocation2 + $0x51] sm:$0xff] }
 0x1db   : > { %v3315_v60 = vld [vmem:[#allocation2 + $0x112] sm:$0xff]  ;;  %v3166_v5 = vmax.f32 %v10296_v37, %v3102_v7  ;;  %v8024_v63 = vmax.f32 %v3516_v29, %v7999_v59  ;;  %v8031_v52 = vmax.f32 %v7922_v48, %v10299_v40  ;;  %3939 = vst.msk [vmem:[#allocation2 + $0x20] sm:$0xff] %vm10301_vm8, %v3549_v21  ;;  %v3169_v48 = vmax.f32 %v7926_v2, %v10302_v34  ;;  %v3197_v16 = vld [vmem:[#allocation2 + $0x61] sm:$0xff]  ;;  %vm10305_vm9 = vmmov %vm10292_vm0 }
 0x1dc   : > { %v3200_v4 = vld [vmem:[#allocation2 + $0x79] sm:$0xff]  ;;  %v3379_v0 = vmax.f32 %v3283_v39, %v3315_v60  ;;  %v3168_v50 = vmax.f32 %v10300_v31, %v3104_v32  ;;  %v10303_v26 = vmax.f32 %v7875_v46, %v7877_v33  ;;  %v10304_v28 = vsel %vm10289_vm2, %v7938_v1, -inf  ;;  %v3199_v33 = vld [vmem:[#allocation2 + $0x71] sm:$0xff]  ;;  %v3201_v46 = vld [vmem:[#allocation2 + $0x81] sm:$0xff] }
 0x1dd   : > { %v3204_v42 = vld [vmem:[#allocation2 + $0x99] sm:$0xff]  ;;  %v8052_v58 = vmax.f32 %v7936_v23, %v10304_v28  ;;  %3940 = vst.msk [vmem:[#allocation2 + $0x28] sm:$0xff] %vm10292_vm0, %v8024_v63  ;;  %v10306_v2 = vmax.f32 %v7912_v43, %v7914_v30  ;;  %v3232_v39 = vsel %vm10311_vm5, %v3200_v4, -inf  ;;  %v10313_v7 = vld [vmem:[#allocation78_spill] sm:$0xff]  ;;  %v10315_v22 = vld [vmem:[#allocation17_spill] sm:$0xff]  ;;  %v3259_v30 = vmax.f32 %v7990_v27, %v3195_v6 }
 0x1de   : > { %v3108_v15 = vld [vmem:[#allocation2 + $0x96] sm:$0xff]  ;;  %v3170_v54 = vmax.f32 %v10303_v26, %v3106_v25  ;;  %3411 = vst.msk [vmem:[#allocation3 + $0x110] sm:$0xff] %vm10305_vm9, %v3379_v0  ;;  %v10307_v57 = vld [vmem:[#allocation56_spill] sm:$0xff]  ;;  %vm10312_vm9 = vmmov %vm10292_vm0  ;;  %vm10314_vm0 = vnez %v10313_v7  ;;  %vm10316_vm14 = vnez %v10315_v22  ;;  %v3261_v4 = vmax.f32 %v8015_v56, %v3197_v16 }
 0x1df   : > { %v3172_v8 = vmax.f32 %v10306_v2, %v3108_v15  ;;  %vm10308_vm8 = vnez %v10307_v57  ;;  %v10309_v1 = vld [vmem:[#allocation4_spill] sm:$0xff]  ;;  %3412 = vst.msk [vmem:[#allocation3 + $0x118] sm:$0xff] %vm10312_vm9, %v3380_v45  ;;  %v3234_v32 = vsel %vm10314_vm0, %v3202_v14, -inf  ;;  %v3236_v43 = vsel %vm10316_vm14, %v3204_v42, -inf  ;;  %v3294_v60 = vld [vmem:[#allocation2 + $0x6a] sm:$0xff]  ;;  %v10317_v37 = vld [vmem:[#allocation19_spill] sm:$0xff] }
 0x1e0   : > { %v3228_v24 = vsel %vm10308_vm8, %v3196_v11, -inf  ;;  %vm10310_vm1 = vnez %v10309_v1  ;;  %v3292_v29 = vld [vmem:[#allocation2 + $0x5a] sm:$0xff]  ;;  %v3298_v18 = vld [vmem:[#allocation2 + $0x8a] sm:$0xff]  ;;  %vm10318_vm12 = vmmov %vm10312_vm9  ;;  %v3263_v25 = vmax.f32 %v8031_v52, %v3199_v33  ;;  %v3264_v40 = vmax.f32 %v3168_v50, %v3232_v39 }
 0x1e1   : > { %v3230_v23 = vsel %vm10310_vm1, %v3198_v38, -inf  ;;  %v3260_v20 = vmax.f32 %v3164_v3, %v3228_v24  ;;  %v3296_v11 = vld [vmem:[#allocation2 + $0x7a] sm:$0xff]  ;;  %5806 = vmatmul.mubr.msk.f32.gmra.mxu1 %vm10318_vm12, %v10317_v37  ;;  %v3203_v38 = vld [vmem:[#allocation2 + $0x91] sm:$0xff]  ;;  %v3265_v42 = vmax.f32 %v3169_v48, %v3201_v46  ;;  %v3266_v27 = vmax.f32 %v3170_v54, %v3234_v32  ;;  %v3293_v15 = vld [vmem:[#allocation2 + $0x62] sm:$0xff] }
 0x1e2   : > { %v3262_v0 = vmax.f32 %v3166_v5, %v3230_v23  ;;  %v3291_v31 = vld [vmem:[#allocation2 + $0x52] sm:$0xff]  ;;  %v3300_v14 = vld [vmem:[#allocation2 + $0x9a] sm:$0xff]  ;;  %5860 = vmatprep.mubr.msk.f32.mxu1 %vm10312_vm9, %v3549_v21  ;;  %v3267_v3 = vmax.f32 %v8052_v58, %v3203_v38  ;;  %v3268_v45 = vmax.f32 %v3172_v8, %v3236_v43  ;;  %v3297_v26 = vld [vmem:[#allocation2 + $0x82] sm:$0xff]  ;;  %v3357_v24 = vmax.f32 %v3261_v4, %v3293_v15 }
 0x1e3   : > { %v3295_v34 = vld [vmem:[#allocation2 + $0x72] sm:$0xff]  ;;  %v10321_v5 = vld [vmem:[#allocation73_spill] sm:$0xff]  ;;  %v10323_v50 = vld [vmem:[#allocation24_spill] sm:$0xff]  ;;  %v3355_v33 = vmax.f32 %v3259_v30, %v3291_v31  ;;  %vm10329_vm0 = vcmask 15360   ;;  %v3361_v38 = vmax.f32 %v3265_v42, %v3297_v26 }
 0x1e4   : > { %v3299_v28 = vld [vmem:[#allocation2 + $0x92] sm:$0xff]  ;;  %vm10322_vm7 = vnez %v10321_v5  ;;  %vm10324_vm14 = vnez %v10323_v50  ;;  %v8086_v48 = vld [vmem:[#allocation2 + $0xa8] sm:$0xff]  ;;  %v10327_v58 = vld [vmem:[#allocation12_spill] sm:$0xff] }
 0x1e5   : > { %v10319_v6 = vld [vmem:[#allocation58_spill] sm:$0xff]  ;;  %v3326_v52 = vsel %vm10322_vm7, %v3294_v60, -inf  ;;  %v3328_v16 = vsel %vm10324_vm14, %v3296_v11, -inf  ;;  %v10325_v2 = vld [vmem:[#allocation79_spill] sm:$0xff]  ;;  %vm10328_vm2 = vnez %v10327_v58  ;;  %v3014_v39 = vld [vmem:[#allocation2 + $0xa7] sm:$0xff]  ;;  %5861 = vmatmul.mubr.msk.f32.vlgmr.msra.gmra.mxu1 %vm10329_vm0, %v8024_v63 }
 0x1e6   : > { %vm10320_vm12 = vnez %v10319_v6  ;;  %vm10326_vm9 = vnez %v10325_v2  ;;  %v8088_v54 = vld [vmem:[#allocation2 + $0xb8] sm:$0xff]  ;;  %v3332_v8 = vsel %vm10328_vm2, %v3300_v14, -inf  ;;  %v3971_v32 = vld [vmem:[#allocation2 + $0x20] sm:$0xff]  ;;  %v3358_v11 = vmax.f32 %v3262_v0, %v3326_v52  ;;  %v10330_v44 = vld [vmem:[#allocation14_spill] sm:$0xff] }
 0x1e7   : > { %v3324_v56 = vsel %vm10320_vm12, %v3292_v29, -inf  ;;  %v3330_v21 = vsel %vm10326_vm9, %v3298_v18, -inf  ;;  %v3013_v23 = vld [vmem:[#allocation2 + $0x9f] sm:$0xff]  ;;  %v8092_v29 = vld [vmem:[#allocation2 + $0xb7] sm:$0xff]  ;;  %v3359_v18 = vmax.f32 %v3263_v25, %v3295_v34  ;;  %v3360_v37 = vmax.f32 %v3264_v40, %v3328_v16  ;;  %vm10334_vm15 = vmmov %vm10329_vm0 }
 0x1e8   : > { %v3356_v46 = vmax.f32 %v3260_v20, %v3324_v56  ;;  %v4003_v43 = vld [vmem:[#allocation2 + $0x1f] sm:$0xff]  ;;  %vm10331_vm2 = vnez %v10330_v44  ;;  %v3362_v31 = vmax.f32 %v3266_v27, %v3330_v21  ;;  %v3363_v14 = vmax.f32 %v3267_v3, %v3299_v28  ;;  %3387 = vst.msk [vmem:[#allocation3 + $0x50] sm:$0xff] %vm10334_vm15, %v3355_v33  ;;  %vm10335_vm10 = vmmov %vm10329_vm0  ;;  %v3018_v0 = vld [vmem:[#allocation2 + $0xc7] sm:$0xff] }
 0x1e9   : > { %v4099_v60 = vld [vmem:[#allocation2 + $0x1e] sm:$0xff]  ;;  %v4035_v30 = vsel %vm10331_vm2, %v4003_v43, -inf  ;;  %vm10336_vm6 = vmmov %vm10329_vm0  ;;  %v3364_v44 = vmax.f32 %v3268_v45, %v3332_v8  ;;  %3391 = vst.msk [vmem:[#allocation3 + $0x70] sm:$0xff] %vm10329_vm0, %v3359_v18  ;;  %v10341_v15 = vld [vmem:[#allocation70_spill] sm:$0xff]  ;;  %v3078_v21 = vmax.f32 %v8086_v48, %v3014_v39  ;;  %v3080_v8 = vmax.f32 %v8088_v54, %v8092_v29 }
 0x1ea   : > { %v10332_v20 = vld [vmem:[#allocation16_spill] sm:$0xff]  ;;  %3388 = vst.msk [vmem:[#allocation3 + $0x58] sm:$0xff] %vm10335_vm10, %v3356_v46  ;;  %v2988_v63 = vld [vmem:[#allocation2 + $0xd8] sm:$0xff]  ;;  %v4067_v42 = vmax.f32 %v3971_v32, %v4035_v30  ;;  %vm10337_vm2 = vmmov %vm10329_vm0  ;;  %v3454_v34 = vmax.f32 %v7999_v59, %v10341_v15 }
 0x1eb   : > { %vm10333_vm9 = vnez %v10332_v20  ;;  %3389 = vst.msk [vmem:[#allocation3 + $0x60] sm:$0xff] %vm10336_vm6, %v3357_v24  ;;  %v8103_v25 = vld [vmem:[#allocation3 + $0xf8] sm:$0xff]  ;;  %vm10339_vm14 = vmmov %vm10329_vm0  ;;  %v10340_v27 = vld [vmem:[#allocation68_spill] sm:$0xff]  ;;  %v3084_v48 = vmax.f32 %v2988_v63, %v3020_v49 }
 0x1ec   : > { %v4131_v4 = vsel %vm10333_vm9, %v4099_v60, -inf  ;;  %v8105_v40 = vld [vmem:[#allocation3 + $0x118] sm:$0xff]  ;;  %3390 = vst.msk [vmem:[#allocation3 + $0x68] sm:$0xff] %vm10337_vm2, %v3358_v11  ;;  %vm10338_vm9 = vmmov %vm10329_vm0  ;;  %v3451_v3 = vmax.f32 %v7985_v10, %v10340_v27  ;;  %v2981_v45 = vld [vmem:[#allocation2 + $0xa0] sm:$0xff]  ;;  %v3486_v43 = vmax.f32 %v3454_v34, %v7987_v41 }
 0x1ed   : > { %3392 = vst.msk [vmem:[#allocation3 + $0x78] sm:$0xff] %vm10338_vm9, %v3360_v37  ;;  %v3109_v26 = vld [vmem:[#allocation2 + $0x9e] sm:$0xff]  ;;  %v3480_v28 = vmax.f32 %v8105_v40, %v8103_v25  ;;  %vm10342_vm15 = vmmov %vm10329_vm0  ;;  %v2986_v56 = vld [vmem:[#allocation2 + $0xc8] sm:$0xff]  ;;  %v4163_v46 = vmax.f32 %v4067_v42, %v4131_v4 }
 0x1ee   : > { %3393 = vst.msk [vmem:[#allocation3 + $0x80] sm:$0xff] %vm10339_vm14, %v3361_v38  ;;  %vm10343_vm6 = vmmov %vm10329_vm0  ;;  %v10344_v52 = vld [vmem:[#allocation10_spill] sm:$0xff]  ;;  %v8124_v33 = vld [vmem:[#allocation3 + $0x108] sm:$0xff]  ;;  %v3082_v38 = vmax.f32 %v2986_v56, %v3018_v0 }
 0x1ef   : > { %3394 = vst.msk [vmem:[#allocation3 + $0x88] sm:$0xff] %vm10342_vm15, %v3362_v31  ;;  %vm10345_vm10 = vnez %v10344_v52  ;;  %vm10346_vm14 = vmmov %vm10329_vm0  ;;  %v10347_v24 = vld [vmem:[#allocation15_spill] sm:$0xff]  ;;  %v3110_v11 = vld [vmem:[#allocation2 + $0xa6] sm:$0xff]  ;;  %v3512_v37 = vmax.f32 %v3480_v28, %v8124_v33 }
 0x1f0   : > { %3395 = vst.msk [vmem:[#allocation3 + $0x90] sm:$0xff] %vm10343_vm6, %v3363_v14  ;;  %v3045_v16 = vsel %vm10345_vm10, %v3013_v23, -inf  ;;  %v3483_v32 = vmax.f32 %v3451_v3, %v10347_v24  ;;  %v3206_v18 = vld [vmem:[#allocation2 + $0xa9] sm:$0xff]  ;;  %v4195_v23 = vld [vmem:[#allocation2 + $0x21] sm:$0xff]  ;;  %v10348_v39 = vld [vmem:[#allocation75_spill] sm:$0xff]  ;;  %v3174_v27 = vmax.f32 %v3078_v21, %v3110_v11 }
 0x1f1   : > { %3396 = vst.msk [vmem:[#allocation3 + $0x98] sm:$0xff] %vm10346_vm14, %v3364_v44  ;;  %v3077_v60 = vmax.f32 %v2981_v45, %v3045_v16  ;;  %vm10349_vm2 = vnez %v10348_v39  ;;  %v3208_v29 = vld [vmem:[#allocation2 + $0xb9] sm:$0xff]  ;;  %v3210_v30 = vld [vmem:[#allocation2 + $0xc9] sm:$0xff]  ;;  %v4259_v20 = vmax.f32 %v4163_v46, %v4195_v23  ;;  %vm10360_vm14 = vmmov %vm10343_vm6 }
 0x1f2   : > { %v3141_v54 = vsel %vm10349_vm2, %v3109_v26, -inf  ;;  %v3517_v4 = vmax.f32 %v3483_v32, %v7997_v19  ;;  %v3112_v31 = vld [vmem:[#allocation2 + $0xb6] sm:$0xff]  ;;  %v3114_v14 = vld [vmem:[#allocation2 + $0xc6] sm:$0xff] }
 0x1f3   : > { %v3116_v42 = vld [vmem:[#allocation2 + $0xd6] sm:$0xff]  ;;  %v8133_v44 = vmax.f32 %v3077_v60, %v3141_v54  ;;  %v4291_v28 = vld [vmem:[#allocation2 + $0x22] sm:$0xff]  ;;  %v3176_v45 = vmax.f32 %v3080_v8, %v3112_v31  ;;  %v3178_v0 = vmax.f32 %v3082_v38, %v3114_v14 }
 0x1f4   : > { %v10350_v3 = vld [vmem:[#allocation38_spill] sm:$0xff]  ;;  %v3180_v49 = vmax.f32 %v3084_v48, %v3116_v42  ;;  %v4355_v63 = vmax.f32 %v4259_v20, %v4291_v28  ;;  %v8138_v26 = vld [vmem:[#allocation3 + $0x58] sm:$0xff]  ;;  %v10351_v46 = vld [vmem:[#allocation33_spill] sm:$0xff] }
 0x1f5   : > { %v3546_v34 = vmax.f32 %v3512_v37, %v10350_v3  ;;  %v8136_v56 = vld [vmem:[#allocation3 + $0x50] sm:$0xff]  ;;  %v3212_v16 = vld [vmem:[#allocation2 + $0xd9] sm:$0xff]  ;;  %vm10352_vm0 = vnez %v10351_v46  ;;  %v10353_v23 = vld [vmem:[#allocation45_spill] sm:$0xff] }
 0x1f6   : > { %v3238_v32 = vsel %vm10352_vm0, %v3206_v18, -inf  ;;  %vm10354_vm9 = vnez %v10353_v23  ;;  %v10355_v54 = vld [vmem:[#allocation52_spill] sm:$0xff]  ;;  %v10357_v11 = vld [vmem:[#allocation71_spill] sm:$0xff]  ;;  %v8149_v8 = vld [vmem:[#allocation3 + $0x68] sm:$0xff]  ;;  %v3455_v20 = vmax.f32 %v8136_v56, %v7985_v10  ;;  %v3456_v18 = vmax.f32 %v8138_v26, %v7987_v41  ;;  %4387 = vst.msk [vmem:[#allocation3 + $0x20] sm:$0xff] %vm10343_vm6, %v4355_v63 }
 0x1f7   : > { %v3240_v60 = vsel %vm10354_vm9, %v3208_v29, -inf  ;;  %vm10356_vm15 = vnez %v10355_v54  ;;  %v8147_v37 = vmax.f32 %v3546_v34, %v10357_v11  ;;  %v8151_v38 = vld [vmem:[#allocation3 + $0x70] sm:$0xff]  ;;  %v8153_v48 = vld [vmem:[#allocation3 + $0x78] sm:$0xff]  ;;  %v3520_v29 = vmax.f32 %v3486_v43, %v8138_v26  ;;  %v8172_v28 = vld [vmem:[#allocation3 + $0x88] sm:$0xff] }
 0x1f8   : > { %v3242_v21 = vsel %vm10356_vm15, %v3210_v30, -inf  ;;  %v8161_v30 = vld [vmem:[#allocation3 + $0x60] sm:$0xff]  ;;  %v3458_v31 = vmax.f32 %v8149_v8, %v7999_v59  ;;  %v3459_v14 = vmax.f32 %v8151_v38, %v8136_v56  ;;  %v3460_v42 = vmax.f32 %v8153_v48, %v8138_v26  ;;  %vm10364_vm15 = vmmov %vm10360_vm14  ;;  %v8189_v51 = vld [vmem:[#allocation3 + $0x90] sm:$0xff] }
 0x1f9   : > { %10358 = vst [vmem:[#allocation9_spill] sm:$0xff] %v8147_v37  ;;  %10359 = vst [vmem:[#allocation64_spill] sm:$0xff] %v8161_v30  ;;  %v3551_v34 = vmax.f32 %v3517_v4, %v8136_v56  ;;  %v3487_v43 = vmax.f32 %v3455_v20, %v7997_v19  ;;  %v3488_v63 = vmax.f32 %v3456_v18, %v7999_v59  ;;  %vm10363_vm6 = vnez %v10362_v9  ;;  %v3302_v18 = vld [vmem:[#allocation2 + $0xaa] sm:$0xff]  ;;  %v8191_v13 = vld [vmem:[#allocation3 + $0x98] sm:$0xff] }
 0x1fa   : > { %3970 = vst.msk [vmem:[#allocation2 + $0x118] sm:$0xff] %vm10360_vm14, %v8147_v37  ;;  %v8177_v11 = vmax.f32 %v3520_v29, %v8149_v8  ;;  %v3244_v35 = vsel %vm10363_vm6, %v3212_v16, -inf  ;;  %v3490_v36 = vmax.f32 %v3458_v31, %v8138_v26  ;;  %v3491_v4 = vmax.f32 %v3459_v14, %v8161_v30  ;;  %v3304_v37 = vld [vmem:[#allocation2 + $0xba] sm:$0xff]  ;;  %vm10365_vm6 = vmmov %vm10360_vm14  ;;  %v3306_v54 = vld [vmem:[#allocation2 + $0xca] sm:$0xff] }
 0x1fb   : > { %v3492_v17 = vmax.f32 %v3460_v42, %v8149_v8  ;;  %5863 = vmatprep.mubr.msk.f32.mxu1 %vm10360_vm14, %v3551_v34  ;;  %3941 = vst.msk [vmem:[#allocation2 + $0x30] sm:$0xff] %vm10364_vm15, %v3551_v34  ;;  %v3269_v20 = vmax.f32 %v8133_v44, %v3205_v61  ;;  %v8187_v29 = vld [vmem:[#allocation3 + $0x80] sm:$0xff]  ;;  %v3521_v16 = vmax.f32 %v3487_v43, %v8161_v30  ;;  %vm10375_vm9 = vmmov %vm10360_vm14 }
 0x1fc   : > { %10361 = vst [vmem:[#allocation65_spill] sm:$0xff] %v8177_v11  ;;  %v3522_v31 = vmax.f32 %v3488_v63, %v8149_v8  ;;  %3944 = vst.msk [vmem:[#allocation2 + $0x48] sm:$0xff] %vm10365_vm6, %v8177_v11  ;;  %v3270_v14 = vmax.f32 %v3174_v27, %v3238_v32  ;;  %v3272_v42 = vmax.f32 %v3176_v45, %v3240_v60  ;;  %v3308_v23 = vld [vmem:[#allocation2 + $0xda] sm:$0xff]  ;;  %v10373_v32 = vld [vmem:[#allocation46_spill] sm:$0xff] }
 0x1fd   : > { %v3524_v34 = vmax.f32 %v3490_v36, %v8153_v48  ;;  %v3525_v61 = vmax.f32 %v3491_v4, %v8187_v29  ;;  %v3526_v44 = vmax.f32 %v3492_v17, %v8172_v28  ;;  %v3274_v9 = vmax.f32 %v3178_v0, %v3242_v21  ;;  %v10368_v39 = vld [vmem:[#allocation36_spill] sm:$0xff]  ;;  %v10378_v21 = vld [vmem:[#allocation63_spill] sm:$0xff]  ;;  %vm10380_vm2 = vmmov %vm10375_vm9 }
 0x1fe   : > { %v8201_v46 = vmax.f32 %v3521_v16, %v8151_v38  ;;  %v8204_v43 = vmax.f32 %v3522_v31, %v8153_v48  ;;  %v3276_v63 = vmax.f32 %v3180_v49, %v3244_v35  ;;  %vm10369_vm15 = vnez %v10368_v39  ;;  %v3301_v0 = vld [vmem:[#allocation2 + $0xa2] sm:$0xff]  ;;  %v10376_v35 = vld [vmem:[#allocation54_spill] sm:$0xff] }
 0x1ff   : > { %v3334_v27 = vsel %vm10369_vm15, %v3302_v18, -inf  ;;  %v8209_v45 = vmax.f32 %v3524_v34, %v8172_v28  ;;  %v8212_v36 = vmax.f32 %v3525_v61, %v8189_v51  ;;  %v8215_v17 = vmax.f32 %v3526_v44, %v8191_v13  ;;  %v3015_v31 = vld [vmem:[#allocation2 + $0xaf] sm:$0xff]  ;;  %v3017_v34 = vld [vmem:[#allocation2 + $0xbf] sm:$0xff] }
 0x200   : > { %10366 = vst [vmem:[#allocation67_spill] sm:$0xff] %v8201_v46  ;;  %10367 = vst [vmem:[#allocation69_spill] sm:$0xff] %v8204_v43  ;;  %vm10374_vm6 = vnez %v10373_v32  ;;  %vm10377_vm15 = vnez %v10376_v35  ;;  %vm10379_vm0 = vnez %v10378_v21  ;;  %v3365_v18 = vmax.f32 %v3269_v20, %v3301_v0  ;;  %v3021_v20 = vld [vmem:[#allocation2 + $0xdf] sm:$0xff]  ;;  %v10393_v32 = vld [vmem:[#allocation50_spill] sm:$0xff] }
 0x201   : > { %10370 = vst [vmem:[#allocation61_spill] sm:$0xff] %v8209_v45  ;;  %10371 = vst [vmem:[#allocation66_spill] sm:$0xff] %v8212_v36  ;;  %v3336_v60 = vsel %vm10374_vm6, %v3304_v37, -inf  ;;  %v3338_v49 = vsel %vm10377_vm15, %v3306_v54, -inf  ;;  %v3340_v4 = vsel %vm10379_vm0, %v3308_v23, -inf  ;;  %v3366_v16 = vmax.f32 %v3270_v14, %v3334_v27  ;;  %v10383_v54 = vld [vmem:[#allocation21_spill] sm:$0xff] }
 0x202   : > { %10372 = vst [vmem:[#allocation57_spill] sm:$0xff] %v8215_v17  ;;  %3945 = vst.msk [vmem:[#allocation2 + $0x50] sm:$0xff] %vm10360_vm14, %v8201_v46  ;;  %v3368_v37 = vmax.f32 %v3272_v42, %v3336_v60  ;;  %v3370_v61 = vmax.f32 %v3274_v9, %v3338_v49  ;;  %v3372_v44 = vmax.f32 %v3276_v63, %v3340_v4  ;;  %v3019_v23 = vld [vmem:[#allocation2 + $0xcf] sm:$0xff]  ;;  %v2985_v35 = vld [vmem:[#allocation2 + $0xc0] sm:$0xff] }
 0x203   : > { %3946 = vst.msk [vmem:[#allocation2 + $0x58] sm:$0xff] %vm10375_vm9, %v8204_v43  ;;  %vm10381_vm6 = vmmov %vm10380_vm2  ;;  %v3452_v21 = vmax.f32 %v7987_v41, %v10383_v54  ;;  %v8237_v14 = vld [vmem:[#allocation3 + $0xe8] sm:$0xff]  ;;  %v3457_v27 = vmax.f32 %v8161_v30, %v7997_v19  ;;  %v3461_v0 = vmax.f32 %v8187_v29, %v8161_v30  ;;  %v3462_v9 = vmax.f32 %v8172_v28, %v8149_v8  ;;  %v2983_v60 = vld [vmem:[#allocation2 + $0xb0] sm:$0xff] }
 0x204   : > { %3948 = vst.msk [vmem:[#allocation2 + $0x68] sm:$0xff] %vm10380_vm2, %v8209_v45  ;;  %vm10382_vm14 = vmmov %vm10380_vm2  ;;  %v3464_v41 = vmax.f32 %v8191_v13, %v8153_v48  ;;  %v3478_v42 = vmax.f32 %v8124_v33, %v8237_v14  ;;  %v10389_v49 = vld [vmem:[#allocation30_spill] sm:$0xff]  ;;  %v10407_v47 = vld [vmem:[#allocation44_spill] sm:$0xff] }
 0x205   : > { %3949 = vst.msk [vmem:[#allocation2 + $0x70] sm:$0xff] %vm10381_vm6, %v8212_v36  ;;  %vm10384_vm9 = vmmov %vm10380_vm2  ;;  %v3484_v63 = vmax.f32 %v3452_v21, %v10341_v15  ;;  %v2987_v54 = vld [vmem:[#allocation2 + $0xd0] sm:$0xff] }
 0x206   : > { %3950 = vst.msk [vmem:[#allocation2 + $0x78] sm:$0xff] %vm10382_vm14, %v8215_v17  ;;  %vm10385_vm0 = vmmov %vm10380_vm2  ;;  %v3510_v15 = vmax.f32 %v3478_v42, %v8103_v25  ;;  %v8277_v42 = vld [vmem:[#allocation2 + $0xae] sm:$0xff] }
 0x207   : > { %3397 = vst.msk [vmem:[#allocation3 + $0xa0] sm:$0xff] %vm10384_vm9, %v3365_v18  ;;  %vm10386_vm2 = vmmov %vm10385_vm0  ;;  %v10391_v18 = vld [vmem:[#allocation41_spill] sm:$0xff]  ;;  %v3518_v21 = vmax.f32 %v3484_v63, %v7999_v59  ;;  %v8279_v59 = vld [vmem:[#allocation2 + $0xbe] sm:$0xff] }
 0x208   : > { %3398 = vst.msk [vmem:[#allocation3 + $0xa8] sm:$0xff] %vm10385_vm0, %v3366_v16  ;;  %vm10387_vm6 = vmmov %vm10385_vm0  ;;  %vm10392_vm9 = vnez %v10391_v18  ;;  %v3489_v16 = vmax.f32 %v3457_v27, %v8136_v56  ;;  %v10395_v18 = vld [vmem:[#allocation59_spill] sm:$0xff]  ;;  %v8281_v63 = vld [vmem:[#allocation2 + $0xce] sm:$0xff] }
 0x209   : > { %3400 = vst.msk [vmem:[#allocation3 + $0xb8] sm:$0xff] %vm10386_vm2, %v3368_v37  ;;  %vm10388_vm14 = vmmov %vm10385_vm0  ;;  %vm10390_vm0 = vnez %v10389_v49  ;;  %v3049_v8 = vsel %vm10392_vm9, %v3017_v34, -inf  ;;  %v3493_v37 = vmax.f32 %v3461_v0, %v8151_v38  ;;  %vm10394_vm2 = vnez %v10393_v32  ;;  %v3977_v32 = vld [vmem:[#allocation2 + $0x50] sm:$0xff] }
 0x20a   : > { %3402 = vst.msk [vmem:[#allocation3 + $0xc8] sm:$0xff] %vm10387_vm6, %v3370_v61  ;;  %v3047_v4 = vsel %vm10390_vm0, %v3015_v31, -inf  ;;  %v8260_v61 = vmax.f32 %v3462_v9, %v8153_v48  ;;  %v2989_v31 = vld [vmem:[#allocation2 + $0xe0] sm:$0xff]  ;;  %v3051_v34 = vsel %vm10394_vm2, %v3019_v23, -inf  ;;  %vm10396_vm6 = vnez %v10395_v18  ;;  %v4009_v23 = vld [vmem:[#allocation2 + $0x4f] sm:$0xff] }
 0x20b   : > { %3404 = vst.msk [vmem:[#allocation3 + $0xd8] sm:$0xff] %vm10388_vm14, %v3372_v44  ;;  %v8263_v44 = vmax.f32 %v3464_v41, %v8172_v28  ;;  %v3053_v27 = vsel %vm10396_vm6, %v3021_v20, -inf  ;;  %v3523_v0 = vmax.f32 %v3489_v16, %v8151_v38  ;;  %v3527_v48 = vmax.f32 %v3493_v37, %v8189_v51  ;;  %v4105_v39 = vld [vmem:[#allocation2 + $0x4e] sm:$0xff] }
 0x20c   : > { %v8275_v41 = vmax.f32 %v2983_v60, %v3047_v4  ;;  %v3544_v20 = vmax.f32 %v3510_v15, %v8105_v40  ;;  %v3552_v16 = vmax.f32 %v3518_v21, %v8138_v26  ;;  %v8285_v18 = vmax.f32 %v2985_v35, %v3049_v8  ;;  %v3981_v9 = vld [vmem:[#allocation2 + $0x70] sm:$0xff] }
 0x20d   : > { %v8287_v37 = vmax.f32 %v2987_v54, %v3051_v34  ;;  %v4013_v60 = vld [vmem:[#allocation2 + $0x6f] sm:$0xff]  ;;  %v4041_v49 = vsel %vm10258_vm13, %v4009_v23, -inf  ;;  %v4137_v52 = vsel %vm10280_vm11, %v4105_v39, -inf  ;;  %v8294_v53 = vmax.f32 %v3523_v0, %v8187_v29  ;;  %vm10402_vm13 = vmmov %vm10388_vm14  ;;  %v3982_v30 = vld [vmem:[#allocation2 + $0x78] sm:$0xff] }
 0x20e   : > { %v4109_v58 = vld [vmem:[#allocation2 + $0x6e] sm:$0xff]  ;;  %v8296_v2 = vmax.f32 %v2989_v31, %v3053_v27  ;;  %v4045_v26 = vsel %vm10264_vm3, %v4013_v60, -inf  ;;  %v4073_v35 = vmax.f32 %v3977_v32, %v4041_v49  ;;  %v8303_v54 = vmax.f32 %v3544_v20, %v10350_v3  ;;  %5864 = vmatmul.mubr.msk.f32.gmra.mxu1 %vm10402_vm13, %v3552_v16  ;;  %vm10403_vm14 = vmmov %vm10402_vm13  ;;  %v8307_v39 = vld [vmem:[#allocation3 + $0xa0] sm:$0xff] }
 0x20f   : > { %10399 = vst [vmem:[#allocation72_spill] sm:$0xff] %v8294_v53  ;;  %v4141_v8 = vsel %vm10284_vm4, %v4109_v58, -inf  ;;  %3942 = vst.msk [vmem:[#allocation2 + $0x38] sm:$0xff] %vm10403_vm14, %v3552_v16  ;;  %v4077_v22 = vmax.f32 %v3981_v9, %v4045_v26  ;;  %v3430_v21 = vld [vmem:[#allocation3 + $0xa8] sm:$0xff]  ;;  %v10405_v31 = vld [vmem:[#allocation34_spill] sm:$0xff]  ;;  %vm10408_vm4 = vnez %v10407_v47  ;;  %v8323_v16 = vmax.f32 %v3527_v48, %v8307_v39 }
 0x210   : > { %10401 = vst [vmem:[#allocation56_spill] sm:$0xff] %v8303_v54  ;;  %vm10404_vm11 = vmmov %vm10402_vm13  ;;  %vm10406_vm3 = vnez %v10405_v31  ;;  %v10409_v3 = vld [vmem:[#allocation53_spill] sm:$0xff]  ;;  %v4169_v34 = vmax.f32 %v4073_v35, %v4137_v52  ;;  %v3432_v27 = vld [vmem:[#allocation3 + $0xb8] sm:$0xff]  ;;  %v3466_v23 = vmax.f32 %v3430_v21, %v8172_v28  ;;  %v3530_v20 = vmax.f32 %v8263_v44, %v3430_v21 }
 0x211   : > { %3947 = vst.msk [vmem:[#allocation2 + $0x60] sm:$0xff] %vm10404_vm11, %v8294_v53  ;;  %vm10410_vm13 = vnez %v10409_v3  ;;  %v3434_v0 = vld [vmem:[#allocation3 + $0xc8] sm:$0xff]  ;;  %10411 = vst [vmem:[#allocation4_spill] sm:$0xff] %v8323_v16  ;;  %v4173_v60 = vmax.f32 %v4077_v22, %v4141_v8  ;;  %v4201_v4 = vld [vmem:[#allocation2 + $0x51] sm:$0xff]  ;;  %v3468_v15 = vmax.f32 %v3432_v27, %v8191_v13  ;;  %v10424_v12 = vsel %vm10406_vm3, %v8277_v42, -inf }
 0x212   : > { %v3436_v9 = vld [vmem:[#allocation3 + $0xd8] sm:$0xff]  ;;  %vm10412_vm14 = vmmov %vm10404_vm11  ;;  %v3470_v26 = vmax.f32 %v3434_v0, %v3430_v21  ;;  %v4265_v35 = vmax.f32 %v4169_v34, %v4201_v4  ;;  %v3474_v58 = vmax.f32 %v8237_v14, %v3434_v0  ;;  %v3498_v44 = vmax.f32 %v3466_v23, %v8191_v13  ;;  %3951 = vst.msk [vmem:[#allocation2 + $0x80] sm:$0xff] %vm10404_vm11, %v8323_v16  ;;  %v3980_v53 = vld [vmem:[#allocation2 + $0x68] sm:$0xff] }
 0x213   : > { %3968 = vst.msk [vmem:[#allocation2 + $0x108] sm:$0xff] %vm10412_vm14, %v8303_v54  ;;  %v3472_v49 = vmax.f32 %v3436_v9, %v3432_v27  ;;  %v4205_v52 = vld [vmem:[#allocation2 + $0x71] sm:$0xff]  ;;  %v3476_v28 = vmax.f32 %v8103_v25, %v3436_v9  ;;  %v3500_v54 = vmax.f32 %v3468_v15, %v3430_v21  ;;  %vm10413_vm14 = vmmov %vm10404_vm11  ;;  %v3175_v5 = vmax.f32 %v8275_v41, %v10424_v12 }
 0x214   : > { %v4269_v48 = vmax.f32 %v4173_v60, %v4205_v52  ;;  %v4297_v32 = vld [vmem:[#allocation2 + $0x52] sm:$0xff]  ;;  %v3502_v8 = vmax.f32 %v3470_v26, %v3432_v27  ;;  %v3506_v36 = vmax.f32 %v3474_v58, %v3436_v9  ;;  %v3532_v34 = vmax.f32 %v3498_v44, %v3432_v27  ;;  %v3117_v52 = vld [vmem:[#allocation2 + $0xde] sm:$0xff]  ;;  %vm10417_vm6 = vmmov %vm10404_vm11 }
 0x215   : > { %v3504_v22 = vmax.f32 %v3472_v49, %v3434_v0  ;;  %v4301_v7 = vld [vmem:[#allocation2 + $0x72] sm:$0xff]  ;;  %v4361_v17 = vmax.f32 %v4265_v35, %v4297_v32  ;;  %v3508_v45 = vmax.f32 %v3476_v28, %v8237_v14  ;;  %v3534_v46 = vmax.f32 %v3500_v54, %v3434_v0  ;;  %v4204_v35 = vld [vmem:[#allocation2 + $0x69] sm:$0xff]  ;;  %v8345_v44 = vld [vmem:[#allocation2 + $0xc1] sm:$0xff] }
 0x216   : > { %v3978_v4 = vld [vmem:[#allocation2 + $0x58] sm:$0xff]  ;;  %v4365_v43 = vmax.f32 %v4269_v48, %v4301_v7  ;;  %v3536_v11 = vmax.f32 %v3502_v8, %v3436_v9  ;;  %v3540_v49 = vmax.f32 %v3506_v36, %v8103_v25  ;;  %v10414_v58 = vmax.f32 %v8260_v61, %v8191_v13  ;;  %v3305_v8 = vld [vmem:[#allocation2 + $0xc2] sm:$0xff]  ;;  %vm10418_vm15 = vmmov %vm10417_vm6 }
 0x217   : > { %v3538_v23 = vmax.f32 %v3504_v22, %v8237_v14  ;;  %v4010_v16 = vld [vmem:[#allocation2 + $0x57] sm:$0xff]  ;;  %4393 = vst.msk [vmem:[#allocation3 + $0x50] sm:$0xff] %vm10413_vm14, %v4361_v17  ;;  %v3542_v32 = vmax.f32 %v3508_v45, %v8124_v33  ;;  %v8343_v7 = vmax.f32 %v3530_v20, %v3432_v27  ;;  %v8350_v36 = vmax.f32 %v3532_v34, %v3434_v0  ;;  %v4300_v27 = vld [vmem:[#allocation2 + $0x6a] sm:$0xff]  ;;  %v8360_v20 = vld [vmem:[#allocation2 + $0xe1] sm:$0xff] }
 0x218   : > { %v4014_v60 = vld [vmem:[#allocation2 + $0x77] sm:$0xff]  ;;  %v8341_v15 = vmax.f32 %v10414_v58, %v3430_v21  ;;  %v4012_v54 = vld [vmem:[#allocation2 + $0x67] sm:$0xff]  ;;  %4397 = vst.msk [vmem:[#allocation3 + $0x70] sm:$0xff] %vm10404_vm11, %v4365_v43  ;;  %v8352_v45 = vmax.f32 %v3534_v46, %v3436_v9  ;;  %v8355_v13 = vmax.f32 %v3536_v11, %v8237_v14  ;;  %v8363_v22 = vmax.f32 %v3540_v49, %v8124_v33  ;;  %vm10415_vm14 = vmmov %vm10404_vm11 }
 0x219   : > { %v4202_v26 = vld [vmem:[#allocation2 + $0x59] sm:$0xff]  ;;  %v3207_v28 = vld [vmem:[#allocation2 + $0xb1] sm:$0xff]  ;;  %v8358_v61 = vmax.f32 %v3538_v23, %v8103_v25  ;;  %v8366_v43 = vmax.f32 %v3542_v32, %v8105_v40  ;;  %v4074_v0 = vmax.f32 %v3978_v4, %v4010_v16  ;;  %v4076_v46 = vmax.f32 %v3980_v53, %v4012_v54  ;;  %3954 = vst.msk [vmem:[#allocation2 + $0x98] sm:$0xff] %vm10404_vm11, %v8343_v7  ;;  %v3309_v11 = vld [vmem:[#allocation2 + $0xe2] sm:$0xff] }
 0x21a   : > { %v8347_v48 = vld [vmem:[#allocation2 + $0xd1] sm:$0xff]  ;;  %v4298_v21 = vld [vmem:[#allocation2 + $0x5a] sm:$0xff]  ;;  %3952 = vst.msk [vmem:[#allocation2 + $0x88] sm:$0xff] %vm10415_vm14, %v8341_v15  ;;  %v4078_v14 = vmax.f32 %v3982_v30, %v4014_v60  ;;  %v4108_v34 = vld [vmem:[#allocation2 + $0x66] sm:$0xff]  ;;  %v4234_v33 = vsel %vm10308_vm8, %v4202_v26, -inf  ;;  %v4236_v40 = vsel %vm10310_vm1, %v4204_v35, -inf  ;;  %v3271_v42 = vmax.f32 %v3175_v5, %v3207_v28 }
 0x21b   : > { %v3303_v17 = vld [vmem:[#allocation2 + $0xb2] sm:$0xff]  ;;  %v4302_v16 = vld [vmem:[#allocation2 + $0x7a] sm:$0xff]  ;;  %v4330_v53 = vsel %vm10320_vm12, %v4298_v21, -inf  ;;  %vm10416_vm14 = vmmov %vm10404_vm11  ;;  %3960 = vst.msk [vmem:[#allocation2 + $0xc8] sm:$0xff] %vm10417_vm6, %v8355_v13  ;;  %v4172_v1 = vmax.f32 %v4076_v46, %v4108_v34  ;;  %v4332_v6 = vsel %vm10322_vm7, %v4300_v27, -inf  ;;  %vm10421_vm12 = vnez %v10323_v50 }
 0x21c   : > { %v4106_v9 = vld [vmem:[#allocation2 + $0x56] sm:$0xff]  ;;  %3956 = vst.msk [vmem:[#allocation2 + $0xa8] sm:$0xff] %vm10416_vm14, %v8350_v36  ;;  %vm10419_vm1 = vmmov %vm10417_vm6  ;;  %v4334_v49 = vsel %vm10421_vm12, %v4302_v16, -inf  ;;  %v10425_v35 = vsel %vm10408_vm4, %v8279_v59, -inf  ;;  %v10426_v50 = vsel %vm10410_vm13, %v8281_v63, -inf  ;;  %v3453_v41 = vmax.f32 %v7997_v19, %v10347_v24  ;;  %v4011_v34 = vld [vmem:[#allocation2 + $0x5f] sm:$0xff] }
 0x21d   : > { %v3307_v25 = vld [vmem:[#allocation2 + $0xd2] sm:$0xff]  ;;  %3958 = vst.msk [vmem:[#allocation2 + $0xb8] sm:$0xff] %vm10404_vm11, %v8352_v45  ;;  %v4170_v30 = vmax.f32 %v4074_v0, %v4106_v9  ;;  %vm10420_vm8 = vmmov %vm10419_vm1  ;;  %v4268_v26 = vmax.f32 %v4172_v1, %v4236_v40  ;;  %v3177_v21 = vmax.f32 %v8285_v18, %v10425_v35  ;;  %v3979_v28 = vld [vmem:[#allocation2 + $0x60] sm:$0xff] }
 0x21e   : > { %v4206_v23 = vld [vmem:[#allocation2 + $0x79] sm:$0xff]  ;;  %3962 = vst.msk [vmem:[#allocation2 + $0xd8] sm:$0xff] %vm10418_vm15, %v8358_v61  ;;  %v10422_v32 = vld [vmem:[#allocation62_spill] sm:$0xff]  ;;  %vm10427_vm7 = vmmov %vm10419_vm1 }
 0x21f   : > { %v4110_v57 = vld [vmem:[#allocation2 + $0x76] sm:$0xff]  ;;  %v4238_v4 = vsel %vm10311_vm5, %v4206_v23, -inf  ;;  %3966 = vst.msk [vmem:[#allocation2 + $0xf8] sm:$0xff] %vm10419_vm1, %v8366_v43  ;;  %vm10423_vm15 = vnez %v10422_v32  ;;  %v4266_v54 = vmax.f32 %v4170_v30, %v4234_v33  ;;  %v3273_v59 = vmax.f32 %v3177_v21, %v8345_v44  ;;  %v4015_v40 = vld [vmem:[#allocation2 + $0x7f] sm:$0xff]  ;;  %vm10428_vm5 = vmmov %vm10419_vm1 }
 0x220   : > { %3964 = vst.msk [vmem:[#allocation2 + $0xe8] sm:$0xff] %vm10420_vm8, %v8363_v22  ;;  %v4174_v60 = vmax.f32 %v4078_v14, %v4110_v57  ;;  %v3149_v58 = vsel %vm10423_vm15, %v3117_v52, -inf  ;;  %v3179_v52 = vmax.f32 %v8287_v37, %v10426_v50  ;;  %v8414_v46 = vld [vmem:[#allocation3 + $0x110] sm:$0xff]  ;;  %v4364_v14 = vmax.f32 %v4268_v26, %v4332_v6  ;;  %vm10429_vm6 = vmmov %vm10419_vm1  ;;  %v4111_v30 = vld [vmem:[#allocation2 + $0x7e] sm:$0xff] }
 0x221   : > { %v3181_v0 = vmax.f32 %v8296_v2, %v3149_v58  ;;  %v4362_v9 = vmax.f32 %v4266_v54, %v4330_v53  ;;  %v3367_v37 = vmax.f32 %v3271_v42, %v3303_v17  ;;  %v8421_v33 = vld [vmem:[#allocation3 + $0xf0] sm:$0xff]  ;;  %v3463_v2 = vmax.f32 %v8189_v51, %v8151_v38  ;;  %v3983_v17 = vld [vmem:[#allocation2 + $0x80] sm:$0xff]  ;;  %vm10430_vm14 = vmmov %vm10419_vm1 }
 0x222   : > { %v4270_v27 = vmax.f32 %v4174_v60, %v4238_v4  ;;  %v3275_v18 = vmax.f32 %v3179_v52, %v8347_v48  ;;  %4396 = vst.msk [vmem:[#allocation3 + $0x68] sm:$0xff] %vm10428_vm5, %v4364_v14  ;;  %v3369_v19 = vmax.f32 %v3273_v59, %v3305_v8  ;;  %v3465_v44 = vmax.f32 %v8307_v39, %v8187_v29  ;;  %v8433_v38 = vld [vmem:[#allocation3 + $0x100] sm:$0xff]  ;;  %v4005_v1 = vld [vmem:[#allocation2 + $0x2f] sm:$0xff]  ;;  %vm10433_vm8 = vmmov %vm10419_vm1 }
 0x223   : > { %v3277_v63 = vmax.f32 %v3181_v0, %v8360_v20  ;;  %4394 = vst.msk [vmem:[#allocation3 + $0x58] sm:$0xff] %vm10427_vm7, %v4362_v9  ;;  %v3479_v48 = vmax.f32 %v8414_v46, %v8421_v33  ;;  %v4107_v20 = vld [vmem:[#allocation2 + $0x5e] sm:$0xff]  ;;  %v3485_v53 = vmax.f32 %v3453_v41, %v7985_v10  ;;  %v3495_v8 = vmax.f32 %v3463_v2, %v8187_v29  ;;  %vm10436_vm7 = vmmov %vm10419_vm1  ;;  %v4101_v5 = vld [vmem:[#allocation2 + $0x2e] sm:$0xff] }
 0x224   : > { %v4366_v23 = vmax.f32 %v4270_v27, %v4334_v49  ;;  %v3371_v24 = vmax.f32 %v3275_v18, %v3307_v25  ;;  %3399 = vst.msk [vmem:[#allocation3 + $0xb0] sm:$0xff] %vm10430_vm14, %v3367_v37  ;;  %v10431_v25 = vld [vmem:[#allocation55_spill] sm:$0xff]  ;;  %v3973_v49 = vld [vmem:[#allocation2 + $0x30] sm:$0xff]  ;;  %v3497_v10 = vmax.f32 %v3465_v44, %v8189_v51  ;;  %vm10437_vm5 = vnez %v10281_v55  ;;  %v3972_v54 = vld [vmem:[#allocation2 + $0x28] sm:$0xff] }
 0x225   : > { %v3373_v16 = vmax.f32 %v3277_v63, %v3309_v11  ;;  %vm10432_vm11 = vnez %v10431_v25  ;;  %3401 = vst.msk [vmem:[#allocation3 + $0xc0] sm:$0xff] %vm10419_vm1, %v3369_v19  ;;  %v3511_v4 = vmax.f32 %v3479_v48, %v8433_v38  ;;  %v10434_v11 = vld [vmem:[#allocation23_spill] sm:$0xff]  ;;  %v3519_v29 = vmax.f32 %v3485_v53, %v8136_v56  ;;  %v4004_v26 = vld [vmem:[#allocation2 + $0x27] sm:$0xff]  ;;  %v10439_v27 = vld [vmem:[#allocation22_spill] sm:$0xff] }
 0x226   : > { %4398 = vst.msk [vmem:[#allocation3 + $0x78] sm:$0xff] %vm10429_vm6, %v4366_v23  ;;  %v4043_v57 = vsel %vm10432_vm11, %v4011_v34, -inf  ;;  %vm10435_vm12 = vnez %v10434_v11  ;;  %v4139_v12 = vsel %vm10437_vm5, %v4107_v20, -inf  ;;  %v8449_v35 = vld [vmem:[#allocation3 + $0x120] sm:$0xff]  ;;  %vm10438_vm6 = vnez %v10052_v62  ;;  %v8460_v55 = vld [vmem:[#allocation2 + $0x29] sm:$0xff]  ;;  %v3974_v23 = vld [vmem:[#allocation2 + $0x38] sm:$0xff] }
 0x227   : > { %3403 = vst.msk [vmem:[#allocation3 + $0xd0] sm:$0xff] %vm10433_vm8, %v3371_v24  ;;  %v4047_v6 = vsel %vm10435_vm12, %v4015_v40, -inf  ;;  %v4075_v60 = vmax.f32 %v3979_v28, %v4043_v57  ;;  %v3545_v21 = vmax.f32 %v3511_v4, %v8449_v35  ;;  %v4143_v50 = vsel %vm10438_vm6, %v4111_v30, -inf  ;;  %v8456_v42 = vld [vmem:[#allocation3 + $0x20] sm:$0xff]  ;;  %v4006_v62 = vld [vmem:[#allocation2 + $0x37] sm:$0xff]  ;;  %vm10444_vm8 = vmmov %vm10419_vm1 }
 0x228   : > { %3405 = vst.msk [vmem:[#allocation3 + $0xe0] sm:$0xff] %vm10436_vm7, %v3373_v16  ;;  %v4079_v58 = vmax.f32 %v3983_v17, %v4047_v6  ;;  %vm10440_vm14 = vnez %v10439_v27  ;;  %v8458_v56 = vld [vmem:[#allocation3] sm:$0xff]  ;;  %v3529_v41 = vmax.f32 %v3495_v8, %v8307_v39  ;;  %v6232_v63 = vld [vmem:[#allocation3 + $0x130] sm:$0xff]  ;;  %v4068_v24 = vmax.f32 %v3972_v54, %v4004_v26  ;;  %vm10445_vm12 = vmmov %vm10419_vm1 }
 0x229   : > { %v4171_v52 = vmax.f32 %v4075_v60, %v4139_v12  ;;  %v4037_v0 = vsel %vm10440_vm14, %v4005_v1, -inf  ;;  %v10441_v9 = vld [vmem:[#allocation64_spill] sm:$0xff]  ;;  %v8464_v37 = vmax.f32 %v3545_v21, %v6232_v63  ;;  %v4455_v20 = vmax.f32 %v8456_v42, %v8458_v56  ;;  %v10446_v1 = vld [vmem:[#allocation25_spill] sm:$0xff]  ;;  %vm10449_vm5 = vmmov %vm10419_vm1 }
 0x22a   : > { %v3553_v14 = vmax.f32 %v3519_v29, %v10441_v9  ;;  %v4175_v59 = vmax.f32 %v4079_v58, %v4143_v50  ;;  %v4203_v18 = vld [vmem:[#allocation2 + $0x61] sm:$0xff]  ;;  %v4069_v34 = vmax.f32 %v3973_v49, %v4037_v0  ;;  %v4070_v57 = vmax.f32 %v3974_v23, %v4006_v62  ;;  %v10450_v54 = vld [vmem:[#allocation67_spill] sm:$0xff]  ;;  %vm10451_vm6 = vmmov %vm10419_vm1 }
 0x22b   : > { %v4207_v2 = vld [vmem:[#allocation2 + $0x81] sm:$0xff]  ;;  %v4267_v28 = vmax.f32 %v4171_v52, %v4203_v18  ;;  %v3431_v53 = vld [vmem:[#allocation3 + $0xb0] sm:$0xff]  ;;  %3969 = vst.msk [vmem:[#allocation2 + $0x110] sm:$0xff] %vm10445_vm12, %v8464_v37  ;;  %vm10447_vm7 = vnez %v10446_v1  ;;  %vm10452_vm14 = vmmov %vm10419_vm1 }
 0x22c   : > { %v10442_v40 = vld [vmem:[#allocation28_spill] sm:$0xff]  ;;  %5866 = vmatprep.mubr.msk.f32.mxu1 %vm10419_vm1, %v3553_v14  ;;  %v4271_v44 = vmax.f32 %v4175_v59, %v4207_v2  ;;  %3943 = vst.msk [vmem:[#allocation2 + $0x40] sm:$0xff] %vm10444_vm8, %v3553_v14  ;;  %v4228_v4 = vsel %vm10447_vm7, %v8460_v55, -inf  ;;  %v10448_v11 = vld [vmem:[#allocation65_spill] sm:$0xff]  ;;  %v3467_v49 = vmax.f32 %v3431_v53, %v8189_v51  ;;  %v3531_v29 = vmax.f32 %v3497_v10, %v3431_v53  ;;  %vm10455_vm8 = vmmov %vm10419_vm1 }
 0x22d   : > { %vm10443_vm11 = vnez %v10442_v40  ;;  %v4299_v48 = vld [vmem:[#allocation2 + $0x62] sm:$0xff]  ;;  %5867 = vmatmul.mubr.msk.f32.gmra.mxu1 %vm10449_vm5, %v10448_v11  ;;  %v8480_v58 = vmax.f32 %v3529_v41, %v3431_v53  ;;  %v4293_v41 = vld [vmem:[#allocation2 + $0x32] sm:$0xff]  ;;  %vm10456_vm12 = vmmov %vm10419_vm1 }
 0x22e   : > { %v4133_v19 = vsel %vm10443_vm11, %v4101_v5, -inf  ;;  %v4100_v16 = vld [vmem:[#allocation2 + $0x26] sm:$0xff]  ;;  %v4363_v25 = vmax.f32 %v4267_v28, %v4299_v48  ;;  %v3435_v60 = vld [vmem:[#allocation3 + $0xd0] sm:$0xff]  ;;  %5869 = vmatprep.mubr.msk.f32.mxu1 %vm10451_vm6, %v10450_v54  ;;  %v3499_v10 = vmax.f32 %v3467_v49, %v8307_v39  ;;  %vm10453_vm11 = vmmov %vm10419_vm1 }
 0x22f   : > { %v4165_v17 = vmax.f32 %v4069_v34, %v4133_v19  ;;  %v4303_v8 = vld [vmem:[#allocation2 + $0x82] sm:$0xff]  ;;  %v4164_v30 = vmax.f32 %v4068_v24, %v4100_v16  ;;  %v4197_v5 = vld [vmem:[#allocation2 + $0x31] sm:$0xff]  ;;  %v3471_v50 = vmax.f32 %v3435_v60, %v3431_v53  ;;  %v3475_v52 = vmax.f32 %v8421_v33, %v3435_v60  ;;  %3953 = vst.msk [vmem:[#allocation2 + $0x90] sm:$0xff] %vm10419_vm1, %v8480_v58  ;;  %vm10458_vm7 = vmmov %vm10419_vm1 }
 0x230   : > { %v3433_v6 = vld [vmem:[#allocation3 + $0xc0] sm:$0xff]  ;;  %v4367_v12 = vmax.f32 %v4271_v44, %v4303_v8  ;;  %4395 = vst.msk [vmem:[#allocation3 + $0x60] sm:$0xff] %vm10452_vm14, %v4363_v25  ;;  %v4102_v34 = vld [vmem:[#allocation2 + $0x36] sm:$0xff]  ;;  %v10454_v23 = vld [vmem:[#allocation69_spill] sm:$0xff] }
 0x231   : > { %v3437_v26 = vld [vmem:[#allocation3 + $0xe0] sm:$0xff]  ;;  %v3469_v21 = vmax.f32 %v3433_v6, %v8307_v39  ;;  %v4261_v27 = vmax.f32 %v4165_v17, %v4197_v5  ;;  %v8489_v55 = vmax.f32 %v3531_v29, %v3433_v6  ;;  %v3503_v14 = vmax.f32 %v3471_v50, %v3433_v6  ;;  %5870 = vmatmul.mubr.msk.f32.gmra.mxu1 %vm10455_vm8, %v10454_v23  ;;  %v3976_v2 = vld [vmem:[#allocation2 + $0x48] sm:$0xff]  ;;  %vm10459_vm5 = vmmov %vm10419_vm1 }
 0x232   : > { %v3473_v0 = vmax.f32 %v3437_v26, %v3433_v6  ;;  %v3477_v51 = vmax.f32 %v8433_v38, %v3437_v26  ;;  %4399 = vst.msk [vmem:[#allocation3 + $0x80] sm:$0xff] %vm10453_vm11, %v4367_v12  ;;  %v3507_v59 = vmax.f32 %v3475_v52, %v3437_v26  ;;  %v3533_v39 = vmax.f32 %v3499_v10, %v3433_v6  ;;  %v10457_v40 = vld [vmem:[#allocation72_spill] sm:$0xff]  ;;  %v4200_v49 = vld [vmem:[#allocation2 + $0x49] sm:$0xff]  ;;  %vm10463_vm14 = vmmov %vm10419_vm1 }
 0x233   : > { %v3501_v9 = vmax.f32 %v3469_v21, %v3431_v53  ;;  %v4357_v18 = vmax.f32 %v4261_v27, %v4293_v41  ;;  %3955 = vst.msk [vmem:[#allocation2 + $0xa0] sm:$0xff] %vm10456_vm12, %v8489_v55  ;;  %v4166_v28 = vmax.f32 %v4070_v57, %v4102_v34  ;;  %5872 = vmatprep.mubr.msk.f32.mxu1 %vm10458_vm7, %v10457_v40  ;;  %v3975_v48 = vld [vmem:[#allocation2 + $0x40] sm:$0xff]  ;;  %v10460_v57 = vld [vmem:[#allocation37_spill] sm:$0xff]  ;;  %vm10464_vm11 = vmmov %vm10419_vm1 }
 0x234   : > { %v3505_v62 = vmax.f32 %v3473_v0, %v3435_v60  ;;  %v3509_v63 = vmax.f32 %v3477_v51, %v8421_v33  ;;  %v3537_v24 = vmax.f32 %v3503_v14, %v3437_v26  ;;  %v3541_v44 = vmax.f32 %v3507_v59, %v8433_v38  ;;  %v4007_v17 = vld [vmem:[#allocation2 + $0x3f] sm:$0xff]  ;;  %v4008_v6 = vld [vmem:[#allocation2 + $0x47] sm:$0xff]  ;;  %v10467_v51 = vld [vmem:[#allocation66_spill] sm:$0xff] }
 0x235   : > { %v3535_v19 = vmax.f32 %v3501_v9, %v3435_v60  ;;  %v4103_v16 = vld [vmem:[#allocation2 + $0x3e] sm:$0xff]  ;;  %4389 = vst.msk [vmem:[#allocation3 + $0x30] sm:$0xff] %vm10459_vm5, %v4357_v18  ;;  %v4260_v53 = vmax.f32 %v4164_v30, %v4228_v4  ;;  %v8505_v1 = vmax.f32 %v3533_v39, %v3435_v60  ;;  %vm10461_vm6 = vnez %v10460_v57  ;;  %v4292_v29 = vld [vmem:[#allocation2 + $0x2a] sm:$0xff]  ;;  %vm10468_vm8 = vmmov %vm10459_vm5 }
 0x236   : > { %v3539_v8 = vmax.f32 %v3505_v62, %v8421_v33  ;;  %v3543_v25 = vmax.f32 %v3509_v63, %v8414_v46  ;;  %v4039_v11 = vsel %vm10461_vm6, %v4007_v17, -inf  ;;  %v8512_v5 = vmax.f32 %v3537_v24, %v8421_v33  ;;  %v8517_v4 = vld [vmem:[#allocation3 + $0x10] sm:$0xff]  ;;  %v4198_v21 = vld [vmem:[#allocation2 + $0x39] sm:$0xff]  ;;  %v10462_v50 = vld [vmem:[#allocation61_spill] sm:$0xff] }
 0x237   : > { %v8509_v12 = vmax.f32 %v3535_v19, %v3437_v26  ;;  %v8515_v54 = vmax.f32 %v3541_v44, %v8414_v46  ;;  %v4071_v30 = vmax.f32 %v3975_v48, %v4039_v11  ;;  %v4296_v60 = vld [vmem:[#allocation2 + $0x4a] sm:$0xff]  ;;  %5873 = vmatmul.mubr.msk.f32.gmra.mxu1 %vm10463_vm14, %v10462_v50  ;;  %3957 = vst.msk [vmem:[#allocation2 + $0xb0] sm:$0xff] %vm10464_vm11, %v8505_v1  ;;  %v10465_v33 = vld [vmem:[#allocation39_spill] sm:$0xff]  ;;  %vm10469_vm12 = vmmov %vm10459_vm5 }
 0x238   : > { %v8522_v52 = vmax.f32 %v3539_v8, %v8433_v38  ;;  %v8525_v26 = vmax.f32 %v3543_v25, %v8449_v35  ;;  %vm10466_vm1 = vnez %v10465_v33  ;;  %v4072_v27 = vmax.f32 %v3976_v2, %v4008_v6  ;;  %v4294_v0 = vld [vmem:[#allocation2 + $0x3a] sm:$0xff]  ;;  %5875 = vmatprep.mubr.msk.f32.mxu1 %vm10468_vm8, %v10467_v51  ;;  %v3984_v10 = vld [vmem:[#allocation2 + $0x88] sm:$0xff]  ;;  %vm10470_vm7 = vmmov %vm10459_vm5 }
 0x239   : > { %v4135_v46 = vsel %vm10466_vm1, %v4103_v16, -inf  ;;  %v4016_v41 = vld [vmem:[#allocation2 + $0x87] sm:$0xff]  ;;  %3959 = vst.msk [vmem:[#allocation2 + $0xc0] sm:$0xff] %vm10469_vm12, %v8509_v12  ;;  %v8545_v63 = vld [vmem:[#allocation3 + $0x70] sm:$0xff]  ;;  %vm10477_vm1 = vmmov %vm10459_vm5  ;;  %v8557_v8 = vmax.f32 %v4455_v20, %v8517_v4 }
 0x23a   : > { %3961 = vst.msk [vmem:[#allocation2 + $0xd0] sm:$0xff] %vm10470_vm7, %v8512_v5  ;;  %v4167_v38 = vmax.f32 %v4071_v30, %v4135_v46  ;;  %v4199_v35 = vld [vmem:[#allocation2 + $0x41] sm:$0xff]  ;;  %vm10478_vm8 = vmmov %vm10477_vm1  ;;  %v8551_v19 = vld [vmem:[#allocation3 + $0x50] sm:$0xff] }
 0x23b   : > { %3965 = vst.msk [vmem:[#allocation2 + $0xf0] sm:$0xff] %vm10459_vm5, %v8515_v54  ;;  %v4104_v9 = vld [vmem:[#allocation2 + $0x46] sm:$0xff]  ;;  %v4017_v48 = vld [vmem:[#allocation2 + $0x8f] sm:$0xff]  ;;  %v10479_v25 = vld [vmem:[#allocation43_spill] sm:$0xff] }
 0x23c   : > { %v10471_v14 = vld [vmem:[#allocation40_spill] sm:$0xff]  ;;  %v10473_v18 = vld [vmem:[#allocation49_spill] sm:$0xff]  ;;  %3963 = vst.msk [vmem:[#allocation2 + $0xe0] sm:$0xff] %vm10477_vm1, %v8522_v52  ;;  %v4168_v39 = vmax.f32 %v4072_v27, %v4104_v9  ;;  %v4263_v17 = vmax.f32 %v4167_v38, %v4199_v35  ;;  %vm10480_vm12 = vnez %v10479_v25  ;;  %vm10482_vm7 = vmmov %vm10477_vm1 }
 0x23d   : > { %vm10472_vm6 = vnez %v10471_v14  ;;  %vm10474_vm14 = vnez %v10473_v18  ;;  %v10475_v23 = vld [vmem:[#allocation29_spill] sm:$0xff]  ;;  %3967 = vst.msk [vmem:[#allocation2 + $0x100] sm:$0xff] %vm10478_vm8, %v8525_v26  ;;  %v4326_v57 = vsel %vm10480_vm12, %v4294_v0, -inf  ;;  %v3986_v6 = vld [vmem:[#allocation2 + $0x98] sm:$0xff]  ;;  %v10486_v56 = vld [vmem:[#allocation4_spill] sm:$0xff] }
 0x23e   : > { %v4230_v59 = vsel %vm10472_vm6, %v4198_v21, -inf  ;;  %v4232_v34 = vsel %vm10474_vm14, %v4200_v49, -inf  ;;  %vm10476_vm11 = vnez %v10475_v23  ;;  %v4208_v24 = vld [vmem:[#allocation2 + $0x89] sm:$0xff]  ;;  %v10483_v30 = vld [vmem:[#allocation51_spill] sm:$0xff]  ;;  %vm10485_vm6 = vmmov %vm10477_vm1 }
 0x23f   : > { %v4324_v62 = vsel %vm10476_vm11, %v4292_v29, -inf  ;;  %v4262_v2 = vmax.f32 %v4166_v28, %v4230_v59  ;;  %v4304_v44 = vld [vmem:[#allocation2 + $0x8a] sm:$0xff]  ;;  %v4295_v16 = vld [vmem:[#allocation2 + $0x42] sm:$0xff]  ;;  %v4080_v28 = vmax.f32 %v3984_v10, %v4016_v41  ;;  %v4264_v29 = vmax.f32 %v4168_v39, %v4232_v34  ;;  %vm10487_vm14 = vmmov %vm10477_vm1 }
 0x240   : > { %v4356_v40 = vmax.f32 %v4260_v53, %v4324_v62  ;;  %v10481_v11 = vld [vmem:[#allocation57_spill] sm:$0xff]  ;;  %v3985_v53 = vld [vmem:[#allocation2 + $0x90] sm:$0xff]  ;;  %vm10484_vm5 = vnez %v10483_v30  ;;  %v10488_v20 = vld [vmem:[#allocation76_spill] sm:$0xff]  ;;  %v4359_v0 = vmax.f32 %v4263_v17, %v4295_v16  ;;  %v4465_v62 = vmax.f32 %v8545_v63, %v8551_v19 }
 0x241   : > { %5876 = vmatmul.mubr.msk.f32.gmra.mxu1 %vm10482_vm7, %v10481_v11  ;;  %v8563_v49 = vld [vmem:[#allocation3 + $0x30] sm:$0xff]  ;;  %v4328_v21 = vsel %vm10484_vm5, %v4296_v60, -inf  ;;  %v4358_v50 = vmax.f32 %v4262_v2, %v4326_v57  ;;  %vm10489_vm11 = vnez %v10488_v20  ;;  %v8574_v10 = vld [vmem:[#allocation3 + $0x58] sm:$0xff]  ;;  %v4112_v60 = vld [vmem:[#allocation2 + $0x86] sm:$0xff] }
 0x242   : > { %4388 = vst.msk [vmem:[#allocation3 + $0x28] sm:$0xff] %vm10485_vm6, %v4356_v40  ;;  %5878 = vmatprep.mubr.msk.f32.mxu1 %vm10487_vm14, %v10486_v56  ;;  %v4049_v33 = vsel %vm10489_vm11, %v4017_v48, -inf  ;;  %v4113_v46 = vld [vmem:[#allocation2 + $0x8e] sm:$0xff]  ;;  %v4018_v27 = vld [vmem:[#allocation2 + $0x97] sm:$0xff]  ;;  %v4457_v51 = vmax.f32 %v8563_v49, %v8517_v4  ;;  %v4360_v59 = vmax.f32 %v4264_v29, %v4328_v21  ;;  %vm10494_vm12 = vmmov %vm10485_vm6  ;;  %v4176_v23 = vmax.f32 %v4080_v28, %v4112_v60 }
 0x243   : > { %v8576_v41 = vld [vmem:[#allocation3 + $0x78] sm:$0xff]  ;;  %v10490_v38 = vld [vmem:[#allocation78_spill] sm:$0xff]  ;;  %4390 = vst.msk [vmem:[#allocation3 + $0x38] sm:$0xff] %vm10494_vm12, %v4358_v50  ;;  %v8583_v18 = vld [vmem:[#allocation3 + $0x60] sm:$0xff]  ;;  %v4081_v4 = vmax.f32 %v3985_v53, %v4049_v33  ;;  %v4521_v2 = vmax.f32 %v8557_v8, %v8563_v49  ;;  %v4461_v40 = vmax.f32 %v8551_v19, %v8563_v49  ;;  %v4082_v48 = vmax.f32 %v3986_v6, %v4018_v27 }
 0x244   : > { %vm10491_vm1 = vnez %v10490_v38  ;;  %v10492_v9 = vld [vmem:[#allocation79_spill] sm:$0xff]  ;;  %v8585_v34 = vld [vmem:[#allocation3 + $0x80] sm:$0xff]  ;;  %vm10495_vm7 = vmmov %vm10485_vm6  ;;  %v8600_v28 = vmax.f32 %v4465_v62, %v8583_v18  ;;  %v4466_v8 = vmax.f32 %v8576_v41, %v8574_v10  ;;  %v4489_v30 = vmax.f32 %v4457_v51, %v8456_v42 }
 0x245   : > { %v4240_v35 = vsel %vm10491_vm1, %v4208_v24, -inf  ;;  %vm10493_vm8 = vnez %v10492_v9  ;;  %v4019_v39 = vld [vmem:[#allocation2 + $0x9f] sm:$0xff]  ;;  %4391 = vst.msk [vmem:[#allocation3 + $0x40] sm:$0xff] %vm10495_vm7, %v4359_v0  ;;  %v10496_v24 = vld [vmem:[#allocation77_spill] sm:$0xff]  ;;  %5879 = vmatmul.mubr.msk.f32.gmra.mxu1 %vm10485_vm6, %v8341_v15  ;;  %v4114_v17 = vld [vmem:[#allocation2 + $0x96] sm:$0xff]  ;;  %v4467_v33 = vmax.f32 %v8585_v34, %v8583_v18 }
 0x246   : > { %v4336_v14 = vsel %vm10493_vm8, %v4304_v44, -inf  ;;  %vm10497_vm5 = vnez %v10496_v24  ;;  %v4210_v16 = vld [vmem:[#allocation2 + $0x99] sm:$0xff]  ;;  %vm10498_vm14 = vmmov %vm10485_vm6  ;;  %v4272_v57 = vmax.f32 %v4176_v23, %v4240_v35  ;;  %v4020_v15 = vld [vmem:[#allocation2 + $0xa7] sm:$0xff]  ;;  %v4178_v50 = vmax.f32 %v4082_v48, %v4114_v17 }
 0x247   : > { %v4145_v44 = vsel %vm10497_vm5, %v4113_v46, -inf  ;;  %v4306_v25 = vld [vmem:[#allocation2 + $0x9a] sm:$0xff]  ;;  %4392 = vst.msk [vmem:[#allocation3 + $0x48] sm:$0xff] %vm10498_vm14, %v4360_v59  ;;  %vm10499_vm11 = vmmov %vm10485_vm6  ;;  %v4452_v6 = vld [vmem:[#allocation3 + $0x8] sm:$0xff]  ;;  %v4051_v20 = vsel %vm10345_vm10, %v4019_v39, -inf }
 0x248   : > { %v4177_v11 = vmax.f32 %v4081_v4, %v4145_v44  ;;  %5881 = vmatprep.mubr.msk.f32.mxu1 %vm10499_vm11, %v8480_v58  ;;  %v3987_v53 = vld [vmem:[#allocation2 + $0xa0] sm:$0xff]  ;;  %v4209_v21 = vld [vmem:[#allocation2 + $0x91] sm:$0xff]  ;;  %v8611_v27 = vld [vmem:[#allocation3 + $0x68] sm:$0xff]  ;;  %v4368_v58 = vmax.f32 %v4272_v57, %v4336_v14 }
 0x249   : > { %v4115_v29 = vld [vmem:[#allocation2 + $0x9e] sm:$0xff]  ;;  %v10501_v60 = vld [vmem:[#allocation17_spill] sm:$0xff]  ;;  %v4305_v23 = vld [vmem:[#allocation2 + $0x92] sm:$0xff]  ;;  %v4083_v62 = vmax.f32 %v3987_v53, %v4051_v20 }
 0x24a   : > { %v4454_v46 = vld [vmem:[#allocation3 + $0x18] sm:$0xff]  ;;  %v4273_v0 = vmax.f32 %v4177_v11, %v4209_v21  ;;  %vm10502_vm1 = vnez %v10501_v60  ;;  %v10503_v35 = vld [vmem:[#allocation12_spill] sm:$0xff]  ;;  %v3988_v51 = vld [vmem:[#allocation2 + $0xa8] sm:$0xff] }
 0x24b   : > { %v4242_v38 = vsel %vm10502_vm1, %v4210_v16, -inf  ;;  %vm10504_vm8 = vnez %v10503_v35  ;;  %v4420_v59 = vld [vmem:[#allocation3 + $0x28] sm:$0xff]  ;;  %v10505_v39 = vld [vmem:[#allocation75_spill] sm:$0xff]  ;;  %vm10507_vm12 = vmmov %vm10485_vm6  ;;  %v4084_v44 = vmax.f32 %v3988_v51, %v4020_v15  ;;  %v4531_v16 = vmax.f32 %v8600_v28, %v8585_v34 }
 0x24c   : > { %v4338_v9 = vsel %vm10504_vm8, %v4306_v25, -inf  ;;  %v4274_v4 = vmax.f32 %v4178_v50, %v4242_v38  ;;  %vm10506_vm10 = vnez %v10505_v39  ;;  %5882 = vmatmul.mubr.msk.f32.gmra.mxu1 %vm10507_vm12, %v8343_v7  ;;  %v4021_v14 = vld [vmem:[#allocation2 + $0xaf] sm:$0xff]  ;;  %v4456_v48 = vmax.f32 %v4420_v59, %v4452_v6  ;;  %vm10508_vm7 = vmmov %vm10485_vm6  ;;  %v4116_v57 = vld [vmem:[#allocation2 + $0xa6] sm:$0xff] }
 0x24d   : > { %v4147_v24 = vsel %vm10506_vm10, %v4115_v29, -inf  ;;  %4400 = vst.msk [vmem:[#allocation3 + $0x88] sm:$0xff] %vm10508_vm7, %v4368_v58  ;;  %v4369_v17 = vmax.f32 %v4273_v0, %v4305_v23  ;;  %v8625_v25 = vmax.f32 %v4466_v8, %v8611_v27  ;;  %vm10509_vm5 = vmmov %vm10485_vm6  ;;  %v4422_v11 = vld [vmem:[#allocation3 + $0x38] sm:$0xff]  ;;  %v8632_v7 = vmax.f32 %v4467_v33, %v8545_v63  ;;  %v4423_v6 = vld [vmem:[#allocation3 + $0x40] sm:$0xff] }
 0x24e   : > { %5884 = vmatprep.mubr.msk.f32.mxu1 %vm10509_vm5, %v8489_v55  ;;  %v4370_v53 = vmax.f32 %v4274_v4, %v4338_v9  ;;  %v8629_v29 = vmax.f32 %v4083_v62, %v4147_v24  ;;  %v4180_v15 = vmax.f32 %v4084_v44, %v4116_v57  ;;  %v4488_v21 = vmax.f32 %v4456_v48, %v4454_v46  ;;  %vm10510_vm6 = vmmov %vm10509_vm5  ;;  %v4424_v58 = vld [vmem:[#allocation3 + $0x48] sm:$0xff]  ;;  %v3995_v3 = vld [vmem:[#allocation2 + $0xe0] sm:$0xff] }
 0x24f   : > { %v4458_v50 = vmax.f32 %v4422_v11, %v4454_v46  ;;  %v4462_v56 = vmax.f32 %v8574_v10, %v4422_v11  ;;  %4401 = vst.msk [vmem:[#allocation3 + $0x90] sm:$0xff] %vm10510_vm6, %v4369_v17  ;;  %v4053_v20 = vsel %vm10390_vm0, %v4021_v14, -inf  ;;  %v4555_v55 = vmax.f32 %v4521_v2, %v4423_v6  ;;  %vm10512_vm14 = vmmov %vm10509_vm5  ;;  %v4212_v51 = vld [vmem:[#allocation2 + $0xa9] sm:$0xff] }
 0x250   : > { %v4523_v0 = vmax.f32 %v4489_v30, %v4423_v6  ;;  %v4459_v60 = vmax.f32 %v4423_v6, %v8456_v42  ;;  %v4493_v38 = vmax.f32 %v4461_v40, %v4423_v6  ;;  %4402 = vst.msk [vmem:[#allocation3 + $0x98] sm:$0xff] %vm10512_vm14, %v4370_v53  ;;  %vm10513_vm11 = vmmov %vm10509_vm5  ;;  %v4522_v33 = vmax.f32 %v4488_v21, %v4422_v11  ;;  %v4308_v23 = vld [vmem:[#allocation2 + $0xaa] sm:$0xff]  ;;  %v10520_v53 = vld [vmem:[#allocation36_spill] sm:$0xff] }
 0x251   : > { %5885 = vmatmul.mubr.msk.f32.gmra.mxu1 %vm10513_vm11, %v8350_v36  ;;  %v4490_v46 = vmax.f32 %v4458_v50, %v4420_v59  ;;  %v4460_v35 = vmax.f32 %v4424_v58, %v4420_v59  ;;  %v4494_v9 = vmax.f32 %v4462_v56, %v4424_v58  ;;  %vm10514_vm1 = vmmov %vm10509_vm5  ;;  %v4463_v30 = vmax.f32 %v8583_v18, %v4423_v6  ;;  %v3989_v36 = vld [vmem:[#allocation2 + $0xb0] sm:$0xff] }
 0x252   : > { %5887 = vmatprep.mubr.msk.f32.mxu1 %vm10514_vm1, %v8505_v1  ;;  %vm10515_vm0 = vmmov %vm10514_vm1  ;;  %v4557_v2 = vmax.f32 %v4523_v0, %v8551_v19  ;;  %v4491_v42 = vmax.f32 %v4459_v60, %v8563_v49  ;;  %v4527_v40 = vmax.f32 %v4493_v38, %v8583_v18  ;;  %v4556_v4 = vmax.f32 %v4522_v33, %v4424_v58  ;;  %v10516_v49 = vld [vmem:[#allocation33_spill] sm:$0xff]  ;;  %v4022_v33 = vld [vmem:[#allocation2 + $0xb7] sm:$0xff] }
 0x253   : > { %5910 = vmatprep.mubr.msk.f32.mxu0 %vm10515_vm0, %v4555_v55  ;;  %v4524_v62 = vmax.f32 %v4490_v46, %v4424_v58  ;;  %v4492_v59 = vmax.f32 %v4460_v35, %v4422_v11  ;;  %v4528_v39 = vmax.f32 %v4494_v9, %v8611_v27  ;;  %v4495_v1 = vmax.f32 %v4463_v30, %v8551_v19  ;;  %vm10518_vm10 = vmmov %vm10515_vm0  ;;  %v4211_v11 = vld [vmem:[#allocation2 + $0xa1] sm:$0xff]  ;;  %v4117_v55 = vld [vmem:[#allocation2 + $0xae] sm:$0xff] }
 0x254   : > { %v4525_v24 = vmax.f32 %v4491_v42, %v8551_v19  ;;  %v8652_v44 = vld [vmem:[#allocation3 + $0x88] sm:$0xff]  ;;  %v4464_v14 = vmax.f32 %v8611_v27, %v4424_v58  ;;  %vm10517_vm8 = vnez %v10516_v49  ;;  %vm10519_vm12 = vmmov %vm10515_vm0  ;;  %v8662_v57 = vmax.f32 %v4527_v40, %v8545_v63  ;;  %v4310_v42 = vld [vmem:[#allocation2 + $0xba] sm:$0xff] }
 0x255   : > { %v4244_v48 = vsel %vm10517_vm8, %v4212_v51, -inf  ;;  %5888 = vmatmul.mubr.msk.f32.gmra.mxu1 %vm10518_vm10, %v8352_v45  ;;  %5911 = vmatmul.mubr.msk.f32.vlgmr.msra.gmra.mxu0 %vm10519_vm12, %v4556_v4  ;;  %v4526_v17 = vmax.f32 %v4492_v59, %v8574_v10  ;;  %vm10521_vm7 = vnez %v10520_v53  ;;  %v4085_v6 = vmax.f32 %v3989_v36, %v4053_v20  ;;  %vm10522_vm5 = vmmov %vm10515_vm0  ;;  %v4307_v60 = vld [vmem:[#allocation2 + $0xa2] sm:$0xff]  ;;  %v4213_v4 = vld [vmem:[#allocation2 + $0xb1] sm:$0xff] }
 0x256   : > { %v4340_v19 = vsel %vm10521_vm7, %v4308_v23, -inf  ;;  %5913 = vmatprep.mubr.msk.f32.mxu0 %vm10522_vm5, %v4557_v2  ;;  %v4559_v21 = vmax.f32 %v4525_v24, %v8583_v18  ;;  %v4529_v50 = vmax.f32 %v4495_v1, %v8545_v63  ;;  %v4496_v45 = vmax.f32 %v4464_v14, %v8574_v10  ;;  %v8670_v56 = vld [vmem:[#allocation3 + $0x90] sm:$0xff]  ;;  %v3990_v18 = vld [vmem:[#allocation2 + $0xb8] sm:$0xff]  ;;  %vm10523_vm6 = vmmov %vm10515_vm0 }
 0x257   : > { %v4275_v8 = vmax.f32 %v8629_v29, %v4211_v11  ;;  %v4558_v58 = vmax.f32 %v4524_v62, %v8574_v10  ;;  %v8675_v0 = vmax.f32 %v4528_v39, %v8576_v41  ;;  %v4532_v20 = vmax.f32 %v8625_v25, %v8652_v44  ;;  %5890 = vmatprep.mubr.msk.f32.mxu1 %vm10523_vm6, %v8509_v12  ;;  %v8689_v35 = vld [vmem:[#allocation3 + $0x98] sm:$0xff]  ;;  %vm10524_vm14 = vmmov %vm10515_vm0  ;;  %v3991_v40 = vld [vmem:[#allocation2 + $0xc0] sm:$0xff] }
 0x258   : > { %v4276_v38 = vmax.f32 %v4180_v15, %v4244_v48  ;;  %v4560_v46 = vmax.f32 %v4526_v17, %v8611_v27  ;;  %v4530_v29 = vmax.f32 %v4496_v45, %v8576_v41  ;;  %v8687_v10 = vmax.f32 %v4531_v16, %v8670_v56  ;;  %vm10525_vm11 = vmmov %vm10515_vm0  ;;  %v4214_v16 = vld [vmem:[#allocation2 + $0xb9] sm:$0xff]  ;;  %v4024_v30 = vld [vmem:[#allocation2 + $0xc7] sm:$0xff] }
 0x259   : > { %v4371_v25 = vmax.f32 %v4275_v8, %v4307_v60  ;;  %5891 = vmatmul.mubr.msk.f32.gmra.mxu1 %vm10524_vm14, %v8355_v13  ;;  %5914 = vmatmul.mubr.msk.f32.gmra.mxu0 %vm10525_vm11, %v4558_v58  ;;  %v4468_v12 = vmax.f32 %v8652_v44, %v8611_v27  ;;  %v4149_v9 = vsel %vm10406_vm3, %v4117_v55, -inf  ;;  %v4469_v28 = vmax.f32 %v8670_v56, %v8545_v63  ;;  %v4023_v51 = vld [vmem:[#allocation2 + $0xbf] sm:$0xff]  ;;  %vm10526_vm1 = vmmov %vm10515_vm0  ;;  %v3992_v63 = vld [vmem:[#allocation2 + $0xc8] sm:$0xff] }
 0x25a   : > { %v4372_v15 = vmax.f32 %v4276_v38, %v4340_v19  ;;  %5893 = vmatprep.mubr.msk.f32.mxu1 %vm10526_vm1, %v8512_v5  ;;  %5916 = vmatprep.mubr.msk.f32.mxu0 %vm10515_vm0, %v4559_v21  ;;  %v8704_v13 = vmax.f32 %v4529_v50, %v8585_v34  ;;  %vm10527_vm8 = vmmov %vm10515_vm0  ;;  %v4533_v27 = vmax.f32 %v8632_v7, %v8670_v56  ;;  %v4118_v62 = vld [vmem:[#allocation2 + $0xb6] sm:$0xff]  ;;  %v4119_v39 = vld [vmem:[#allocation2 + $0xbe] sm:$0xff]  ;;  %v4055_v11 = vsel %vm10392_vm9, %v4023_v51, -inf }
 0x25b   : > { %4403 = vst.msk [vmem:[#allocation3 + $0xa0] sm:$0xff] %vm10527_vm8, %v4371_v25  ;;  %v4181_v31 = vmax.f32 %v4085_v6, %v4149_v9  ;;  %v4086_v2 = vmax.f32 %v3990_v18, %v4022_v33  ;;  %v8710_v23 = vmax.f32 %v4530_v29, %v8652_v44  ;;  %v8713_v5 = vmax.f32 %v4532_v20, %v8689_v35  ;;  %vm10528_vm3 = vmmov %vm10515_vm0  ;;  %v4309_v1 = vld [vmem:[#allocation2 + $0xb2] sm:$0xff]  ;;  %v10529_v49 = vld [vmem:[#allocation45_spill] sm:$0xff] }
 0x25c   : > { %4404 = vst.msk [vmem:[#allocation3 + $0xa8] sm:$0xff] %vm10528_vm3, %v4372_v15  ;;  %v8717_v36 = vmax.f32 %v4468_v12, %v8576_v41  ;;  %v4470_v59 = vmax.f32 %v8689_v35, %v8576_v41  ;;  %vm10530_vm10 = vnez %v10529_v49  ;;  %v4025_v53 = vld [vmem:[#allocation2 + $0xcf] sm:$0xff]  ;;  %v3994_v19 = vld [vmem:[#allocation2 + $0xd8] sm:$0xff]  ;;  %vm10532_vm12 = vmmov %vm10515_vm0  ;;  %v8729_v6 = vmax.f32 %v4469_v28, %v8585_v34 }
 0x25d   : > { %v4277_v24 = vmax.f32 %v4181_v31, %v4213_v4  ;;  %v4182_v14 = vmax.f32 %v4086_v2, %v4118_v62  ;;  %v4246_v48 = vsel %vm10530_vm10, %v4214_v16, -inf  ;;  %5894 = vmatmul.mubr.msk.f32.gmra.mxu1 %vm10532_vm12, %v8358_v61  ;;  %vm10533_vm7 = vmmov %vm10515_vm0  ;;  %v10534_v41 = vld [vmem:[#allocation46_spill] sm:$0xff]  ;;  %v4087_v50 = vmax.f32 %v3991_v40, %v4055_v11  ;;  %v4120_v18 = vld [vmem:[#allocation2 + $0xc6] sm:$0xff] }
 0x25e   : > { %5917 = vmatmul.mubr.msk.f32.gmra.mxu0 %vm10533_vm7, %v4560_v46  ;;  %vm10535_vm5 = vnez %v10534_v41  ;;  %v4088_v45 = vmax.f32 %v3992_v63, %v4024_v30  ;;  %v4216_v8 = vld [vmem:[#allocation2 + $0xc9] sm:$0xff]  ;;  %v4026_v58 = vld [vmem:[#allocation2 + $0xd7] sm:$0xff]  ;;  %vm10536_vm9 = vmmov %vm10515_vm0  ;;  %v4534_v20 = vmax.f32 %v8717_v36, %v8689_v35  ;;  %v4151_v38 = vsel %vm10408_vm4, %v4119_v39, -inf }
 0x25f   : > { %v4342_v21 = vsel %vm10535_vm5, %v4310_v42, -inf  ;;  %v3993_v55 = vld [vmem:[#allocation2 + $0xd0] sm:$0xff]  ;;  %5919 = vmatprep.mubr.msk.f32.mxu0 %vm10536_vm9, %v8662_v57  ;;  %v4373_v61 = vmax.f32 %v4277_v24, %v4309_v1  ;;  %v4278_v60 = vmax.f32 %v4182_v14, %v4246_v48  ;;  %vm10537_vm6 = vmmov %vm10515_vm0  ;;  %v8742_v29 = vmax.f32 %v4470_v59, %v8652_v44  ;;  %v4218_v9 = vld [vmem:[#allocation2 + $0xd9] sm:$0xff] }
 0x260   : > { %v4312_v33 = vld [vmem:[#allocation2 + $0xca] sm:$0xff]  ;;  %5896 = vmatprep.mubr.msk.f32.mxu1 %vm10537_vm6, %v8522_v52  ;;  %v4183_v25 = vmax.f32 %v4087_v50, %v4151_v38  ;;  %v4184_v15 = vmax.f32 %v4088_v45, %v4120_v18  ;;  %v4057_v12 = vsel %vm10394_vm2, %v4025_v53, -inf  ;;  %v4027_v28 = vld [vmem:[#allocation2 + $0xdf] sm:$0xff]  ;;  %vm10539_vm14 = vmmov %vm10515_vm0  ;;  %v4090_v42 = vmax.f32 %v3994_v19, %v4026_v58 }
 0x261   : > { %v4121_v46 = vld [vmem:[#allocation2 + $0xce] sm:$0xff]  ;;  %4405 = vst.msk [vmem:[#allocation3 + $0xb0] sm:$0xff] %vm10539_vm14, %v4373_v61  ;;  %v4374_v47 = vmax.f32 %v4278_v60, %v4342_v21  ;;  %v4215_v16 = vld [vmem:[#allocation2 + $0xc1] sm:$0xff]  ;;  %v4089_v2 = vmax.f32 %v3993_v55, %v4057_v12  ;;  %vm10542_vm11 = vmmov %vm10515_vm0 }
 0x262   : > { %v10540_v51 = vld [vmem:[#allocation52_spill] sm:$0xff]  ;;  %5897 = vmatmul.mubr.msk.f32.gmra.mxu1 %vm10542_vm11, %v8363_v22  ;;  %vm10543_vm1 = vmmov %vm10515_vm0  ;;  %v4279_v40 = vmax.f32 %v4183_v25, %v4215_v16  ;;  %v10544_v36 = vld [vmem:[#allocation54_spill] sm:$0xff]  ;;  %v4153_v62 = vsel %vm10410_vm13, %v4121_v46, -inf }
 0x263   : > { %vm10541_vm4 = vnez %v10540_v51  ;;  %5920 = vmatmul.mubr.msk.f32.gmra.mxu0 %vm10543_vm1, %v8675_v0  ;;  %v8753_v52 = vld [vmem:[#allocation3 + $0xa0] sm:$0xff]  ;;  %vm10545_vm2 = vnez %v10544_v36  ;;  %5899 = vmatprep.mubr.msk.f32.mxu1 %vm10515_vm0, %v8515_v54  ;;  %vm10546_vm8 = vmmov %vm10515_vm0  ;;  %v8763_v22 = vld [vmem:[#allocation3 + $0xa8] sm:$0xff]  ;;  %v4185_v39 = vmax.f32 %v4089_v2, %v4153_v62 }
 0x264   : > { %v4248_v31 = vsel %vm10541_vm4, %v4216_v8, -inf  ;;  %v4311_v63 = vld [vmem:[#allocation2 + $0xc2] sm:$0xff]  ;;  %v4344_v4 = vsel %vm10545_vm2, %v4312_v33, -inf  ;;  %v4314_v59 = vld [vmem:[#allocation2 + $0xda] sm:$0xff]  ;;  %5922 = vmatprep.mubr.msk.f32.mxu0 %vm10546_vm8, %v8704_v13  ;;  %vm10547_vm3 = vmmov %vm10515_vm0  ;;  %v4471_v0 = vmax.f32 %v8753_v52, %v8585_v34  ;;  %v4567_v54 = vmax.f32 %v4533_v27, %v8753_v52 }
 0x265   : > { %v4280_v30 = vmax.f32 %v4184_v15, %v4248_v31  ;;  %4406 = vst.msk [vmem:[#allocation3 + $0xb8] sm:$0xff] %vm10547_vm3, %v4374_v47  ;;  %v10548_v24 = vld [vmem:[#allocation60_spill] sm:$0xff]  ;;  %v10550_v14 = vld [vmem:[#allocation59_spill] sm:$0xff]  ;;  %v4535_v13 = vmax.f32 %v8729_v6, %v8753_v52  ;;  %v4375_v17 = vmax.f32 %v4279_v40, %v4311_v63  ;;  %v8779_v41 = vmax.f32 %v4534_v20, %v8763_v22  ;;  %v3996_v8 = vld [vmem:[#allocation2 + $0xe8] sm:$0xff] }
 0x266   : > { %vm10549_vm10 = vnez %v10548_v24  ;;  %vm10551_vm13 = vnez %v10550_v14  ;;  %v4028_v48 = vld [vmem:[#allocation2 + $0xe7] sm:$0xff]  ;;  %v4217_v34 = vld [vmem:[#allocation2 + $0xd1] sm:$0xff]  ;;  %v4123_v19 = vld [vmem:[#allocation2 + $0xde] sm:$0xff]  ;;  %v4472_v21 = vmax.f32 %v8763_v22, %v8652_v44  ;;  %v4536_v27 = vmax.f32 %v8742_v29, %v8763_v22 }
 0x267   : > { %v4250_v1 = vsel %vm10549_vm10, %v4218_v9, -inf  ;;  %v4059_v49 = vsel %vm10551_vm13, %v4027_v28, -inf  ;;  %v4376_v11 = vmax.f32 %v4280_v30, %v4344_v4  ;;  %v4122_v53 = vld [vmem:[#allocation2 + $0xd6] sm:$0xff]  ;;  %v4281_v50 = vmax.f32 %v4185_v39, %v4217_v34  ;;  %v4220_v55 = vld [vmem:[#allocation2 + $0xe9] sm:$0xff]  ;;  %vm10552_vm12 = vmmov %vm10515_vm0 }
 0x268   : > { %v4186_v45 = vmax.f32 %v4090_v42, %v4122_v53  ;;  %v4029_v7 = vld [vmem:[#allocation2 + $0xef] sm:$0xff]  ;;  %5900 = vmatmul.mubr.msk.f32.gmra.mxu1 %vm10552_vm12, %v8366_v43  ;;  %vm10553_vm7 = vmmov %vm10515_vm0  ;;  %v10556_v44 = vld [vmem:[#allocation63_spill] sm:$0xff]  ;;  %v4091_v61 = vmax.f32 %v3995_v3, %v4059_v49  ;;  %v4092_v60 = vmax.f32 %v3996_v8, %v4028_v48  ;;  %v8798_v43 = vmax.f32 %v4471_v0, %v8670_v56 }
 0x269   : > { %5923 = vmatmul.mubr.msk.f32.gmra.mxu0 %vm10553_vm7, %v8710_v23  ;;  %vm10554_vm5 = vmmov %vm10515_vm0  ;;  %v4313_v58 = vld [vmem:[#allocation2 + $0xd2] sm:$0xff]  ;;  %vm10557_vm6 = vnez %v10556_v44  ;;  %v4316_v38 = vld [vmem:[#allocation2 + $0xea] sm:$0xff]  ;;  %v4155_v33 = vsel %vm10423_vm15, %v4123_v19, -inf  ;;  %v8809_v51 = vmax.f32 %v4472_v21, %v8689_v35 }
 0x26a   : > { %4407 = vst.msk [vmem:[#allocation3 + $0xc0] sm:$0xff] %vm10554_vm5, %v4375_v17  ;;  %vm10555_vm9 = vmmov %vm10515_vm0  ;;  %v4346_v20 = vsel %vm10557_vm6, %v4314_v59, -inf  ;;  %v4377_v23 = vmax.f32 %v4281_v50, %v4313_v58  ;;  %v4282_v18 = vmax.f32 %v4186_v45, %v4250_v1  ;;  %v4124_v46 = vld [vmem:[#allocation2 + $0xe6] sm:$0xff]  ;;  %v3998_v25 = vld [vmem:[#allocation2 + $0xf8] sm:$0xff]  ;;  %v4187_v12 = vmax.f32 %v4091_v61, %v4155_v33 }
 0x26b   : > { %4408 = vst.msk [vmem:[#allocation3 + $0xc8] sm:$0xff] %vm10555_vm9, %v4376_v11  ;;  %vm10558_vm14 = vmmov %vm10515_vm0  ;;  %v4030_v15 = vld [vmem:[#allocation2 + $0xf7] sm:$0xff]  ;;  %v4188_v9 = vmax.f32 %v4092_v60, %v4124_v46  ;;  %v4125_v16 = vld [vmem:[#allocation2 + $0xee] sm:$0xff] }
 0x26c   : > { %5902 = vmatprep.mubr.msk.f32.mxu1 %vm10558_vm14, %v8525_v26  ;;  %vm10559_vm4 = vmmov %vm10515_vm0  ;;  %v8802_v57 = vld [vmem:[#allocation3 + $0xb0] sm:$0xff]  ;;  %v10562_v47 = vld [vmem:[#allocation7_spill] sm:$0xff]  ;;  %v4378_v31 = vmax.f32 %v4282_v18, %v4346_v20  ;;  %v4094_v0 = vmax.f32 %v3998_v25, %v4030_v15 }
 0x26d   : > { %5925 = vmatprep.mubr.msk.f32.mxu0 %vm10559_vm4, %v8687_v10  ;;  %v10560_v28 = vld [vmem:[#allocation18_spill] sm:$0xff]  ;;  %vm10563_vm1 = vnez %v10562_v47  ;;  %vm10564_vm2 = vmmov %vm10515_vm0  ;;  %v4473_v32 = vmax.f32 %v8802_v57, %v8670_v56  ;;  %v4219_v2 = vld [vmem:[#allocation2 + $0xe1] sm:$0xff]  ;;  %v4537_v24 = vmax.f32 %v8798_v43, %v8802_v57 }
 0x26e   : > { %vm10561_vm11 = vnez %v10560_v28  ;;  %v4061_v10 = vsel %vm10563_vm1, %v4029_v7, -inf  ;;  %4409 = vst.msk [vmem:[#allocation3 + $0xd0] sm:$0xff] %vm10564_vm2, %v4377_v23  ;;  %v10565_v42 = vld [vmem:[#allocation74_spill] sm:$0xff]  ;;  %v10567_v30 = vld [vmem:[#allocation56_spill] sm:$0xff]  ;;  %vm10568_vm8 = vmmov %vm10515_vm0  ;;  %v4283_v4 = vmax.f32 %v4187_v12, %v4219_v2 }
 0x26f   : > { %v4252_v26 = vsel %vm10561_vm11, %v4220_v55, -inf  ;;  %vm10566_vm15 = vnez %v10565_v42  ;;  %v3997_v63 = vld [vmem:[#allocation2 + $0xf0] sm:$0xff]  ;;  %5903 = vmatmul.mubr.msk.f32.gmra.mxu1 %vm10515_vm0, %v10567_v30  ;;  %5926 = vmatmul.mubr.msk.f32.gmra.mxu0 %vm10568_vm8, %v8713_v5  ;;  %v8820_v36 = vld [vmem:[#allocation3 + $0xb8] sm:$0xff]  ;;  %vm10569_vm3 = vmmov %vm10515_vm0  ;;  %v4505_v1 = vmax.f32 %v4473_v32, %v8753_v52 }
 0x270   : > { %v4348_v40 = vsel %vm10566_vm15, %v4316_v38, -inf  ;;  %v4284_v62 = vmax.f32 %v4188_v9, %v4252_v26  ;;  %v4093_v59 = vmax.f32 %v3997_v63, %v4061_v10  ;;  %v4222_v39 = vld [vmem:[#allocation2 + $0xf9] sm:$0xff]  ;;  %5928 = vmatprep.mubr.msk.f32.mxu0 %vm10569_vm3, %v4567_v54  ;;  %vm10570_vm10 = vmmov %vm10515_vm0  ;;  %v4474_v5 = vmax.f32 %v8820_v36, %v8689_v35  ;;  %v4315_v3 = vld [vmem:[#allocation2 + $0xe2] sm:$0xff] }
 0x271   : > { %v4031_v56 = vld [vmem:[#allocation2 + $0xff] sm:$0xff]  ;;  %4410 = vst.msk [vmem:[#allocation3 + $0xd8] sm:$0xff] %vm10570_vm10, %v4378_v31  ;;  %v10571_v14 = vld [vmem:[#allocation6_spill] sm:$0xff]  ;;  %v4379_v17 = vmax.f32 %v4283_v4, %v4315_v3  ;;  %v4000_v21 = vld [vmem:[#allocation2 + $0x108] sm:$0xff]  ;;  %v4569_v35 = vmax.f32 %v4535_v13, %v8802_v57  ;;  %v4538_v6 = vmax.f32 %v8809_v51, %v8820_v36 }
 0x272   : > { %vm10572_vm13 = vnez %v10571_v14  ;;  %v4126_v48 = vld [vmem:[#allocation2 + $0xf6] sm:$0xff]  ;;  %v4380_v11 = vmax.f32 %v4284_v62, %v4348_v40  ;;  %v3999_v19 = vld [vmem:[#allocation2 + $0x100] sm:$0xff]  ;;  %vm10573_vm12 = vmmov %vm10515_vm0  ;;  %v4506_v13 = vmax.f32 %v4474_v5, %v8763_v22 }
 0x273   : > { %v4157_v49 = vsel %vm10572_vm13, %v4125_v16, -inf  ;;  %v4190_v53 = vmax.f32 %v4094_v0, %v4126_v48  ;;  %v4318_v54 = vld [vmem:[#allocation2 + $0xfa] sm:$0xff]  ;;  %5905 = vmatprep.mubr.msk.f32.mxu1 %vm10573_vm12, %v8464_v37  ;;  %v8839_v45 = vld [vmem:[#allocation3 + $0xc8] sm:$0xff]  ;;  %vm10579_vm9 = vmmov %vm10515_vm0  ;;  %v4570_v37 = vmax.f32 %v4536_v27, %v8820_v36 }
 0x274   : > { %v4189_v34 = vmax.f32 %v4093_v59, %v4157_v49  ;;  %v8837_v50 = vld [vmem:[#allocation3 + $0xc0] sm:$0xff]  ;;  %v10574_v8 = vld [vmem:[#allocation27_spill] sm:$0xff]  ;;  %v10578_v20 = vld [vmem:[#allocation9_spill] sm:$0xff]  ;;  %v4476_v29 = vmax.f32 %v8839_v45, %v8763_v22  ;;  %v4540_v32 = vmax.f32 %v4506_v13, %v8839_v45 }
 0x275   : > { %vm10575_vm7 = vnez %v10574_v8  ;;  %v10576_v7 = vld [vmem:[#allocation8_spill] sm:$0xff]  ;;  %5906 = vmatmul.mubr.msk.f32.gmra.mxu1 %vm10579_vm9, %v10578_v20  ;;  %vm10580_vm6 = vmmov %vm10515_vm0  ;;  %v4475_v61 = vmax.f32 %v8837_v50, %v8753_v52  ;;  %v4221_v60 = vld [vmem:[#allocation2 + $0xf1] sm:$0xff]  ;;  %v4571_v23 = vmax.f32 %v4537_v24, %v8837_v50 }
 0x276   : > { %v4254_v55 = vsel %vm10575_vm7, %v4222_v39, -inf  ;;  %vm10577_vm5 = vnez %v10576_v7  ;;  %v4032_v44 = vld [vmem:[#allocation2 + $0x107] sm:$0xff]  ;;  %5929 = vmatmul.mubr.msk.f32.gmra.mxu0 %vm10580_vm6, %v8779_v41  ;;  %vm10581_vm14 = vmmov %vm10515_vm0  ;;  %v4127_v38 = vld [vmem:[#allocation2 + $0xfe] sm:$0xff]  ;;  %v4539_v41 = vmax.f32 %v4505_v1, %v8837_v50  ;;  %v4285_v27 = vmax.f32 %v4189_v34, %v4221_v60 }
 0x277   : > { %v4063_v58 = vsel %vm10577_vm5, %v4031_v56, -inf  ;;  %4411 = vst.msk [vmem:[#allocation3 + $0xe0] sm:$0xff] %vm10581_vm14, %v4379_v17  ;;  %vm10582_vm4 = vmmov %vm10515_vm0  ;;  %v4286_v43 = vmax.f32 %v4190_v53, %v4254_v55  ;;  %v8865_v18 = vld [vmem:[#allocation3 + $0xd0] sm:$0xff]  ;;  %v10584_v46 = vld [vmem:[#allocation11_spill] sm:$0xff]  ;;  %v4096_v15 = vmax.f32 %v4000_v21, %v4032_v44  ;;  %v4507_v12 = vmax.f32 %v4475_v61, %v8802_v57 }
 0x278   : > { %4412 = vst.msk [vmem:[#allocation3 + $0xe8] sm:$0xff] %vm10582_vm4, %v4380_v11  ;;  %vm10583_vm11 = vmmov %vm10515_vm0  ;;  %v4317_v33 = vld [vmem:[#allocation2 + $0xf2] sm:$0xff]  ;;  %vm10585_vm1 = vnez %v10584_v46  ;;  %v4095_v25 = vmax.f32 %v3999_v19, %v4063_v58  ;;  %v4477_v28 = vmax.f32 %v8865_v18, %v8802_v57  ;;  %v10586_v26 = vld [vmem:[#allocation32_spill] sm:$0xff]  ;;  %v4572_v57 = vmax.f32 %v4538_v6, %v8839_v45 }
 0x279   : > { %5931 = vmatprep.mubr.msk.f32.mxu0 %vm10583_vm11, %v4569_v35  ;;  %v4350_v52 = vsel %vm10585_vm1, %v4318_v54, -inf  ;;  %v4381_v9 = vmax.f32 %v4285_v27, %v4317_v33  ;;  %vm10587_vm2 = vnez %v10586_v26  ;;  %v4128_v47 = vld [vmem:[#allocation2 + $0x106] sm:$0xff]  ;;  %v4033_v16 = vld [vmem:[#allocation2 + $0x10f] sm:$0xff]  ;;  %vm10588_vm15 = vmmov %vm10515_vm0  ;;  %v4573_v63 = vmax.f32 %v4539_v41, %v8865_v18 }
 0x27a   : > { %v4159_v22 = vsel %vm10587_vm2, %v4127_v38, -inf  ;;  %v4224_v10 = vld [vmem:[#allocation2 + $0x109] sm:$0xff]  ;;  %5932 = vmatmul.mubr.msk.f32.gmra.mxu0 %vm10588_vm15, %v4570_v37  ;;  %v8875_v51 = vld [vmem:[#allocation3 + $0xd8] sm:$0xff]  ;;  %v4382_v31 = vmax.f32 %v4286_v43, %v4350_v52  ;;  %v4192_v42 = vmax.f32 %v4096_v15, %v4128_v47  ;;  %v4508_v30 = vmax.f32 %v4476_v29, %v8820_v36  ;;  %vm10589_vm8 = vmmov %vm10515_vm0 }
 0x27b   : > { %v4191_v2 = vmax.f32 %v4095_v25, %v4159_v22  ;;  %v4001_v40 = vld [vmem:[#allocation2 + $0x110] sm:$0xff]  ;;  %5934 = vmatprep.mubr.msk.f32.mxu0 %vm10515_vm0, %v4571_v23  ;;  %4413 = vst.msk [vmem:[#allocation3 + $0xf0] sm:$0xff] %vm10589_vm8, %v4381_v9  ;;  %v4223_v4 = vld [vmem:[#allocation2 + $0x101] sm:$0xff]  ;;  %vm10590_vm3 = vmmov %vm10515_vm0  ;;  %v4478_v59 = vmax.f32 %v8875_v51, %v8820_v36  ;;  %v4541_v48 = vmax.f32 %v4507_v12, %v8865_v18 }
 0x27c   : > { %v4320_v62 = vld [vmem:[#allocation2 + $0x10a] sm:$0xff]  ;;  %4414 = vst.msk [vmem:[#allocation3 + $0xf8] sm:$0xff] %vm10590_vm3, %v4382_v31  ;;  %v4319_v39 = vld [vmem:[#allocation2 + $0x102] sm:$0xff]  ;;  %v10591_v56 = vld [vmem:[#allocation31_spill] sm:$0xff]  ;;  %v4509_v11 = vmax.f32 %v4477_v28, %v8837_v50  ;;  %v4574_v54 = vmax.f32 %v4540_v32, %v8875_v51  ;;  %v4542_v8 = vmax.f32 %v4508_v30, %v8875_v51 }
 0x27d   : > { %v4287_v0 = vmax.f32 %v4191_v2, %v4223_v4  ;;  %vm10592_vm10 = vnez %v10591_v56  ;;  %v10593_v1 = vld [vmem:[#allocation20_spill] sm:$0xff]  ;;  %v4129_v3 = vld [vmem:[#allocation2 + $0x10e] sm:$0xff]  ;;  %v4002_v14 = vld [vmem:[#allocation2 + $0x118] sm:$0xff]  ;;  %v4510_v20 = vmax.f32 %v4478_v59, %v8839_v45  ;;  %v8933_v59 = vpop.f32.mrf.mxu1 }
 0x27e   : > { %v4256_v24 = vsel %vm10592_vm10, %v4224_v10, -inf  ;;  %vm10594_vm13 = vnez %v10593_v1  ;;  %v8890_v49 = vld [vmem:[#allocation3 + $0xe0] sm:$0xff]  ;;  %v4034_v53 = vld [vmem:[#allocation2 + $0x117] sm:$0xff]  ;;  %vm10595_vm12 = vmmov %vm10515_vm0 }
 0x27f   : > { %v4065_v5 = vsel %vm10594_vm13, %v4033_v16, -inf  ;;  %v8893_v17 = vld [vmem:[#allocation3 + $0xe8] sm:$0xff]  ;;  %v4288_v34 = vmax.f32 %v4192_v42, %v4256_v24  ;;  %5935 = vmatmul.mubr.msk.f32.gmra.mxu0 %vm10595_vm12, %v4572_v57  ;;  %v4383_v19 = vmax.f32 %v4287_v0, %v4319_v39  ;;  %v10596_v21 = vld [vmem:[#allocation42_spill] sm:$0xff]  ;;  %vm10598_vm5 = vmmov %vm10515_vm0  ;;  %v4479_v55 = vmax.f32 %v8890_v49, %v8837_v50 }
 0x280   : > { %v4097_v36 = vmax.f32 %v4001_v40, %v4065_v5  ;;  %vm10597_vm7 = vnez %v10596_v21  ;;  %5937 = vmatprep.mubr.msk.f32.mxu0 %vm10598_vm5, %v4573_v63  ;;  %v10599_v58 = vld [vmem:[#allocation35_spill] sm:$0xff]  ;;  %vm10601_vm6 = vmmov %vm10515_vm0  ;;  %v4480_v37 = vmax.f32 %v8893_v17, %v8839_v45  ;;  %v4098_v13 = vmax.f32 %v4002_v14, %v4034_v53  ;;  %v10605_v25 = vld [vmem:[#allocation13_spill] sm:$0xff] }
 0x281   : > { %v4352_v35 = vsel %vm10597_vm7, %v4320_v62, -inf  ;;  %vm10600_vm9 = vnez %v10599_v58  ;;  %4415 = vst.msk [vmem:[#allocation3 + $0x100] sm:$0xff] %vm10601_vm6, %v4383_v19  ;;  %v4226_v61 = vld [vmem:[#allocation2 + $0x119] sm:$0xff]  ;;  %v4575_v60 = vmax.f32 %v4541_v48, %v8890_v49  ;;  %v4543_v38 = vmax.f32 %v4509_v11, %v8890_v49  ;;  %vm10602_vm14 = vmmov %vm10515_vm0  ;;  %v4225_v41 = vld [vmem:[#allocation2 + $0x111] sm:$0xff] }
 0x282   : > { %v4384_v7 = vmax.f32 %v4288_v34, %v4352_v35  ;;  %v4161_v44 = vsel %vm10600_vm9, %v4129_v3, -inf  ;;  %v4511_v50 = vmax.f32 %v4479_v55, %v8865_v18  ;;  %v4130_v29 = vld [vmem:[#allocation2 + $0x116] sm:$0xff]  ;;  %vm10603_vm4 = vmmov %vm10515_vm0  ;;  %v4576_v45 = vmax.f32 %v4542_v8, %v8893_v17  ;;  %v8937_v3 = vpop.f32.mrf.mxu1  ;;  %v4519_v48 = vld [vmem:[#allocation3 + $0x120] sm:$0xff] }
 0x283   : > { %v4193_v6 = vmax.f32 %v4097_v36, %v4161_v44  ;;  %5938 = vmatmul.mubr.msk.f32.gmra.mxu0 %vm10603_vm4, %v4574_v54  ;;  %v4445_v27 = vld [vmem:[#allocation3 + $0xf0] sm:$0xff]  ;;  %v4194_v23 = vmax.f32 %v4098_v13, %v4130_v29  ;;  %v4322_v33 = vld [vmem:[#allocation2 + $0x11a] sm:$0xff]  ;;  %vm10604_vm11 = vmmov %vm10515_vm0  ;;  %vm10606_vm1 = vnez %v10605_v25  ;;  %v4544_v9 = vmax.f32 %v4510_v20, %v8893_v17 }
 0x284   : > { %4416 = vst.msk [vmem:[#allocation3 + $0x108] sm:$0xff] %vm10602_vm14, %v4384_v7  ;;  %5940 = vmatprep.mubr.msk.f32.mxu0 %vm10604_vm11, %v4575_v60  ;;  %v4321_v46 = vld [vmem:[#allocation2 + $0x112] sm:$0xff]  ;;  %v4481_v52 = vmax.f32 %v4445_v27, %v8865_v18  ;;  %v4258_v15 = vsel %vm10606_vm1, %v4226_v61, -inf  ;;  %v4512_v28 = vmax.f32 %v4480_v37, %v8875_v51  ;;  %v4577_v47 = vmax.f32 %v4543_v38, %v4445_v27  ;;  %vm10609_vm15 = vmmov %vm10515_vm0  ;;  %v4520_v19 = vld [vmem:[#allocation3 + $0x128] sm:$0xff]  ;;  %v8941_v35 = vpop.f32.mrf.mxu1 }
 0x285   : > { %v4289_v43 = vmax.f32 %v4193_v6, %v4225_v41  ;;  %v4446_v12 = vld [vmem:[#allocation3 + $0xf8] sm:$0xff]  ;;  %v4290_v22 = vmax.f32 %v4194_v23, %v4258_v15  ;;  %v4545_v10 = vmax.f32 %v4511_v50, %v4445_v27  ;;  %v10607_v16 = vld [vmem:[#allocation26_spill] sm:$0xff]  ;;  %vm10610_vm8 = vmmov %vm10515_vm0  ;;  %vm5208_vm11 = vcmask 64512  }
 0x286   : > { %vm10608_vm2 = vnez %v10607_v16  ;;  %v4482_v31 = vmax.f32 %v4446_v12, %v8875_v51  ;;  %v4513_v18 = vmax.f32 %v4481_v52, %v8890_v49  ;;  %v4578_v40 = vmax.f32 %v4544_v9, %v4446_v12  ;;  %vm10611_vm3 = vmmov %vm10515_vm0  ;;  %v4553_v8 = vld [vmem:[#allocation3 + $0x130] sm:$0xff]  ;;  %v8945_v58 = vpop.f32.mrf.mxu1  ;;  %v4554_v6 = vld [vmem:[#allocation3 + $0x138] sm:$0xff] }
 0x287   : > { %v4385_v26 = vmax.f32 %v4289_v43, %v4321_v46  ;;  %v4354_v32 = vsel %vm10608_vm2, %v4322_v33, -inf  ;;  %5941 = vmatmul.mubr.msk.f32.gmra.mxu0 %vm10609_vm15, %v4576_v45  ;;  %v4546_v63 = vmax.f32 %v4512_v28, %v4446_v12  ;;  %vm10612_vm10 = vmmov %vm10515_vm0 }
 0x288   : > { %v4386_v2 = vmax.f32 %v4290_v22, %v4354_v32  ;;  %5943 = vmatprep.mubr.msk.f32.mxu0 %vm10610_vm8, %v4577_v47  ;;  %v4447_v42 = vld [vmem:[#allocation3 + $0x100] sm:$0xff]  ;;  %v4514_v30 = vmax.f32 %v4482_v31, %v8893_v17  ;;  %vm10613_vm13 = vmmov %vm10515_vm0  ;;  %v8947_v13 = vpop.f32.mrf.mxu1 }
 0x289   : > { %4417 = vst.msk [vmem:[#allocation3 + $0x110] sm:$0xff] %vm10515_vm0, %v4385_v26  ;;  %v4483_v4 = vmax.f32 %v4447_v42, %v8890_v49  ;;  %v4579_v51 = vmax.f32 %v4545_v10, %v4447_v42  ;;  %v4547_v0 = vmax.f32 %v4513_v18, %v4447_v42  ;;  %vm10614_vm12 = vmmov %vm10515_vm0 }
 0x28a   : > { %4418 = vst.msk [vmem:[#allocation3 + $0x118] sm:$0xff] %vm10611_vm3, %v4386_v2  ;;  %vm10615_vm7 = vmmov %vm10515_vm0  ;;  %v8951_v61 = vpop.f32.mrf.mxu1 }
 0x28b   : > { %v4448_v57 = vld [vmem:[#allocation3 + $0x108] sm:$0xff]  ;;  %5944 = vmatmul.mubr.msk.f32.gmra.mxu0 %vm10612_vm10, %v4578_v40  ;;  %v4515_v39 = vmax.f32 %v4483_v4, %v4445_v27  ;;  %vm10616_vm5 = vmmov %vm10515_vm0 }
 0x28c   : > { %v4484_v62 = vmax.f32 %v4448_v57, %v8893_v17  ;;  %5946 = vmatprep.mubr.msk.f32.mxu0 %vm10613_vm13, %v4579_v51  ;;  %v4580_v56 = vmax.f32 %v4546_v63, %v4448_v57  ;;  %v4548_v24 = vmax.f32 %v4514_v30, %v4448_v57  ;;  %vm10617_vm9 = vmmov %vm10515_vm0  ;;  %v8953_v38 = vpop.f32.mrf.mxu1 }
 0x28d   : > { %vm10618_vm6 = vmmov %vm10515_vm0 }
 0x28e   : > { %v4516_v1 = vmax.f32 %v4484_v62, %v4446_v12  ;;  %vm10619_vm14 = vmmov %vm10515_vm0  ;;  %v8956_v50 = vpop.f32.mrf.mxu1 }
 0x28f   : > { %5947 = vmatmul.mubr.msk.f32.gmra.mxu0 %vm10614_vm12, %v4580_v56  ;;  %vm10620_vm4 = vmmov %vm10515_vm0 }
 0x290   : > { %v4449_v5 = vld [vmem:[#allocation3 + $0x110] sm:$0xff]  ;;  %v8958_v41 = vpop.f32.mrf.mxu1 }
 0x291   : > { %v4485_v14 = vmax.f32 %v4449_v5, %v4445_v27  ;;  %v4581_v49 = vmax.f32 %v4547_v0, %v4449_v5  ;;  %v4549_v17 = vmax.f32 %v4515_v39, %v4449_v5  ;;  %v4450_v11 = vld [vmem:[#allocation3 + $0x118] sm:$0xff]  ;;  %v8962_v27 = vpop.f32.mrf.mxu0 }
 0x292   : > { %v4486_v34 = vmax.f32 %v4450_v11, %v4446_v12  ;;  %v4582_v36 = vmax.f32 %v4548_v24, %v4450_v11  ;;  %v4550_v53 = vmax.f32 %v4516_v1, %v4450_v11  ;;  %v8960_v29 = vpop.f32.mrf.mxu1 }
 0x293   : > { %5949 = vmatprep.mubr.msk.f32.mxu0 %vm10615_vm7, %v4581_v49  ;;  %v4583_v54 = vmax.f32 %v4549_v17, %v4519_v48  ;;  %v4517_v21 = vmax.f32 %v4485_v14, %v4447_v42  ;;  %v8968_v33 = vpop.f32.mrf.mxu0 }
 0x294   : > { %5950 = vmatmul.mubr.msk.f32.gmra.mxu0 %vm10616_vm5, %v4582_v36  ;;  %v4518_v55 = vmax.f32 %v4486_v34, %v4448_v57  ;;  %v4584_v44 = vmax.f32 %v4550_v53, %v4520_v19  ;;  %v8964_v43 = vpop.f32.mrf.mxu1 }
 0x295   : > { %5952 = vmatprep.mubr.msk.f32.mxu0 %vm10617_vm9, %v4583_v54  ;;  %v4551_v7 = vmax.f32 %v4517_v21, %v4519_v48  ;;  %v8974_v52 = vpop.f32.mrf.mxu0 }
 0x296   : > { %v4552_v20 = vmax.f32 %v4518_v55, %v4520_v19  ;;  %v8966_v23 = vpop.f32.mrf.mxu1 }
 0x297   : > { %v4585_v37 = vmax.f32 %v4551_v7, %v4553_v8  ;;  %v8978_v15 = vpop.f32.mrf.mxu0 }
 0x298   : > { %5953 = vmatmul.mubr.msk.f32.gmra.mxu0 %vm10618_vm6, %v4584_v44  ;;  %v4586_v60 = vmax.f32 %v4552_v20, %v4554_v6  ;;  %v8970_v45 = vpop.f32.mrf.mxu1 }
 0x299   : > { %5955 = vmatprep.mubr.msk.f32.mxu0 %vm10619_vm14, %v4585_v37  ;;  %v8982_v9 = vpop.f32.mrf.mxu0 }
 0x29a   : > { %v8972_v46 = vpop.f32.mrf.mxu1 }
 0x29b   : > { %v8986_v26 = vpop.f32.mrf.mxu0 }
 0x29c   : > { %5956 = vmatmul.mubr.msk.f32.gmra.mxu0 %vm10620_vm4, %v4586_v60  ;;  %v8976_v25 = vpop.f32.mrf.mxu1 }
 0x29d   : > { %v8990_v47 = vpop.f32.mrf.mxu0 }
 0x29e   : > { %v8980_v12 = vpop.f32.mrf.mxu1 }
 0x29f   : > { %v8994_v16 = vpop.f32.mrf.mxu0 }
 0x2a0   : > { %v8984_v28 = vpop.f32.mrf.mxu1 }
 0x2a1   : > { %v8998_v31 = vpop.f32.mrf.mxu0 }
 0x2a2   : > { %v8988_v22 = vpop.f32.mrf.mxu1 }
 0x2a3   : > { %v9002_v2 = vpop.f32.mrf.mxu0 }
 0x2a4   : > { %v8992_v10 = vpop.f32.mrf.mxu1 }
 0x2a5   : > { %v9006_v40 = vpop.f32.mrf.mxu0 }
 0x2a6   : > { %v8996_v32 = vpop.f32.mrf.mxu1 }
 0x2a7   : > { %v9010_v63 = vpop.f32.mrf.mxu0 }
 0x2a8   : > { %v9000_v18 = vpop.f32.mrf.mxu1 }
 0x2a9   : > { %v9014_v4 = vpop.f32.mrf.mxu0 }
 0x2aa   : > { %v9004_v42 = vpop.f32.mrf.mxu1 }
 0x2ab   : > { %v9018_v62 = vpop.f32.mrf.mxu0 }
 0x2ac   : > { %v9008_v57 = vpop.f32.mrf.mxu1 }
 0x2ad   : > { %10621 = vst [vmem:[#allocation19_spill] sm:$0xff] %v9008_v57  ;;  %v9022_v39 = vpop.f32.mrf.mxu0 }
 0x2ae   : > { %v9012_v30 = vpop.f32.mrf.mxu1 }
 0x2af   : > { %10622 = vst [vmem:[#allocation58_spill] sm:$0xff] %v9012_v30  ;;  %v9026_v24 = vpop.f32.mrf.mxu0 }
 0x2b0   : > { %v9016_v51 = vpop.f32.mrf.mxu1 }
 0x2b1   : > { %10623 = vst [vmem:[#allocation73_spill] sm:$0xff] %v9016_v51  ;;  %v9030_v5 = vpop.f32.mrf.mxu0 }
 0x2b2   : > { %v9020_v0 = vpop.f32.mrf.mxu1 }
 0x2b3   : > { %10624 = vst [vmem:[#allocation24_spill] sm:$0xff] %v9020_v0  ;;  %v9034_v49 = vpop.f32.mrf.mxu0 }
 0x2b4   : > { %v9024_v56 = vpop.f32.mrf.mxu1 }
 0x2b5   : > { %10625 = vst [vmem:[#allocation14_spill] sm:$0xff] %v9024_v56  ;;  %v9038_v17 = vpop.f32.mrf.mxu0 }
 0x2b6   : > { %v9028_v1 = vpop.f32.mrf.mxu1 }
 0x2b7   : > { %10626 = vst [vmem:[#allocation16_spill] sm:$0xff] %v9028_v1  ;;  %v9042_v34 = vpop.f32.mrf.mxu0 }
 0x2b8   : > { %v9032_v14 = vpop.f32.mrf.mxu1 }
 0x2b9   : > { %10627 = vst [vmem:[#allocation68_spill] sm:$0xff] %v9032_v14  ;;  %v9046_v53 = vpop.f32.mrf.mxu0 }
 0x2ba   : > { %v9036_v48 = vpop.f32.mrf.mxu1 }
 0x2bb   : > { %10628 = vst [vmem:[#allocation70_spill] sm:$0xff] %v9036_v48  ;;  %v9048_v19 = vpop.f32.mrf.mxu0 }
 0x2bc   : > { %v9040_v11 = vpop.f32.mrf.mxu1  ;;  %10631 = vst [vmem:[#allocation71_spill] sm:$0xff] %v9048_v19 }
 0x2bd   : > { %10629 = vst [vmem:[#allocation15_spill] sm:$0xff] %v9040_v11  ;;  %v9050_v8 = vpop.f32.mrf.mxu0 }
 0x2be   : > { %v9044_v36 = vpop.f32.mrf.mxu1  ;;  %10632 = vst [vmem:[#allocation21_spill] sm:$0xff] %v9050_v8 }
 0x2bf   : > { %10630 = vst [vmem:[#allocation38_spill] sm:$0xff] %v9044_v36  ;;  %v9052_v7 = vpop.f32.mrf.mxu0 }
 0x2c0   : > { %v5862_v54 = vpop.f32.mrf.mxu1  ;;  %10633 = vst [vmem:[#allocation47_spill] sm:$0xff] %v9052_v7 }
 0x2c1   : > { %v9054_v20 = vpop.f32.mrf.mxu0 }
 0x2c2   : > { %v3748_v21 = vpop.f32.mrf.mxu1  ;;  %10634 = vst [vmem:[#allocation48_spill] sm:$0xff] %v9054_v20 }
 0x2c3   : > { %v9056_v60 = vpop.f32.mrf.mxu0 }
 0x2c4   : > { %10635 = vst [vmem:[#allocation5_spill] sm:$0xff] %v9056_v60 }
 0x2c5   : > { %v9058_v48 = vpop.f32.mrf.mxu0 }
 0x2c6   : > { %10636 = vst [vmem:[#allocation34_spill] sm:$0xff] %v9058_v48 }
 0x2c7   : > { %v9064_v56 = vpop.f32.mrf.mxu0 }
 0x2c8   : > { %10637 = vst [vmem:[#allocation44_spill] sm:$0xff] %v9064_v56  ;;  %v2780_v56 = vadd.f32 %v8962_v27, %v8933_v59 }
 0x2c9   : > { %v9070_v7 = vpop.f32.mrf.mxu0 }
 0x2ca   : > { %10640 = vst [vmem:[#allocation55_spill] sm:$0xff] %v9070_v7  ;;  %v2775_v7 = vadd.f32 %v8968_v33, %v8937_v3 }
 0x2cb   : > { %v9076_v60 = vpop.f32.mrf.mxu0 }
 0x2cc   : > { %10643 = vst [vmem:[#allocation64_spill] sm:$0xff] %v9076_v60  ;;  %v9095_v60 = vld [vmem:[%s9482_s4] ss:$0 sm:$0xff] }
 0x2cd   : > { %v9082_v57 = vpop.f32.mrf.mxu0 }
 0x2ce   : > { %v5865_v55 = vpop.f32.mrf.mxu1  ;;  %10646 = vst [vmem:[#allocation65_spill] sm:$0xff] %v9082_v57  ;;  %v2790_v57 = vadd.f32 %v8974_v52, %v8941_v35 }
 0x2d0   : > { %v3758_v44 = vpop.f32.mrf.mxu1 }
 0x2ed   : > { %v5868_v37 = vpop.f32.mrf.mxu1 }
 0x2ef   : > { %v3768_v6 = vpop.f32.mrf.mxu1 }
 0x2f1   : > { %v5871_v11 = vpop.f32.mrf.mxu1 }
 0x2f3   : > { %v3778_v36 = vpop.f32.mrf.mxu1 }
 0x2f7   : > { %v9060_v14 = vpop.f32.mrf.mxu1 }
 0x2f9   : > { %v9062_v1 = vpop.f32.mrf.mxu1 }
 0x301   : > { %v9066_v0 = vpop.f32.mrf.mxu1 }
 0x302   : > { %10638 = vst [vmem:[#allocation53_spill] sm:$0xff] %v9066_v0 }
 0x303   : > { %v9068_v51 = vpop.f32.mrf.mxu1 }
 0x304   : > { %10639 = vst [vmem:[#allocation62_spill] sm:$0xff] %v9068_v51  ;;  %v9088_v51 = vpop.f32.mrf.mxu0 }
 0x305   : > { %v9072_v20 = vpop.f32.mrf.mxu1  ;;  %10648 = vst [vmem:[#allocation69_spill] sm:$0xff] %v9088_v51  ;;  %v2785_v51 = vadd.f32 %v8978_v15, %v8945_v58  ;;  %v2795_v58 = vadd.f32 %v8986_v26, %v8951_v61 }
 0x306   : > { %10641 = vst [vmem:[#allocation23_spill] sm:$0xff] %v9072_v20  ;;  %v3908_v20 = vadd.f32 %v5862_v54, %v2780_v56  ;;  %v2800_v56 = vadd.f32 %v8982_v9, %v8947_v13 }
 0x307   : > { %v9074_v30 = vpop.f32.mrf.mxu1  ;;  %v3909_v19 = vadd.f32 %v3758_v44, %v2785_v51  ;;  %v2810_v51 = vadd.f32 %v8990_v47, %v8953_v38  ;;  %v2805_v44 = vadd.f32 %v8994_v16, %v8956_v50 }
 0x308   : > { %10642 = vst [vmem:[#allocation22_spill] sm:$0xff] %v9074_v30  ;;  %v3912_v15 = vadd.f32 %v5868_v37, %v2800_v56 }
 0x30c   : > { %v9078_v8 = vpop.f32.mrf.mxu1 }
 0x30d   : > { %10644 = vst [vmem:[#allocation28_spill] sm:$0xff] %v9078_v8 }
 0x30e   : > { %v9080_v48 = vpop.f32.mrf.mxu1 }
 0x30f   : > { %10645 = vst [vmem:[#allocation25_spill] sm:$0xff] %v9080_v48  ;;  %v3907_v48 = vadd.f32 %v3748_v21, %v2775_v7 }
 0x311   : > { %v9086_v0 = vpop.f32.mrf.mxu1 }
 0x312   : > { %10647 = vst [vmem:[#allocation67_spill] sm:$0xff] %v9086_v0  ;;  %v3910_v0 = vadd.f32 %v5865_v55, %v2790_v57 }
 0x313   : > { %v9099_v59 = vpop.f32.mrf.mxu1 }
 0x315   : > { %v5912_v30 = vpop.f32.mrf.mxu0  ;;  %v9112_v21 = vpop.f32.mrf.mxu1 }
 0x316   : > { %v4914_v8 = vadd.f32 %v5912_v30, %v3908_v20  ;;  %v3914_v20 = vadd.f32 %v5871_v11, %v2810_v51 }
 0x317   : > { %v4754_v27 = vpop.f32.mrf.mxu0  ;;  %v9126_v26 = vpop.f32.mrf.mxu1 }
 0x318   : > { %v9104_v3 = vadd.f32 %v9095_v60, %v4914_v8  ;;  %v4913_v33 = vadd.f32 %v4754_v27, %v3907_v48  ;;  %v3911_v8 = vadd.f32 %v3768_v6, %v2795_v58  ;;  %v2820_v6 = vadd.f32 %v8998_v31, %v8958_v41 }
 0x319   : > { %v5915_v54 = vpop.f32.mrf.mxu0  ;;  %v2815_v27 = vadd.f32 %v9002_v2, %v8960_v29  ;;  %v2825_v41 = vadd.f32 %v9010_v63, %v8966_v23  ;;  %v2840_v29 = vadd.f32 %v9014_v4, %v8970_v45  ;;  %v2845_v23 = vadd.f32 %v9026_v24, %v8980_v12 }
 0x31a   : > { %v5508_v35 = vmul.f32 -1.442695, %v9104_v3  ;;  %v9110_v52 = vadd.f32 %v9095_v60, %v4913_v33  ;;  %v4916_v30 = vadd.f32 %v5915_v54, %v3910_v0  ;;  %v3913_v33 = vadd.f32 %v3778_v36, %v2805_v44  ;;  %v9142_v54 = vpop.f32.mrf.mxu1 }
 0x31b   : > { %v4764_v57 = vpop.f32.mrf.mxu0  ;;  %v3916_v31 = vadd.f32 %v9060_v14, %v2820_v6  ;;  %v3915_v45 = vadd.f32 %v9062_v1, %v2815_v27  ;;  %v9178_v12 = vadd.f32 %v9038_v17, %v8992_v10  ;;  %v10649_v10 = vld [vmem:[#allocation71_spill] sm:$0xff]  ;;  %v10650_v17 = vld [vmem:[#allocation53_spill] sm:$0xff] }
 0x31c   : > { %6097 = vpow2.f32 %v5508_v35  ;;  %v5507_v48 = vmul.f32 -1.442695, %v9110_v52  ;;  %v9118_v13 = vadd.f32 %v9095_v60, %v4916_v30  ;;  %v4915_v9 = vadd.f32 %v4764_v57, %v3909_v19  ;;  %v9166_v57 = vpop.f32.mrf.mxu1 }
 0x31d   : > { %v2830_v35 = vadd.f32 %v9006_v40, %v8964_v43  ;;  %v2850_v43 = vadd.f32 %v9022_v39, %v8976_v25  ;;  %v9174_v25 = vadd.f32 %v9034_v49, %v8988_v22  ;;  %v9190_v22 = vadd.f32 %v9046_v53, %v9000_v18  ;;  %v10652_v53 = vld [vmem:[#allocation19_spill] sm:$0xff] }
 0x31e   : > { %v5918_v55 = vpop.f32.mrf.mxu0  ;;  %6099 = vpow2.f32 %v5507_v48  ;;  %v5510_v0 = vmul.f32 -1.442695, %v9118_v13  ;;  %v9124_v7 = vadd.f32 %v9095_v60, %v4915_v9  ;;  %v9194_v49 = vadd.f32 %v10649_v10, %v9004_v42  ;;  %v10654_v42 = vld [vmem:[#allocation58_spill] sm:$0xff] }
 0x31f   : > { %v4918_v61 = vadd.f32 %v5918_v55, %v3912_v15  ;;  %v2835_v15 = vadd.f32 %v9018_v62, %v8972_v46  ;;  %v9170_v46 = vadd.f32 %v9030_v5, %v8984_v28  ;;  %v9182_v62 = vadd.f32 %v9042_v34, %v8996_v32  ;;  %v10651_v34 = vld [vmem:[#allocation62_spill] sm:$0xff] }
 0x320   : > { %v4774_v37 = vpop.f32.mrf.mxu0  ;;  %6101 = vpow2.f32 %v5510_v0  ;;  %v5509_v19 = vmul.f32 -1.442695, %v9124_v7  ;;  %v3918_v32 = vadd.f32 %v10650_v17, %v2830_v35  ;;  %v3917_v48 = vadd.f32 %v10651_v34, %v2825_v41  ;;  %v9202_v0 = vpop.f32.mrf.mxu1  ;;  %v10657_v35 = vld [vmem:[#allocation73_spill] sm:$0xff]  ;;  %v10658_v41 = vld [vmem:[#allocation48_spill] sm:$0xff] }
 0x321   : > { %v9132_v38 = vadd.f32 %v9095_v60, %v4918_v61  ;;  %v4917_v47 = vadd.f32 %v4774_v37, %v3911_v8  ;;  %v10653_v61 = vld [vmem:[#allocation21_spill] sm:$0xff]  ;;  %v10662_v17 = vld [vmem:[#allocation28_spill] sm:$0xff] }
 0x322   : > { %6103 = vpow2.f32 %v5509_v19  ;;  %v9206_v44 = vadd.f32 %v10653_v61, %v10652_v53  ;;  %v10656_v19 = vld [vmem:[#allocation23_spill] sm:$0xff]  ;;  %v10664_v53 = vld [vmem:[#allocation34_spill] sm:$0xff] }
 0x323   : > { %v5921_v56 = vpop.f32.mrf.mxu0  ;;  %v5512_v50 = vmul.f32 -1.442695, %v9132_v38  ;;  %v9140_v16 = vadd.f32 %v9095_v60, %v4917_v47  ;;  %v3920_v47 = vadd.f32 %v10656_v19, %v2840_v29 }
 0x324   : > { %v4920_v11 = vadd.f32 %v5921_v56, %v3914_v20  ;;  %v10655_v20 = vld [vmem:[#allocation47_spill] sm:$0xff] }
 0x325   : > { %v4784_v2 = vpop.f32.mrf.mxu0  ;;  %6105 = vpow2.f32 %v5512_v50  ;;  %v5511_v36 = vmul.f32 -1.442695, %v9140_v16  ;;  %v9210_v37 = vadd.f32 %v10655_v20, %v10654_v42  ;;  %v10665_v42 = vld [vmem:[#allocation25_spill] sm:$0xff] }
 0x326   : > { %v9153_v30 = vadd.f32 %v9095_v60, %v4920_v11  ;;  %v4919_v58 = vadd.f32 %v4784_v2, %v3913_v33  ;;  %v10659_v2 = vld [vmem:[#allocation24_spill] sm:$0xff] }
 0x327   : > { %6107 = vpow2.f32 %v5511_v36  ;;  %v10660_v36 = vld [vmem:[#allocation5_spill] sm:$0xff] }
 0x328   : > { %v5514_v63 = vmul.f32 -1.442695, %v9153_v30  ;;  %v9164_v4 = vadd.f32 %v9095_v60, %v4919_v58  ;;  %v9220_v58 = vadd.f32 %v10660_v36, %v10659_v2 }
 0x329   : > { %v5924_v40 = vpop.f32.mrf.mxu0  ;;  %v6098_v5 = vpop.eup %6097 }
 0x32a   : > { %v4922_v14 = vadd.f32 %v5924_v40, %v3916_v31  ;;  %6109 = vpow2.f32 %v5514_v63  ;;  %v5513_v24 = vmul.f32 -1.442695, %v9164_v4  ;;  %v5081_v51 = vadd.f32 1.0, %v6098_v5 }
 0x32b   : > { %v4794_v39 = vpop.f32.mrf.mxu0  ;;  %v6100_v18 = vpop.eup %6099  ;;  %v9216_v31 = vadd.f32 %v10658_v41, %v10657_v35 }
 0x32c   : > { %v9186_v1 = vadd.f32 %v9095_v60, %v4922_v14  ;;  %v4921_v28 = vadd.f32 %v4794_v39, %v3915_v45  ;;  %6111 = vpow2.f32 %v5513_v24  ;;  %v5080_v33 = vadd.f32 1.0, %v6100_v18  ;;  %v9228_v39 = vpop.f32.mrf.mxu1  ;;  %v10663_v18 = vld [vmem:[#allocation14_spill] sm:$0xff] }
 0x32d   : > { %6113 = vrcp.f32 %v5081_v51  ;;  %v6102_v11 = vpop.eup %6101  ;;  %v9239_v61 = vadd.f32 %v10664_v53, %v10663_v18 }
 0x32e   : > { %v5516_v8 = vmul.f32 -1.442695, %v9186_v1  ;;  %v9200_v55 = vadd.f32 %v9095_v60, %v4921_v28  ;;  %v5083_v40 = vadd.f32 1.0, %v6102_v11  ;;  %v10661_v28 = vld [vmem:[#allocation22_spill] sm:$0xff] }
 0x32f   : > { %v5927_v9 = vpop.f32.mrf.mxu0  ;;  %v6104_v24 = vpop.eup %6103  ;;  %v3919_v5 = vadd.f32 %v10661_v28, %v2835_v15  ;;  %v3921_v15 = vadd.f32 %v10665_v42, %v2845_v23  ;;  %v3923_v28 = vadd.f32 %v9099_v59, %v9174_v25  ;;  %v3926_v59 = vadd.f32 %v9112_v21, %v9178_v12 }
 0x330   : > { %v4924_v6 = vadd.f32 %v5927_v9, %v3918_v32  ;;  %v5515_v56 = vmul.f32 -1.442695, %v9200_v55  ;;  %6115 = vpow2.f32 %v5516_v8  ;;  %v3922_v32 = vadd.f32 %v10662_v17, %v2850_v43 }
 0x331   : > { %v4804_v27 = vpop.f32.mrf.mxu0  ;;  %6117 = vrcp.f32 %v5080_v33  ;;  %v3925_v21 = vadd.f32 %v9126_v26, %v9182_v62 }
 0x332   : > { %v4923_v50 = vadd.f32 %v4804_v27, %v3917_v48  ;;  %v9223_v45 = vadd.f32 %v9095_v60, %v4924_v6  ;;  %6119 = vpow2.f32 %v5515_v56  ;;  %v5082_v48 = vadd.f32 1.0, %v6104_v24  ;;  %v6106_v8 = vpop.eup %6105  ;;  %v9243_v27 = vpop.f32.mrf.mxu1  ;;  %v10666_v56 = vld [vmem:[#allocation16_spill] sm:$0xff] }
 0x333   : > { %6121 = vrcp.f32 %v5083_v40  ;;  %v5085_v43 = vadd.f32 1.0, %v6106_v8  ;;  %v10668_v40 = vld [vmem:[#allocation67_spill] sm:$0xff] }
 0x334   : > { %v9226_v63 = vadd.f32 %v9095_v60, %v4923_v50  ;;  %v5518_v10 = vmul.f32 -1.442695, %v9223_v45  ;;  %v6108_v33 = vpop.eup %6107  ;;  %v10667_v50 = vld [vmem:[#allocation44_spill] sm:$0xff]  ;;  %v10670_v8 = vld [vmem:[#allocation55_spill] sm:$0xff] }
 0x335   : > { %v9247_v11 = vadd.f32 %v10667_v50, %v10666_v56  ;;  %v5084_v41 = vadd.f32 1.0, %v6108_v33 }
 0x336   : > { %v5930_v29 = vpop.f32.mrf.mxu0  ;;  %v5517_v9 = vmul.f32 -1.442695, %v9226_v63  ;;  %6123 = vpow2.f32 %v5518_v10 }
 0x337   : > { %v4926_v14 = vadd.f32 %v5930_v29, %v3920_v47  ;;  %6125 = vrcp.f32 %v5082_v48  ;;  %v6110_v29 = vpop.eup %6109 }
 0x338   : > { %v4814_v34 = vpop.f32.mrf.mxu0  ;;  %6127 = vpow2.f32 %v5517_v9  ;;  %v5087_v10 = vadd.f32 1.0, %v6110_v29  ;;  %v10669_v9 = vld [vmem:[#allocation68_spill] sm:$0xff]  ;;  %v10673_v29 = vld [vmem:[#allocation15_spill] sm:$0xff] }
 0x339   : > { %v9235_v51 = vadd.f32 %v9095_v60, %v4926_v14  ;;  %v4925_v20 = vadd.f32 %v4814_v34, %v3919_v5  ;;  %6129 = vrcp.f32 %v5085_v43  ;;  %v3924_v14 = vadd.f32 %v10668_v40, %v9170_v46  ;;  %v9264_v34 = vpop.f32.mrf.mxu1  ;;  %v6112_v48 = vpop.eup %6111  ;;  %v10672_v43 = vld [vmem:[#allocation64_spill] sm:$0xff]  ;;  %v10674_v40 = vld [vmem:[#allocation65_spill] sm:$0xff] }
 0x33a   : > { %v5933_v19 = vpop.f32.mrf.mxu0  ;;  %v9268_v46 = vadd.f32 %v10670_v8, %v10669_v9  ;;  %v5086_v53 = vadd.f32 1.0, %v6112_v48  ;;  %v3928_v8 = vadd.f32 %v9142_v54, %v9190_v22 }
 0x33b   : > { %v5520_v47 = vmul.f32 -1.442695, %v9235_v51  ;;  %v4928_v6 = vadd.f32 %v5933_v19, %v3922_v32  ;;  %v9250_v35 = vadd.f32 %v9095_v60, %v4925_v20  ;;  %v6114_v20 = vpop.eup %6113  ;;  %v10671_v19 = vld [vmem:[#allocation70_spill] sm:$0xff] }
 0x33c   : > { %v4824_v23 = vpop.f32.mrf.mxu0  ;;  %v5177_v56 = vmul.f32 %v6114_v20, %v9104_v3 }
 0x33d   : > { %v9253_v2 = vadd.f32 %v9095_v60, %v4928_v6  ;;  %v4927_v36 = vadd.f32 %v4824_v23, %v3921_v15  ;;  %6131 = vpow2.f32 %v5520_v47  ;;  %v5519_v24 = vmul.f32 -1.442695, %v9250_v35  ;;  %v6116_v33 = vpop.eup %6115 }
 0x33e   : > { %6133 = vrcp.f32 %v5084_v41  ;;  %v9282_v47 = vadd.f32 %v10672_v43, %v10671_v19  ;;  %v9293_v41 = vpop.f32.mrf.mxu1  ;;  %v5089_v26 = vadd.f32 1.0, %v6116_v33  ;;  %5210 = vst.msk [vmem:[%s9278_s21 + $0x8] sm:$0xff] %vm5208_vm11, %v5177_v56  ;;  %v3929_v56 = vadd.f32 %v9228_v39, %v9210_v37 }
 0x33f   : > { %v5936_v5 = vpop.f32.mrf.mxu0  ;;  %v5522_v17 = vmul.f32 -1.442695, %v9253_v2  ;;  %v9262_v32 = vadd.f32 %v9095_v60, %v4927_v36  ;;  %6135 = vpow2.f32 %v5519_v24  ;;  %v6118_v36 = vpop.eup %6117  ;;  %v3932_v39 = vadd.f32 %v9243_v27, %v9216_v31 }
 0x340   : > { %v4930_v25 = vadd.f32 %v5936_v5, %v3924_v14  ;;  %6137 = vrcp.f32 %v5087_v10  ;;  %v9297_v14 = vadd.f32 %v10674_v40, %v10673_v29  ;;  %v5176_v3 = vmul.f32 %v6118_v36, %v9110_v52 }
 0x341   : > { %v4834_v18 = vpop.f32.mrf.mxu0  ;;  %v5521_v42 = vmul.f32 -1.442695, %v9262_v32  ;;  %6139 = vpow2.f32 %v5522_v17 }
 0x342   : > { %v4929_v15 = vadd.f32 %v4834_v18, %v3923_v28  ;;  %v9287_v12 = vadd.f32 %v9095_v60, %v4930_v25  ;;  %6141 = vrcp.f32 %v5086_v53  ;;  %v6120_v28 = vpop.eup %6119  ;;  %5209 = vst.msk [vmem:[%s9278_s21] sm:$0xff] %vm5208_vm11, %v5176_v3 }
 0x343   : > { %v5939_v6 = vpop.f32.mrf.mxu0  ;;  %6143 = vpow2.f32 %v5521_v42  ;;  %v6122_v48 = vpop.eup %6121  ;;  %v5088_v9 = vadd.f32 1.0, %v6120_v28 }
 0x344   : > { %v9291_v50 = vadd.f32 %v9095_v60, %v4929_v15  ;;  %v4932_v23 = vadd.f32 %v5939_v6, %v3926_v59  ;;  %v5524_v62 = vmul.f32 -1.442695, %v9287_v12  ;;  %6145 = vrcp.f32 %v5089_v26  ;;  %v6124_v18 = vpop.eup %6123  ;;  %v9318_v15 = vpop.f32.mrf.mxu1 }
 0x345   : > { %v4844_v24 = vpop.f32.mrf.mxu0  ;;  %v3927_v59 = vadd.f32 %v9166_v57, %v9194_v49  ;;  %v5179_v52 = vmul.f32 %v6122_v48, %v9118_v13  ;;  %v6126_v20 = vpop.eup %6125  ;;  %v5091_v54 = vadd.f32 1.0, %v6124_v18  ;;  %v3930_v57 = vadd.f32 %v9202_v0, %v9206_v44 }
 0x346   : > { %v5523_v5 = vmul.f32 -1.442695, %v9291_v50  ;;  %v9305_v10 = vadd.f32 %v9095_v60, %v4932_v23  ;;  %v4931_v17 = vadd.f32 %v4844_v24, %v3925_v21  ;;  %6147 = vpow2.f32 %v5524_v62  ;;  %v6128_v19 = vpop.eup %6127  ;;  %v5904_v40 = vpop.f32.mrf.mxu1 }
 0x347   : > { %v5942_v25 = vpop.f32.mrf.mxu0  ;;  %6149 = vrcp.f32 %v5088_v9  ;;  %5212 = vst.msk [vmem:[%s9278_s21 + $0x18] sm:$0xff] %vm5208_vm11, %v5179_v52  ;;  %v5178_v13 = vmul.f32 %v6126_v20, %v9124_v7  ;;  %v6130_v6 = vpop.eup %6129  ;;  %v5090_v33 = vadd.f32 1.0, %v6128_v19  ;;  %v3931_v9 = vadd.f32 %v9264_v34, %v9220_v58  ;;  %v10676_v19 = vld [vmem:[#allocation69_spill] sm:$0xff] }
 0x348   : > { %v5526_v53 = vmul.f32 -1.442695, %v9305_v10  ;;  %v9316_v42 = vadd.f32 %v9095_v60, %v4931_v17  ;;  %v4934_v22 = vadd.f32 %v5942_v25, %v3928_v8  ;;  %6151 = vpow2.f32 %v5523_v5  ;;  %v3888_v18 = vpop.f32.mrf.mxu1 }
 0x349   : > { %v4854_v49 = vpop.f32.mrf.mxu0  ;;  %6153 = vrcp.f32 %v5091_v54  ;;  %5211 = vst.msk [vmem:[%s9278_s21 + $0x10] sm:$0xff] %vm5208_vm11, %v5178_v13  ;;  %v5181_v7 = vmul.f32 %v6130_v6, %v9132_v38  ;;  %v3934_v58 = vadd.f32 %v9293_v41, %v9239_v61 }
 0x34a   : > { %v5525_v43 = vmul.f32 -1.442695, %v9316_v42  ;;  %v4933_v21 = vadd.f32 %v4854_v49, %v3927_v59  ;;  %v9329_v0 = vadd.f32 %v9095_v60, %v4934_v22  ;;  %v6132_v23 = vpop.eup %6131  ;;  %6155 = vpow2.f32 %v5526_v53  ;;  %v10675_v49 = vld [vmem:[#allocation38_spill] sm:$0xff] }
 0x34b   : > { %v5945_v44 = vpop.f32.mrf.mxu0  ;;  %v6134_v26 = vpop.eup %6133  ;;  %6157 = vrcp.f32 %v5090_v33  ;;  %v5093_v62 = vadd.f32 1.0, %v6132_v23  ;;  %5214 = vst.msk [vmem:[%s9278_s21 + $0x28] sm:$0xff] %vm5208_vm11, %v5181_v7  ;;  %v2925_v13 = vadd.f32 %v10676_v19, %v10675_v49  ;;  %v3933_v7 = vadd.f32 %v9318_v15, %v9247_v11 }
 0x34c   : > { %v9335_v36 = vadd.f32 %v9095_v60, %v4933_v21  ;;  %v4936_v29 = vadd.f32 %v5945_v44, %v3930_v57  ;;  %v5528_v37 = vmul.f32 -1.442695, %v9329_v0  ;;  %v6136_v28 = vpop.eup %6135  ;;  %v5180_v38 = vmul.f32 %v6134_v26, %v9140_v16 }
 0x34d   : > { %v4864_v24 = vpop.f32.mrf.mxu0  ;;  %6159 = vpow2.f32 %v5525_v43  ;;  %v6138_v17 = vpop.eup %6137  ;;  %v5092_v48 = vadd.f32 1.0, %v6136_v28  ;;  %v3935_v11 = vadd.f32 %v3888_v18, %v9282_v47 }
 0x34e   : > { %v5527_v3 = vmul.f32 -1.442695, %v9335_v36  ;;  %v9345_v5 = vadd.f32 %v9095_v60, %v4936_v29  ;;  %6161 = vrcp.f32 %v5093_v62  ;;  %v4935_v8 = vadd.f32 %v4864_v24, %v3929_v56  ;;  %v6140_v27 = vpop.eup %6139  ;;  %5213 = vst.msk [vmem:[%s9278_s21 + $0x20] sm:$0xff] %vm5208_vm11, %v5180_v38  ;;  %v5907_v56 = vpop.f32.mrf.mxu1 }
 0x34f   : > { %v5948_v31 = vpop.f32.mrf.mxu0  ;;  %v5183_v16 = vmul.f32 %v6138_v17, %v9153_v30  ;;  %6163 = vpow2.f32 %v5528_v37  ;;  %v6142_v52 = vpop.eup %6141  ;;  %v5095_v53 = vadd.f32 1.0, %v6140_v27  ;;  %v3936_v29 = vadd.f32 %v5904_v40, %v9268_v46 }
 0x350   : > { %v5530_v59 = vmul.f32 -1.442695, %v9345_v5  ;;  %v4938_v25 = vadd.f32 %v5948_v31, %v3932_v39  ;;  %6165 = vrcp.f32 %v5092_v48  ;;  %v9356_v34 = vadd.f32 %v9095_v60, %v4935_v8  ;;  %v6144_v54 = vpop.eup %6143  ;;  %v3898_v17 = vpop.f32.mrf.mxu1 }
 0x351   : > { %v4874_v20 = vpop.f32.mrf.mxu0  ;;  %5216 = vst.msk [vmem:[%s9278_s21 + $0x38] sm:$0xff] %vm5208_vm11, %v5183_v16  ;;  %v5182_v30 = vmul.f32 %v6142_v52, %v9164_v4  ;;  %6167 = vpow2.f32 %v5527_v3  ;;  %v5094_v43 = vadd.f32 1.0, %v6144_v54  ;;  %v6146_v21 = vpop.eup %6145  ;;  %v3937_v52 = vadd.f32 %v3898_v17, %v2925_v13 }
 0x352   : > { %v9362_v57 = vadd.f32 %v9095_v60, %v4938_v25  ;;  %v4937_v22 = vadd.f32 %v4874_v20, %v3931_v9  ;;  %6169 = vrcp.f32 %v5095_v53  ;;  %v5529_v61 = vmul.f32 -1.442695, %v9356_v34 }
 0x353   : > { %5215 = vst.msk [vmem:[%s9278_s21 + $0x30] sm:$0xff] %vm5208_vm11, %v5182_v30  ;;  %6171 = vpow2.f32 %v5530_v59  ;;  %v6148_v44 = vpop.eup %6147  ;;  %v5185_v23 = vmul.f32 %v6146_v21, %v9186_v1 }
 0x354   : > { %v5951_v41 = vpop.f32.mrf.mxu0  ;;  %v5532_v6 = vmul.f32 -1.442695, %v9362_v57  ;;  %v9371_v4 = vadd.f32 %v9095_v60, %v4937_v22  ;;  %6173 = vrcp.f32 %v5094_v43  ;;  %v6150_v62 = vpop.eup %6149  ;;  %v5097_v37 = vadd.f32 1.0, %v6148_v44 }
 0x355   : > { %v4940_v33 = vadd.f32 %v5951_v41, %v3934_v58  ;;  %6175 = vpow2.f32 %v5529_v61  ;;  %v6152_v28 = vpop.eup %6151  ;;  %5218 = vst.msk [vmem:[%s9278_s21 + $0x48] sm:$0xff] %vm5208_vm11, %v5185_v23  ;;  %v5184_v1 = vmul.f32 %v6150_v62, %v9200_v55  ;;  %v3938_v55 = vadd.f32 %v5907_v56, %v9297_v14 }
 0x356   : > { %v4884_v26 = vpop.f32.mrf.mxu0  ;;  %v5531_v39 = vmul.f32 -1.442695, %v9371_v4  ;;  %6177 = vpow2.f32 %v5532_v6  ;;  %v6154_v40 = vpop.eup %6153  ;;  %v5096_v38 = vadd.f32 1.0, %v6152_v28 }
 0x357   : > { %v9379_v24 = vadd.f32 %v9095_v60, %v4940_v33  ;;  %v4939_v15 = vadd.f32 %v4884_v26, %v3933_v7  ;;  %6179 = vrcp.f32 %v5097_v37  ;;  %v6156_v9 = vpop.eup %6155  ;;  %5217 = vst.msk [vmem:[%s9278_s21 + $0x40] sm:$0xff] %vm5208_vm11, %v5184_v1  ;;  %v5187_v8 = vmul.f32 %v6154_v40, %v9223_v45 }
 0x358   : > { %v5954_v46 = vpop.f32.mrf.mxu0  ;;  %6181 = vpow2.f32 %v5531_v39  ;;  %v6158_v27 = vpop.eup %6157  ;;  %v5099_v16 = vadd.f32 1.0, %v6156_v9 }
 0x359   : > { %v5534_v3 = vmul.f32 -1.442695, %v9379_v24  ;;  %v4942_v48 = vadd.f32 %v5954_v46, %v3936_v29  ;;  %v9391_v47 = vadd.f32 %v9095_v60, %v4939_v15  ;;  %6183 = vrcp.f32 %v5096_v38  ;;  %5220 = vst.msk [vmem:[%s9278_s21 + $0x58] sm:$0xff] %vm5208_vm11, %v5187_v8 }
 0x35a   : > { %v4894_v31 = vpop.f32.mrf.mxu0  ;;  %v6160_v18 = vpop.eup %6159  ;;  %v5186_v45 = vmul.f32 %v6158_v27, %v9226_v63 }
 0x35b   : > { %v9394_v59 = vadd.f32 %v9095_v60, %v4942_v48  ;;  %v4941_v25 = vadd.f32 %v4894_v31, %v3935_v11  ;;  %6185 = vpow2.f32 %v5534_v3  ;;  %v5533_v14 = vmul.f32 -1.442695, %v9391_v47  ;;  %v6162_v58 = vpop.eup %6161 }
 0x35c   : > { %v5957_v53 = vpop.f32.mrf.mxu0  ;;  %6187 = vrcp.f32 %v5099_v16  ;;  %v5098_v20 = vadd.f32 1.0, %v6160_v18  ;;  %v6164_v22 = vpop.eup %6163  ;;  %5219 = vst.msk [vmem:[%s9278_s21 + $0x50] sm:$0xff] %vm5208_vm11, %v5186_v45  ;;  %v5189_v49 = vmul.f32 %v6162_v58, %v9235_v51 }
 0x35d   : > { %v5536_v54 = vmul.f32 -1.442695, %v9394_v59  ;;  %v9402_v30 = vadd.f32 %v9095_v60, %v4941_v25  ;;  %6189 = vpow2.f32 %v5533_v14  ;;  %v4944_v63 = vadd.f32 %v5957_v53, %v3938_v55  ;;  %v6166_v13 = vpop.eup %6165 }
 0x35e   : > { %v4904_v19 = vpop.f32.mrf.mxu0  ;;  %6191 = vrcp.f32 %v5098_v20  ;;  %v5101_v43 = vadd.f32 1.0, %v6164_v22  ;;  %v6168_v21 = vpop.eup %6167  ;;  %5222 = vst.msk [vmem:[%s9278_s21 + $0x68] sm:$0xff] %vm5208_vm11, %v5189_v49  ;;  %v5188_v6 = vmul.f32 %v6166_v13, %v9250_v35 }
 0x35f   : > { %v5535_v61 = vmul.f32 -1.442695, %v9402_v30  ;;  %v4943_v41 = vadd.f32 %v4904_v19, %v3937_v52  ;;  %6193 = vpow2.f32 %v5536_v54  ;;  %v9412_v33 = vadd.f32 %v9095_v60, %v4944_v63  ;;  %v6170_v51 = vpop.eup %6169 }
 0x360   : > { %6195 = vrcp.f32 %v5101_v43  ;;  %v5100_v56 = vadd.f32 1.0, %v6168_v21  ;;  %v6172_v23 = vpop.eup %6171  ;;  %5221 = vst.msk [vmem:[%s9278_s21 + $0x60] sm:$0xff] %vm5208_vm11, %v5188_v6  ;;  %v5191_v7 = vmul.f32 %v6170_v51, %v9253_v2 }
 0x361   : > { %v9415_v44 = vadd.f32 %v9095_v60, %v4943_v41  ;;  %6197 = vpow2.f32 %v5535_v61  ;;  %v5538_v35 = vmul.f32 -1.442695, %v9412_v33  ;;  %v6174_v29 = vpop.eup %6173  ;;  %v5103_v26 = vadd.f32 1.0, %v6172_v23 }
 0x362   : > { %6199 = vrcp.f32 %v5100_v56  ;;  %v6176_v37 = vpop.eup %6175  ;;  %5224 = vst.msk [vmem:[%s9278_s21 + $0x78] sm:$0xff] %vm5208_vm11, %v5191_v7  ;;  %v5190_v60 = vmul.f32 %v6174_v29, %v9262_v32 }
 0x363   : > { %v5537_v62 = vmul.f32 -1.442695, %v9415_v44  ;;  %6201 = vpow2.f32 %v5538_v35  ;;  %v6178_v39 = vpop.eup %6177  ;;  %v5102_v28 = vadd.f32 1.0, %v6176_v37 }
 0x364   : > { %6203 = vrcp.f32 %v5103_v26  ;;  %v6180_v1 = vpop.eup %6179  ;;  %5223 = vst.msk [vmem:[%s9278_s21 + $0x70] sm:$0xff] %vm5208_vm11, %v5190_v60  ;;  %v5105_v2 = vadd.f32 1.0, %v6178_v39 }
 0x365   : > { %6205 = vpow2.f32 %v5537_v62  ;;  %v6182_v11 = vpop.eup %6181  ;;  %v5193_v15 = vmul.f32 %v6180_v1, %v9287_v12 }
 0x366   : > { %6207 = vrcp.f32 %v5102_v28  ;;  %v6184_v46 = vpop.eup %6183  ;;  %v5104_v40 = vadd.f32 1.0, %v6182_v11 }
 0x367   : > { %6209 = vrcp.f32 %v5105_v2  ;;  %5226 = vst.msk [vmem:[%s9278_s21 + $0x88] sm:$0xff] %vm5208_vm11, %v5193_v15  ;;  %v5192_v38 = vmul.f32 %v6184_v46, %v9291_v50 }
 0x368   : > { %v6186_v32 = vpop.eup %6185  ;;  %6211 = vrcp.f32 %v5104_v40 }
 0x369   : > { %v6188_v3 = vpop.eup %6187  ;;  %v5107_v17 = vadd.f32 1.0, %v6186_v32  ;;  %5225 = vst.msk [vmem:[%s9278_s21 + $0x80] sm:$0xff] %vm5208_vm11, %v5192_v38 }
 0x36a   : > { %v6190_v48 = vpop.eup %6189  ;;  %v5195_v9 = vmul.f32 %v6188_v3, %v9305_v10 }
 0x36b   : > { %v6192_v12 = vpop.eup %6191  ;;  %6213 = vrcp.f32 %v5107_v17  ;;  %v5106_v8 = vadd.f32 1.0, %v6190_v48 }
 0x36c   : > { %v6194_v55 = vpop.eup %6193  ;;  %5228 = vst.msk [vmem:[%s9278_s21 + $0x98] sm:$0xff] %vm5208_vm11, %v5195_v9  ;;  %v5194_v31 = vmul.f32 %v6192_v12, %v9316_v42 }
 0x36d   : > { %v6196_v27 = vpop.eup %6195  ;;  %6215 = vrcp.f32 %v5106_v8  ;;  %v5109_v50 = vadd.f32 1.0, %v6194_v55 }
 0x36e   : > { %v6198_v16 = vpop.eup %6197  ;;  %5227 = vst.msk [vmem:[%s9278_s21 + $0x90] sm:$0xff] %vm5208_vm11, %v5194_v31  ;;  %v5197_v25 = vmul.f32 %v6196_v27, %v9329_v0 }
 0x36f   : > { %v6200_v18 = vpop.eup %6199  ;;  %6217 = vrcp.f32 %v5109_v50  ;;  %v5108_v10 = vadd.f32 1.0, %v6198_v16 }
 0x370   : > { %v6202_v45 = vpop.eup %6201  ;;  %5230 = vst.msk [vmem:[%s9278_s21 + $0xa8] sm:$0xff] %vm5208_vm11, %v5197_v25  ;;  %v5196_v14 = vmul.f32 %v6200_v18, %v9335_v36 }
 0x371   : > { %v6204_v42 = vpop.eup %6203  ;;  %6219 = vrcp.f32 %v5108_v10  ;;  %v5111_v52 = vadd.f32 1.0, %v6202_v45 }
 0x372   : > { %v6206_v53 = vpop.eup %6205  ;;  %5229 = vst.msk [vmem:[%s9278_s21 + $0xa0] sm:$0xff] %vm5208_vm11, %v5196_v14  ;;  %v5199_v0 = vmul.f32 %v6204_v42, %v9345_v5 }
 0x373   : > { %v6208_v58 = vpop.eup %6207  ;;  %6221 = vrcp.f32 %v5111_v52  ;;  %v5110_v20 = vadd.f32 1.0, %v6206_v53 }
 0x374   : > { %v6210_v54 = vpop.eup %6209  ;;  %5232 = vst.msk [vmem:[%s9278_s21 + $0xb8] sm:$0xff] %vm5208_vm11, %v5199_v0  ;;  %v5198_v36 = vmul.f32 %v6208_v58, %v9356_v34 }
 0x375   : > { %v5201_v22 = vmul.f32 %v6210_v54, %v9362_v57  ;;  %6223 = vrcp.f32 %v5110_v20  ;;  %v6212_v49 = vpop.eup %6211 }
 0x376   : > { %5231 = vst.msk [vmem:[%s9278_s21 + $0xb0] sm:$0xff] %vm5208_vm11, %v5198_v36  ;;  %v5200_v5 = vmul.f32 %v6212_v49, %v9371_v4 }
 0x377   : > { %5234 = vst.msk [vmem:[%s9278_s21 + $0xc8] sm:$0xff] %vm5208_vm11, %v5201_v22 }
 0x378   : > { %v6214_v63 = vpop.eup %6213  ;;  %5233 = vst.msk [vmem:[%s9278_s21 + $0xc0] sm:$0xff] %vm5208_vm11, %v5200_v5 }
 0x379   : > { %v5203_v19 = vmul.f32 %v6214_v63, %v9379_v24 }
 0x37a   : > { %v6216_v34 = vpop.eup %6215 }
 0x37b   : > { %5236 = vst.msk [vmem:[%s9278_s21 + $0xd8] sm:$0xff] %vm5208_vm11, %v5203_v19  ;;  %v5202_v57 = vmul.f32 %v6216_v34, %v9391_v47 }
 0x37c   : > { %v6218_v13 = vpop.eup %6217 }
 0x37d   : > { %5235 = vst.msk [vmem:[%s9278_s21 + $0xd0] sm:$0xff] %vm5208_vm11, %v5202_v57  ;;  %v5205_v43 = vmul.f32 %v6218_v13, %v9394_v59 }
 0x37e   : > { %v6220_v61 = vpop.eup %6219 }
 0x37f   : > { %5238 = vst.msk [vmem:[%s9278_s21 + $0xe8] sm:$0xff] %vm5208_vm11, %v5205_v43  ;;  %v5204_v4 = vmul.f32 %v6220_v61, %v9402_v30 }
 0x380   : > { %v6222_v41 = vpop.eup %6221 }
 0x381   : > { %5237 = vst.msk [vmem:[%s9278_s21 + $0xe0] sm:$0xff] %vm5208_vm11, %v5204_v4  ;;  %v5207_v24 = vmul.f32 %v6222_v41, %v9412_v33 }
 0x382   : > { %v6224_v21 = vpop.eup %6223 }
 0x383   : > { %5240 = vst.msk [vmem:[%s9278_s21 + $0xf8] sm:$0xff] %vm5208_vm11, %v5207_v24  ;;  %v5206_v47 = vmul.f32 %v6224_v21, %v9415_v44 }
 0x385   : > { %5239 = vst.msk [vmem:[%s9278_s21 + $0xf0] sm:$0xff] %vm5208_vm11, %v5206_v47 }
 0x386 PF: > { %s15_s18 = sadd.s32 1, %s6239_s18  }
 0x387   : > { %p12_p4 = scmp.ge.s32.totalorder %s15_s18, 4  }
 0x389   :  { %14 = sbr.rel (!%p12_p4) target bundleno = 1 (0x1), region = 73 }

</bundles_post_ra>
